<compile_context>
chip_gen: v7x
topology: tpu7x:2x2x1
jax: 0.10.0
libtpu: 0.0.40
codegen_flags: <defaults>
</compile_context>

<pallas_src>
import functools

import jax
import jax.numpy as jnp
import numpy as np
from jax.experimental import pallas as pl
from jax.experimental.pallas import tpu as pltpu


def _round_up(x, m):
    return -(-x // m) * m


# ------------------------------ Pallas kernel ------------------------------ #

def _fused_kernel(mask_ref, xp_ref, w1_ref, b1_ref, w2_ref, b2_ref, w3_ref, b3_ref,
                  o_ref, a1_ref, a2_ref, *, Wp, taps, stage_pads):
    """All three fused-coarse layers for one image.

    mask_ref : (1, L)               1.0 on real coarse columns, 0.0 on slack columns
    xp_ref   : (1, C0p, Hp0*Wp)     coarse-padded, channel-padded network input (flat lanes)
    w*_ref   : (T*T, R_out, R_in)   fused tap weights (coarse 3x3 taps, phase-stacked channels)
    b*_ref   : (R_out, 1)           fused biases
    o_ref    : (1, R3, L)           phase-stacked network output on the coarse grid
    a1_ref   : (R1, Hp1*Wp)         VMEM: layer-2 input (coarse-padded)
    a2_ref   : (R2, Hp2*Wp)         VMEM: layer-3 input (coarse-padded)
    """
    L = mask_ref.shape[-1]
    mask = mask_ref[...]                                   # (1, L)

    def conv(load, w_ref, b_ref, T, relu):
        # accumulated tap matmuls -- no im2col scratch, MXU accumulates in f32
        acc = jnp.zeros((w_ref.shape[1], L), jnp.float32)
        for t in range(T * T):
            th, tw = divmod(t, T)
            acc = acc + jnp.dot(w_ref[t], load(th * Wp + tw),
                                preferred_element_type=jnp.float32)
        acc = acc + b_ref[...]                             # lane-broadcast bias
        return jnp.maximum(acc, 0.0) if relu else acc

    def stage(buf_ref, y, pad_lo):
        # Place y into the coarse-padded flat layout the next layer reads:
        # interior starts at (row pad_lo, col pad_lo); all border/slack lanes are zero
        # (garbage slack columns of y are masked so they land as zeros in the border lanes).
        shift = pad_lo * Wp + pad_lo
        rows = y.shape[0]
        buf_ref[:, :shift] = jnp.zeros((rows, shift), jnp.float32)
        buf_ref[:, shift:shift + L] = y * mask
        tail = buf_ref.shape[-1] - (shift + L)
        buf_ref[:, shift + L:] = jnp.zeros((rows, tail), jnp.float32)

    T1, T2, T3 = taps
    y1 = conv(lambda off: xp_ref[0, :, off:off + L], w1_ref, b1_ref, T1, relu=True)
    stage(a1_ref, y1, stage_pads[0])
    y2 = conv(lambda off: a1_ref[:, off:off + L], w2_ref, b2_ref, T2, relu=True)
    stage(a2_ref, y2, stage_pads[1])
    y3 = conv(lambda off: a2_ref[:, off:off + L], w3_ref, b3_ref, T3, relu=False)
    o_ref[0, :, :] = y3                                    # lane-dense HBM store


# --------------------------- weight preparation ----------------------------- #

def _make_fused_layer_params(w_iokk, bias, *, stride, padding, output_padding,
                             u_in, r_in_pad):
    """Fold a PyTorch ConvTranspose2d (C_in, C_out, K, K) that acts on a u_in-times
    upsampled image into a stride-1 coarse-tap conv acting directly on the phase-stacked
    coarse representation: (u_in^2*C_in) rows -> (u_out^2*C_out) rows, T x T coarse taps."""
    w = np.asarray(w_iokk, dtype=np.float32)
    b = np.asarray(bias, dtype=np.float32)
    C_in, C_out, K, K2 = w.shape
    assert K == K2
    s, p, op = int(stride), int(padding), int(output_padding)
    if K + op != 2 * p + s:
        raise NotImplementedError(
            "phase decomposition implemented for H_out == stride * H_in only")

    u_out = s * u_in
    r_in = u_in * u_in * C_in
    assert r_in <= r_in_pad
    r_out = u_out * u_out * C_out
    r_out_pad = _round_up(r_out, 8)

    # per-axis contribution table: output sub-pixel psi gets kernel tap k from input
    # coarse offset d = e // u_in and input sub-pixel phi = e % u_in, e = (psi + p - k)/s
    contrib = []
    for psi in range(u_out):
        for k in range(K):
            if (psi + p - k) % s:
                continue
            e = (psi + p - k) // s
            contrib.append((psi, k, e // u_in, e % u_in))
    d_min = min(c[2] for c in contrib)
    d_max = max(c[2] for c in contrib)
    T = d_max - d_min + 1
    pad_lo, pad_hi = -d_min, d_max
    assert pad_lo >= 0 and pad_hi >= 0

    wf = np.zeros((T, T, r_out_pad, r_in_pad), np.float32)
    for (psi_h, kh, dh, ph) in contrib:
        for (psi_w, kw, dw, pw) in contrib:
            r_o = (psi_h * u_out + psi_w) * C_out
            r_i = (ph * u_in + pw) * C_in
            wf[dh - d_min, dw - d_min, r_o:r_o + C_out, r_i:r_i + C_in] += w[:, :, kh, kw].T
    wf = wf.reshape(T * T, r_out_pad, r_in_pad)

    bf = np.zeros((r_out_pad, 1), np.float32)
    bf[:r_out, 0] = np.tile(b, u_out * u_out)

    meta = dict(T=T, pad_lo=pad_lo, pad_hi=pad_hi, u_out=u_out, C_out=C_out,
                r_in=r_in, r_in_pad=r_in_pad, r_out=r_out, r_out_pad=r_out_pad)
    return jnp.asarray(wf), jnp.asarray(bf), meta


# ------------------------------ fused forward ------------------------------- #

def _fused_forward(x_nchw, params):
    (w1, b1, m1), (w2, b2, m2), (w3, b3, m3) = params
    N, C, H, W = x_nchw.shape

    # one shared padded row width for all coarse buffers; bump it so L is a multiple of 128
    wp_min = W + max(m["pad_lo"] + m["pad_hi"] for _, _, m in params)
    Wp = wp_min
    for cand in range(wp_min, wp_min + 129):
        if (H * cand) % 128 == 0:
            Wp = cand
            break
    L = H * Wp

    # layer-1 input: channel-pad to r_in_pad, coarse-pad by layer-1 pads (+1 slack row), flatten
    c_pad = m1["r_in_pad"]
    hp0 = H + m1["pad_lo"] + m1["pad_hi"] + 1
    xp = jnp.pad(x_nchw.astype(jnp.float32),
                 ((0, 0), (0, c_pad - C),
                  (m1["pad_lo"], hp0 - H - m1["pad_lo"]),
                  (m1["pad_lo"], Wp - W - m1["pad_lo"])))
    xp = xp.reshape(N, c_pad, hp0 * Wp)

    hp1 = H + m2["pad_lo"] + m2["pad_hi"] + 1     # layer-2 input buffer rows (+1 slack)
    hp2 = H + m3["pad_lo"] + m3["pad_hi"] + 1     # layer-3 input buffer rows (+1 slack)

    mask = jnp.asarray((np.arange(L) % Wp < W).astype(np.float32)).reshape(1, L)

    kernel = functools.partial(
        _fused_kernel, Wp=Wp,
        taps=(m1["T"], m2["T"], m3["T"]),
        stage_pads=(m2["pad_lo"], m3["pad_lo"]))

    r3 = m3["r_out_pad"]
    out = pl.pallas_call(
        kernel,
        out_shape=jax.ShapeDtypeStruct((N, r3, L), jnp.float32),
        grid=(N,),
        in_specs=[
            pl.BlockSpec((1, L), lambda n: (0, 0)),                    # column-validity mask
            pl.BlockSpec((1, c_pad, hp0 * Wp), lambda n: (n, 0, 0)),   # padded input image
            pl.BlockSpec(w1.shape, lambda n: (0, 0, 0)),
            pl.BlockSpec(b1.shape, lambda n: (0, 0)),
            pl.BlockSpec(w2.shape, lambda n: (0, 0, 0)),
            pl.BlockSpec(b2.shape, lambda n: (0, 0)),
            pl.BlockSpec(w3.shape, lambda n: (0, 0, 0)),
            pl.BlockSpec(b3.shape, lambda n: (0, 0)),
        ],
        out_specs=pl.BlockSpec((1, r3, L), lambda n: (n, 0, 0)),
        scratch_shapes=[
            pltpu.VMEM((m2["r_in_pad"], hp1 * Wp), jnp.float32),       # layer-2 input
            pltpu.VMEM((m3["r_in_pad"], hp2 * Wp), jnp.float32),       # layer-3 input
        ],
        compiler_params=pltpu.CompilerParams(dimension_semantics=("parallel",)),
    )(mask, xp, w1, b1, w2, b2, w3, b3)

    # final un-interleave of the u x u output sub-pixels (tiny, on the small final output only)
    u, c_out, r_logical = m3["u_out"], m3["C_out"], m3["r_out"]
    y = out[:, :r_logical, :].reshape(N, u, u, c_out, H, Wp)[..., :W]
    y = jnp.transpose(y, (0, 3, 4, 1, 5, 2))    # (N, C, qh, ph, qw, pw)
    return y.reshape(N, c_out, u * H, u * W)


# --------------------------------- model ------------------------------------ #

class HSynthesisTransformPallas:
    """Pallas port of h_synthesisTransformModel (forward pass, f32)."""

    def __init__(self, in_dim, num_filters, strides_list, key):
        k = jax.random.split(key, 6)
        f0, f1, f2 = num_filters
        s0, s1, s2 = strides_list
        # raw parameters in the PyTorch ConvTranspose2d layout (C_in, C_out, kH, kW)
        self.w1 = 0.1 * jax.random.normal(k[0], (in_dim, f0, 5, 5), jnp.float32)
        self.b1 = 0.1 * jax.random.normal(k[1], (f0,), jnp.float32)
        self.w2 = 0.1 * jax.random.normal(k[2], (f0, f1, 5, 5), jnp.float32)
        self.b2 = 0.1 * jax.random.normal(k[3], (f1,), jnp.float32)
        self.w3 = 0.1 * jax.random.normal(k[4], (f1, f2, 3, 3), jnp.float32)
        self.b3 = 0.1 * jax.random.normal(k[5], (f2,), jnp.float32)
        self.strides = (s0, s1, s2)

        # fold the whole network onto the layer-1 coarse grid: fused layer l maps
        # (u_in^2*C_in) phase-stacked rows -> (u_out^2*C_out) rows with 3x3 coarse taps
        specs = [(self.w1, self.b1, s0, 2, 1),
                 (self.w2, self.b2, s1, 2, 1),
                 (self.w3, self.b3, s2, 1, 0)]
        self.params = []
        u_in, r_in_pad = 1, _round_up(in_dim, 8)
        for w, b, s, p, op in specs:
            wf, bf, meta = _make_fused_layer_params(
                w, b, stride=s, padding=p, output_padding=op,
                u_in=u_in, r_in_pad=r_in_pad)
            self.params.append((wf, bf, meta))
            u_in, r_in_pad = meta["u_out"], meta["r_out_pad"]

    def __call__(self, x_nchw):
        return _fused_forward(x_nchw, self.params)


# ---------------------------- pure-JAX reference ----------------------------- #

def _ref_conv_transpose2d(x_nchw, w_iokk, b, *, stride, padding, output_padding):
    K = w_iokk.shape[2]
    lo = K - 1 - padding
    hi = K - 1 - padding + output_padding
    w_oihw = jnp.flip(w_iokk, axis=(2, 3)).transpose(1, 0, 2, 3)
    y = jax.lax.conv_general_dilated(
        x_nchw, w_oihw, window_strides=(1, 1),
        padding=[(lo, hi), (lo, hi)], lhs_dilation=(stride, stride),
        dimension_numbers=('NCHW', 'OIHW', 'NCHW'))
    return y + b[None, :, None, None]


def _ref_forward(model, x_nchw):
    s = model.strides
    x = _ref_conv_transpose2d(x_nchw, model.w1, model.b1, stride=s[0],
                              padding=2, output_padding=1)
    x = jnp.maximum(x, 0.0)
    x = _ref_conv_transpose2d(x, model.w2, model.b2, stride=s[1],
                              padding=2, output_padding=1)
    x = jnp.maximum(x, 0.0)
    x = _ref_conv_transpose2d(x, model.w3, model.b3, stride=s[2],
                              padding=1, output_padding=0)
    return x


# ----------------------------------- main ------------------------------------ #

if __name__ == "__main__":
    key = jax.random.PRNGKey(0)
    k_x, k_w = jax.random.split(key)

    in_dim = 4
    num_filters = (8, 8, 4)
    strides_list = (2, 2, 1)

    # input: NCHW, small spatial size (each stride-2 layer doubles H, W)
    x = jax.random.normal(k_x, (2, in_dim, 8, 8), jnp.float32)

    model = HSynthesisTransformPallas(in_dim, num_filters, strides_list, k_w)

    out = jax.block_until_ready(jax.jit(model.__call__)(x))

    expected_shape = (2, num_filters[2], 32, 32)
    assert out.shape == expected_shape, (out.shape, expected_shape)

    ref = jax.block_until_ready(_ref_forward(model, x))
    np.testing.assert_allclose(np.asarray(out), np.asarray(ref), rtol=1e-4, atol=1e-4)

    print("KERNEL_OK")
</pallas_src>

<mosaic_0001>
module attributes {stable_mosaic.version = 11 : i64} {
  func.func @_fused_kernel(%arg0: i32, %arg1: memref<1x128xf32, #tpu.memory_space<vmem>>, %arg2: memref<1x8x176xf32, #tpu.memory_space<vmem>>, %arg3: memref<9x32x8xf32, #tpu.memory_space<vmem>>, %arg4: memref<32x1xf32, #tpu.memory_space<vmem>>, %arg5: memref<9x128x32xf32, #tpu.memory_space<vmem>>, %arg6: memref<128x1xf32, #tpu.memory_space<vmem>>, %arg7: memref<9x64x128xf32, #tpu.memory_space<vmem>>, %arg8: memref<64x1xf32, #tpu.memory_space<vmem>>, %arg9: memref<1x64x128xf32, #tpu.memory_space<vmem>>, %arg10: memref<32x176xf32, #tpu.memory_space<vmem>>, %arg11: memref<128x176xf32, #tpu.memory_space<vmem>>) attributes {dimension_semantics = [#tpu.dimension_semantics<parallel>], iteration_bounds = array<i64: 2>, scalar_prefetch = 0 : i64, scratch_operands = 2 : i64, tpu.core_type = #tpu.core_type<tc>, window_params = [{pipeline_mode = #tpu.pipeline_mode<synchronous>, transform_indices = @transform_0, window_bounds = array<i64: 1, 128>}, {transform_indices = @transform_1, window_bounds = array<i64: 1, 8, 176>}, {pipeline_mode = #tpu.pipeline_mode<synchronous>, transform_indices = @transform_2, window_bounds = array<i64: 9, 32, 8>}, {pipeline_mode = #tpu.pipeline_mode<synchronous>, transform_indices = @transform_3, window_bounds = array<i64: 32, 1>}, {pipeline_mode = #tpu.pipeline_mode<synchronous>, transform_indices = @transform_4, window_bounds = array<i64: 9, 128, 32>}, {pipeline_mode = #tpu.pipeline_mode<synchronous>, transform_indices = @transform_5, window_bounds = array<i64: 128, 1>}, {pipeline_mode = #tpu.pipeline_mode<synchronous>, transform_indices = @transform_6, window_bounds = array<i64: 9, 64, 128>}, {pipeline_mode = #tpu.pipeline_mode<synchronous>, transform_indices = @transform_7, window_bounds = array<i64: 64, 1>}, {transform_indices = @transform_8, window_bounds = array<i64: 1, 64, 128>}]} {
    %c0 = arith.constant 0 : index
    %c0_0 = arith.constant 0 : index
    %0 = vector.load %arg1[%c0, %c0_0] : memref<1x128xf32, #tpu.memory_space<vmem>>, vector<1x128xf32>
    %cst = arith.constant 0.000000e+00 : f32
    %1 = vector.broadcast %cst : f32 to vector<32x128xf32>
    %c0_1 = arith.constant 0 : index
    %c0_2 = arith.constant 0 : index
    %c0_3 = arith.constant 0 : index
    %2 = vector.load %arg3[%c0_1, %c0_2, %c0_3] : memref<9x32x8xf32, #tpu.memory_space<vmem>>, vector<1x32x8xf32>
    %3 = vector.shape_cast %2 : vector<1x32x8xf32> to vector<32x8xf32>
    %c0_4 = arith.constant 0 : index
    %c0_5 = arith.constant 0 : index
    %c0_6 = arith.constant 0 : index
    %4 = vector.load %arg2[%c0_4, %c0_5, %c0_6] : memref<1x8x176xf32, #tpu.memory_space<vmem>>, vector<1x8x128xf32>
    %5 = vector.shape_cast %4 : vector<1x8x128xf32> to vector<8x128xf32>
    %cst_7 = arith.constant dense<0.000000e+00> : vector<32x128xf32>
    %6 = tpu.matmul %3, %5, %cst_7 {dimension_numbers = #tpu.dot_dimension_numbers<[1], [0], [0], [1], [0, 0, 1, 1], [], []>} : vector<32x8xf32>, vector<8x128xf32>, vector<32x128xf32> -> vector<32x128xf32>
    %7 = arith.addf %1, %6 : vector<32x128xf32>
    %c1 = arith.constant 1 : index
    %c0_8 = arith.constant 0 : index
    %c0_9 = arith.constant 0 : index
    %8 = vector.load %arg3[%c1, %c0_8, %c0_9] : memref<9x32x8xf32, #tpu.memory_space<vmem>>, vector<1x32x8xf32>
    %9 = vector.shape_cast %8 : vector<1x32x8xf32> to vector<32x8xf32>
    %c0_10 = arith.constant 0 : index
    %c0_11 = arith.constant 0 : index
    %c1_12 = arith.constant 1 : index
    %10 = vector.load %arg2[%c0_10, %c0_11, %c1_12] : memref<1x8x176xf32, #tpu.memory_space<vmem>>, vector<1x8x128xf32>
    %11 = vector.shape_cast %10 : vector<1x8x128xf32> to vector<8x128xf32>
    %cst_13 = arith.constant dense<0.000000e+00> : vector<32x128xf32>
    %12 = tpu.matmul %9, %11, %cst_13 {dimension_numbers = #tpu.dot_dimension_numbers<[1], [0], [0], [1], [0, 0, 1, 1], [], []>} : vector<32x8xf32>, vector<8x128xf32>, vector<32x128xf32> -> vector<32x128xf32>
    %13 = arith.addf %7, %12 : vector<32x128xf32>
    %c2 = arith.constant 2 : index
    %c0_14 = arith.constant 0 : index
    %c0_15 = arith.constant 0 : index
    %14 = vector.load %arg3[%c2, %c0_14, %c0_15] : memref<9x32x8xf32, #tpu.memory_space<vmem>>, vector<1x32x8xf32>
    %15 = vector.shape_cast %14 : vector<1x32x8xf32> to vector<32x8xf32>
    %c0_16 = arith.constant 0 : index
    %c0_17 = arith.constant 0 : index
    %c2_18 = arith.constant 2 : index
    %16 = vector.load %arg2[%c0_16, %c0_17, %c2_18] : memref<1x8x176xf32, #tpu.memory_space<vmem>>, vector<1x8x128xf32>
    %17 = vector.shape_cast %16 : vector<1x8x128xf32> to vector<8x128xf32>
    %cst_19 = arith.constant dense<0.000000e+00> : vector<32x128xf32>
    %18 = tpu.matmul %15, %17, %cst_19 {dimension_numbers = #tpu.dot_dimension_numbers<[1], [0], [0], [1], [0, 0, 1, 1], [], []>} : vector<32x8xf32>, vector<8x128xf32>, vector<32x128xf32> -> vector<32x128xf32>
    %19 = arith.addf %13, %18 : vector<32x128xf32>
    %c3 = arith.constant 3 : index
    %c0_20 = arith.constant 0 : index
    %c0_21 = arith.constant 0 : index
    %20 = vector.load %arg3[%c3, %c0_20, %c0_21] : memref<9x32x8xf32, #tpu.memory_space<vmem>>, vector<1x32x8xf32>
    %21 = vector.shape_cast %20 : vector<1x32x8xf32> to vector<32x8xf32>
    %c0_22 = arith.constant 0 : index
    %c0_23 = arith.constant 0 : index
    %c16 = arith.constant 16 : index
    %22 = vector.load %arg2[%c0_22, %c0_23, %c16] : memref<1x8x176xf32, #tpu.memory_space<vmem>>, vector<1x8x128xf32>
    %23 = vector.shape_cast %22 : vector<1x8x128xf32> to vector<8x128xf32>
    %cst_24 = arith.constant dense<0.000000e+00> : vector<32x128xf32>
    %24 = tpu.matmul %21, %23, %cst_24 {dimension_numbers = #tpu.dot_dimension_numbers<[1], [0], [0], [1], [0, 0, 1, 1], [], []>} : vector<32x8xf32>, vector<8x128xf32>, vector<32x128xf32> -> vector<32x128xf32>
    %25 = arith.addf %19, %24 : vector<32x128xf32>
    %c4 = arith.constant 4 : index
    %c0_25 = arith.constant 0 : index
    %c0_26 = arith.constant 0 : index
    %26 = vector.load %arg3[%c4, %c0_25, %c0_26] : memref<9x32x8xf32, #tpu.memory_space<vmem>>, vector<1x32x8xf32>
    %27 = vector.shape_cast %26 : vector<1x32x8xf32> to vector<32x8xf32>
    %c0_27 = arith.constant 0 : index
    %c0_28 = arith.constant 0 : index
    %c17 = arith.constant 17 : index
    %28 = vector.load %arg2[%c0_27, %c0_28, %c17] : memref<1x8x176xf32, #tpu.memory_space<vmem>>, vector<1x8x128xf32>
    %29 = vector.shape_cast %28 : vector<1x8x128xf32> to vector<8x128xf32>
    %cst_29 = arith.constant dense<0.000000e+00> : vector<32x128xf32>
    %30 = tpu.matmul %27, %29, %cst_29 {dimension_numbers = #tpu.dot_dimension_numbers<[1], [0], [0], [1], [0, 0, 1, 1], [], []>} : vector<32x8xf32>, vector<8x128xf32>, vector<32x128xf32> -> vector<32x128xf32>
    %31 = arith.addf %25, %30 : vector<32x128xf32>
    %c5 = arith.constant 5 : index
    %c0_30 = arith.constant 0 : index
    %c0_31 = arith.constant 0 : index
    %32 = vector.load %arg3[%c5, %c0_30, %c0_31] : memref<9x32x8xf32, #tpu.memory_space<vmem>>, vector<1x32x8xf32>
    %33 = vector.shape_cast %32 : vector<1x32x8xf32> to vector<32x8xf32>
    %c0_32 = arith.constant 0 : index
    %c0_33 = arith.constant 0 : index
    %c18 = arith.constant 18 : index
    %34 = vector.load %arg2[%c0_32, %c0_33, %c18] : memref<1x8x176xf32, #tpu.memory_space<vmem>>, vector<1x8x128xf32>
    %35 = vector.shape_cast %34 : vector<1x8x128xf32> to vector<8x128xf32>
    %cst_34 = arith.constant dense<0.000000e+00> : vector<32x128xf32>
    %36 = tpu.matmul %33, %35, %cst_34 {dimension_numbers = #tpu.dot_dimension_numbers<[1], [0], [0], [1], [0, 0, 1, 1], [], []>} : vector<32x8xf32>, vector<8x128xf32>, vector<32x128xf32> -> vector<32x128xf32>
    %37 = arith.addf %31, %36 : vector<32x128xf32>
    %c6 = arith.constant 6 : index
    %c0_35 = arith.constant 0 : index
    %c0_36 = arith.constant 0 : index
    %38 = vector.load %arg3[%c6, %c0_35, %c0_36] : memref<9x32x8xf32, #tpu.memory_space<vmem>>, vector<1x32x8xf32>
    %39 = vector.shape_cast %38 : vector<1x32x8xf32> to vector<32x8xf32>
    %c0_37 = arith.constant 0 : index
    %c0_38 = arith.constant 0 : index
    %c32 = arith.constant 32 : index
    %40 = vector.load %arg2[%c0_37, %c0_38, %c32] : memref<1x8x176xf32, #tpu.memory_space<vmem>>, vector<1x8x128xf32>
    %41 = vector.shape_cast %40 : vector<1x8x128xf32> to vector<8x128xf32>
    %cst_39 = arith.constant dense<0.000000e+00> : vector<32x128xf32>
    %42 = tpu.matmul %39, %41, %cst_39 {dimension_numbers = #tpu.dot_dimension_numbers<[1], [0], [0], [1], [0, 0, 1, 1], [], []>} : vector<32x8xf32>, vector<8x128xf32>, vector<32x128xf32> -> vector<32x128xf32>
    %43 = arith.addf %37, %42 : vector<32x128xf32>
    %c7 = arith.constant 7 : index
    %c0_40 = arith.constant 0 : index
    %c0_41 = arith.constant 0 : index
    %44 = vector.load %arg3[%c7, %c0_40, %c0_41] : memref<9x32x8xf32, #tpu.memory_space<vmem>>, vector<1x32x8xf32>
    %45 = vector.shape_cast %44 : vector<1x32x8xf32> to vector<32x8xf32>
    %c0_42 = arith.constant 0 : index
    %c0_43 = arith.constant 0 : index
    %c33 = arith.constant 33 : index
    %46 = vector.load %arg2[%c0_42, %c0_43, %c33] : memref<1x8x176xf32, #tpu.memory_space<vmem>>, vector<1x8x128xf32>
    %47 = vector.shape_cast %46 : vector<1x8x128xf32> to vector<8x128xf32>
    %cst_44 = arith.constant dense<0.000000e+00> : vector<32x128xf32>
    %48 = tpu.matmul %45, %47, %cst_44 {dimension_numbers = #tpu.dot_dimension_numbers<[1], [0], [0], [1], [0, 0, 1, 1], [], []>} : vector<32x8xf32>, vector<8x128xf32>, vector<32x128xf32> -> vector<32x128xf32>
    %49 = arith.addf %43, %48 : vector<32x128xf32>
    %c8 = arith.constant 8 : index
    %c0_45 = arith.constant 0 : index
    %c0_46 = arith.constant 0 : index
    %50 = vector.load %arg3[%c8, %c0_45, %c0_46] : memref<9x32x8xf32, #tpu.memory_space<vmem>>, vector<1x32x8xf32>
    %51 = vector.shape_cast %50 : vector<1x32x8xf32> to vector<32x8xf32>
    %c0_47 = arith.constant 0 : index
    %c0_48 = arith.constant 0 : index
    %c34 = arith.constant 34 : index
    %52 = vector.load %arg2[%c0_47, %c0_48, %c34] : memref<1x8x176xf32, #tpu.memory_space<vmem>>, vector<1x8x128xf32>
    %53 = vector.shape_cast %52 : vector<1x8x128xf32> to vector<8x128xf32>
    %cst_49 = arith.constant dense<0.000000e+00> : vector<32x128xf32>
    %54 = tpu.matmul %51, %53, %cst_49 {dimension_numbers = #tpu.dot_dimension_numbers<[1], [0], [0], [1], [0, 0, 1, 1], [], []>} : vector<32x8xf32>, vector<8x128xf32>, vector<32x128xf32> -> vector<32x128xf32>
    %55 = arith.addf %49, %54 : vector<32x128xf32>
    %c0_50 = arith.constant 0 : index
    %c0_51 = arith.constant 0 : index
    %56 = vector.load %arg4[%c0_50, %c0_51] : memref<32x1xf32, #tpu.memory_space<vmem>>, vector<32x1xf32>
    %57 = vector.broadcast %56 : vector<32x1xf32> to vector<32x128xf32>
    %58 = arith.addf %55, %57 : vector<32x128xf32>
    %cst_52 = arith.constant 0.000000e+00 : f32
    %59 = vector.broadcast %cst_52 : f32 to vector<32x128xf32>
    %60 = arith.maximumf %58, %59 : vector<32x128xf32>
    %cst_53 = arith.constant 0.000000e+00 : f32
    %61 = vector.broadcast %cst_53 : f32 to vector<32x17xf32>
    %c0_54 = arith.constant 0 : index
    %c0_55 = arith.constant 0 : index
    %62 = vector.load %arg10[%c0_54, %c0_55] : memref<32x176xf32, #tpu.memory_space<vmem>>, vector<32x17xf32>
    tpu.vector_store %arg10[%c0_54, %c0_55], %61 {strides = array<i32>} : memref<32x176xf32, #tpu.memory_space<vmem>>, vector<32x17xf32>,
    %63 = vector.broadcast %0 : vector<1x128xf32> to vector<32x128xf32>
    %64 = arith.mulf %60, %63 : vector<32x128xf32>
    %c0_56 = arith.constant 0 : index
    %c17_57 = arith.constant 17 : index
    %65 = vector.load %arg10[%c0_56, %c17_57] : memref<32x176xf32, #tpu.memory_space<vmem>>, vector<32x128xf32>
    tpu.vector_store %arg10[%c0_56, %c17_57], %64 {strides = array<i32>} : memref<32x176xf32, #tpu.memory_space<vmem>>, vector<32x128xf32>,
    %cst_58 = arith.constant 0.000000e+00 : f32
    %66 = vector.broadcast %cst_58 : f32 to vector<32x31xf32>
    %c0_59 = arith.constant 0 : index
    %c145 = arith.constant 145 : index
    %67 = vector.load %arg10[%c0_59, %c145] : memref<32x176xf32, #tpu.memory_space<vmem>>, vector<32x31xf32>
    tpu.vector_store %arg10[%c0_59, %c145], %66 {strides = array<i32>} : memref<32x176xf32, #tpu.memory_space<vmem>>, vector<32x31xf32>,
    %cst_60 = arith.constant 0.000000e+00 : f32
    %68 = vector.broadcast %cst_60 : f32 to vector<128x128xf32>
    %c0_61 = arith.constant 0 : index
    %c0_62 = arith.constant 0 : index
    %c0_63 = arith.constant 0 : index
    %69 = vector.load %arg5[%c0_61, %c0_62, %c0_63] : memref<9x128x32xf32, #tpu.memory_space<vmem>>, vector<1x128x32xf32>
    %70 = vector.shape_cast %69 : vector<1x128x32xf32> to vector<128x32xf32>
    %c0_64 = arith.constant 0 : index
    %c0_65 = arith.constant 0 : index
    %71 = vector.load %arg10[%c0_64, %c0_65] : memref<32x176xf32, #tpu.memory_space<vmem>>, vector<32x128xf32>
    %cst_66 = arith.constant dense<0.000000e+00> : vector<128x128xf32>
    %72 = tpu.matmul %70, %71, %cst_66 {dimension_numbers = #tpu.dot_dimension_numbers<[1], [0], [0], [1], [0, 0, 1, 1], [], []>} : vector<128x32xf32>, vector<32x128xf32>, vector<128x128xf32> -> vector<128x128xf32>
    %73 = arith.addf %68, %72 : vector<128x128xf32>
    %c1_67 = arith.constant 1 : index
    %c0_68 = arith.constant 0 : index
    %c0_69 = arith.constant 0 : index
    %74 = vector.load %arg5[%c1_67, %c0_68, %c0_69] : memref<9x128x32xf32, #tpu.memory_space<vmem>>, vector<1x128x32xf32>
    %75 = vector.shape_cast %74 : vector<1x128x32xf32> to vector<128x32xf32>
    %c0_70 = arith.constant 0 : index
    %c1_71 = arith.constant 1 : index
    %76 = vector.load %arg10[%c0_70, %c1_71] : memref<32x176xf32, #tpu.memory_space<vmem>>, vector<32x128xf32>
    %cst_72 = arith.constant dense<0.000000e+00> : vector<128x128xf32>
    %77 = tpu.matmul %75, %76, %cst_72 {dimension_numbers = #tpu.dot_dimension_numbers<[1], [0], [0], [1], [0, 0, 1, 1], [], []>} : vector<128x32xf32>, vector<32x128xf32>, vector<128x128xf32> -> vector<128x128xf32>
    %78 = arith.addf %73, %77 : vector<128x128xf32>
    %c2_73 = arith.constant 2 : index
    %c0_74 = arith.constant 0 : index
    %c0_75 = arith.constant 0 : index
    %79 = vector.load %arg5[%c2_73, %c0_74, %c0_75] : memref<9x128x32xf32, #tpu.memory_space<vmem>>, vector<1x128x32xf32>
    %80 = vector.shape_cast %79 : vector<1x128x32xf32> to vector<128x32xf32>
    %c0_76 = arith.constant 0 : index
    %c2_77 = arith.constant 2 : index
    %81 = vector.load %arg10[%c0_76, %c2_77] : memref<32x176xf32, #tpu.memory_space<vmem>>, vector<32x128xf32>
    %cst_78 = arith.constant dense<0.000000e+00> : vector<128x128xf32>
    %82 = tpu.matmul %80, %81, %cst_78 {dimension_numbers = #tpu.dot_dimension_numbers<[1], [0], [0], [1], [0, 0, 1, 1], [], []>} : vector<128x32xf32>, vector<32x128xf32>, vector<128x128xf32> -> vector<128x128xf32>
    %83 = arith.addf %78, %82 : vector<128x128xf32>
    %c3_79 = arith.constant 3 : index
    %c0_80 = arith.constant 0 : index
    %c0_81 = arith.constant 0 : index
    %84 = vector.load %arg5[%c3_79, %c0_80, %c0_81] : memref<9x128x32xf32, #tpu.memory_space<vmem>>, vector<1x128x32xf32>
    %85 = vector.shape_cast %84 : vector<1x128x32xf32> to vector<128x32xf32>
    %c0_82 = arith.constant 0 : index
    %c16_83 = arith.constant 16 : index
    %86 = vector.load %arg10[%c0_82, %c16_83] : memref<32x176xf32, #tpu.memory_space<vmem>>, vector<32x128xf32>
    %cst_84 = arith.constant dense<0.000000e+00> : vector<128x128xf32>
    %87 = tpu.matmul %85, %86, %cst_84 {dimension_numbers = #tpu.dot_dimension_numbers<[1], [0], [0], [1], [0, 0, 1, 1], [], []>} : vector<128x32xf32>, vector<32x128xf32>, vector<128x128xf32> -> vector<128x128xf32>
    %88 = arith.addf %83, %87 : vector<128x128xf32>
    %c4_85 = arith.constant 4 : index
    %c0_86 = arith.constant 0 : index
    %c0_87 = arith.constant 0 : index
    %89 = vector.load %arg5[%c4_85, %c0_86, %c0_87] : memref<9x128x32xf32, #tpu.memory_space<vmem>>, vector<1x128x32xf32>
    %90 = vector.shape_cast %89 : vector<1x128x32xf32> to vector<128x32xf32>
    %c0_88 = arith.constant 0 : index
    %c17_89 = arith.constant 17 : index
    %91 = vector.load %arg10[%c0_88, %c17_89] : memref<32x176xf32, #tpu.memory_space<vmem>>, vector<32x128xf32>
    %cst_90 = arith.constant dense<0.000000e+00> : vector<128x128xf32>
    %92 = tpu.matmul %90, %91, %cst_90 {dimension_numbers = #tpu.dot_dimension_numbers<[1], [0], [0], [1], [0, 0, 1, 1], [], []>} : vector<128x32xf32>, vector<32x128xf32>, vector<128x128xf32> -> vector<128x128xf32>
    %93 = arith.addf %88, %92 : vector<128x128xf32>
    %c5_91 = arith.constant 5 : index
    %c0_92 = arith.constant 0 : index
    %c0_93 = arith.constant 0 : index
    %94 = vector.load %arg5[%c5_91, %c0_92, %c0_93] : memref<9x128x32xf32, #tpu.memory_space<vmem>>, vector<1x128x32xf32>
    %95 = vector.shape_cast %94 : vector<1x128x32xf32> to vector<128x32xf32>
    %c0_94 = arith.constant 0 : index
    %c18_95 = arith.constant 18 : index
    %96 = vector.load %arg10[%c0_94, %c18_95] : memref<32x176xf32, #tpu.memory_space<vmem>>, vector<32x128xf32>
    %cst_96 = arith.constant dense<0.000000e+00> : vector<128x128xf32>
    %97 = tpu.matmul %95, %96, %cst_96 {dimension_numbers = #tpu.dot_dimension_numbers<[1], [0], [0], [1], [0, 0, 1, 1], [], []>} : vector<128x32xf32>, vector<32x128xf32>, vector<128x128xf32> -> vector<128x128xf32>
    %98 = arith.addf %93, %97 : vector<128x128xf32>
    %c6_97 = arith.constant 6 : index
    %c0_98 = arith.constant 0 : index
    %c0_99 = arith.constant 0 : index
    %99 = vector.load %arg5[%c6_97, %c0_98, %c0_99] : memref<9x128x32xf32, #tpu.memory_space<vmem>>, vector<1x128x32xf32>
    %100 = vector.shape_cast %99 : vector<1x128x32xf32> to vector<128x32xf32>
    %c0_100 = arith.constant 0 : index
    %c32_101 = arith.constant 32 : index
    %101 = vector.load %arg10[%c0_100, %c32_101] : memref<32x176xf32, #tpu.memory_space<vmem>>, vector<32x128xf32>
    %cst_102 = arith.constant dense<0.000000e+00> : vector<128x128xf32>
    %102 = tpu.matmul %100, %101, %cst_102 {dimension_numbers = #tpu.dot_dimension_numbers<[1], [0], [0], [1], [0, 0, 1, 1], [], []>} : vector<128x32xf32>, vector<32x128xf32>, vector<128x128xf32> -> vector<128x128xf32>
    %103 = arith.addf %98, %102 : vector<128x128xf32>
    %c7_103 = arith.constant 7 : index
    %c0_104 = arith.constant 0 : index
    %c0_105 = arith.constant 0 : index
    %104 = vector.load %arg5[%c7_103, %c0_104, %c0_105] : memref<9x128x32xf32, #tpu.memory_space<vmem>>, vector<1x128x32xf32>
    %105 = vector.shape_cast %104 : vector<1x128x32xf32> to vector<128x32xf32>
    %c0_106 = arith.constant 0 : index
    %c33_107 = arith.constant 33 : index
    %106 = vector.load %arg10[%c0_106, %c33_107] : memref<32x176xf32, #tpu.memory_space<vmem>>, vector<32x128xf32>
    %cst_108 = arith.constant dense<0.000000e+00> : vector<128x128xf32>
    %107 = tpu.matmul %105, %106, %cst_108 {dimension_numbers = #tpu.dot_dimension_numbers<[1], [0], [0], [1], [0, 0, 1, 1], [], []>} : vector<128x32xf32>, vector<32x128xf32>, vector<128x128xf32> -> vector<128x128xf32>
    %108 = arith.addf %103, %107 : vector<128x128xf32>
    %c8_109 = arith.constant 8 : index
    %c0_110 = arith.constant 0 : index
    %c0_111 = arith.constant 0 : index
    %109 = vector.load %arg5[%c8_109, %c0_110, %c0_111] : memref<9x128x32xf32, #tpu.memory_space<vmem>>, vector<1x128x32xf32>
    %110 = vector.shape_cast %109 : vector<1x128x32xf32> to vector<128x32xf32>
    %c0_112 = arith.constant 0 : index
    %c34_113 = arith.constant 34 : index
    %111 = vector.load %arg10[%c0_112, %c34_113] : memref<32x176xf32, #tpu.memory_space<vmem>>, vector<32x128xf32>
    %cst_114 = arith.constant dense<0.000000e+00> : vector<128x128xf32>
    %112 = tpu.matmul %110, %111, %cst_114 {dimension_numbers = #tpu.dot_dimension_numbers<[1], [0], [0], [1], [0, 0, 1, 1], [], []>} : vector<128x32xf32>, vector<32x128xf32>, vector<128x128xf32> -> vector<128x128xf32>
    %113 = arith.addf %108, %112 : vector<128x128xf32>
    %c0_115 = arith.constant 0 : index
    %c0_116 = arith.constant 0 : index
    %114 = vector.load %arg6[%c0_115, %c0_116] : memref<128x1xf32, #tpu.memory_space<vmem>>, vector<128x1xf32>
    %115 = vector.broadcast %114 : vector<128x1xf32> to vector<128x128xf32>
    %116 = arith.addf %113, %115 : vector<128x128xf32>
    %cst_117 = arith.constant 0.000000e+00 : f32
    %117 = vector.broadcast %cst_117 : f32 to vector<128x128xf32>
    %118 = arith.maximumf %116, %117 : vector<128x128xf32>
    %cst_118 = arith.constant 0.000000e+00 : f32
    %119 = vector.broadcast %cst_118 : f32 to vector<128x17xf32>
    %c0_119 = arith.constant 0 : index
    %c0_120 = arith.constant 0 : index
    %120 = vector.load %arg11[%c0_119, %c0_120] : memref<128x176xf32, #tpu.memory_space<vmem>>, vector<128x17xf32>
    tpu.vector_store %arg11[%c0_119, %c0_120], %119 {strides = array<i32>} : memref<128x176xf32, #tpu.memory_space<vmem>>, vector<128x17xf32>,
    %121 = vector.broadcast %0 : vector<1x128xf32> to vector<128x128xf32>
    %122 = arith.mulf %118, %121 : vector<128x128xf32>
    %c0_121 = arith.constant 0 : index
    %c17_122 = arith.constant 17 : index
    %123 = vector.load %arg11[%c0_121, %c17_122] : memref<128x176xf32, #tpu.memory_space<vmem>>, vector<128x128xf32>
    tpu.vector_store %arg11[%c0_121, %c17_122], %122 {strides = array<i32>} : memref<128x176xf32, #tpu.memory_space<vmem>>, vector<128x128xf32>,
    %cst_123 = arith.constant 0.000000e+00 : f32
    %124 = vector.broadcast %cst_123 : f32 to vector<128x31xf32>
    %c0_124 = arith.constant 0 : index
    %c145_125 = arith.constant 145 : index
    %125 = vector.load %arg11[%c0_124, %c145_125] : memref<128x176xf32, #tpu.memory_space<vmem>>, vector<128x31xf32>
    tpu.vector_store %arg11[%c0_124, %c145_125], %124 {strides = array<i32>} : memref<128x176xf32, #tpu.memory_space<vmem>>, vector<128x31xf32>,
    %cst_126 = arith.constant 0.000000e+00 : f32
    %126 = vector.broadcast %cst_126 : f32 to vector<64x128xf32>
    %c0_127 = arith.constant 0 : index
    %c0_128 = arith.constant 0 : index
    %c0_129 = arith.constant 0 : index
    %127 = vector.load %arg7[%c0_127, %c0_128, %c0_129] : memref<9x64x128xf32, #tpu.memory_space<vmem>>, vector<1x64x128xf32>
    %128 = vector.shape_cast %127 : vector<1x64x128xf32> to vector<64x128xf32>
    %c0_130 = arith.constant 0 : index
    %c0_131 = arith.constant 0 : index
    %129 = vector.load %arg11[%c0_130, %c0_131] : memref<128x176xf32, #tpu.memory_space<vmem>>, vector<128x128xf32>
    %cst_132 = arith.constant dense<0.000000e+00> : vector<64x128xf32>
    %130 = tpu.matmul %128, %129, %cst_132 {dimension_numbers = #tpu.dot_dimension_numbers<[1], [0], [0], [1], [0, 0, 1, 1], [], []>} : vector<64x128xf32>, vector<128x128xf32>, vector<64x128xf32> -> vector<64x128xf32>
    %131 = arith.addf %126, %130 : vector<64x128xf32>
    %c1_133 = arith.constant 1 : index
    %c0_134 = arith.constant 0 : index
    %c0_135 = arith.constant 0 : index
    %132 = vector.load %arg7[%c1_133, %c0_134, %c0_135] : memref<9x64x128xf32, #tpu.memory_space<vmem>>, vector<1x64x128xf32>
    %133 = vector.shape_cast %132 : vector<1x64x128xf32> to vector<64x128xf32>
    %c0_136 = arith.constant 0 : index
    %c1_137 = arith.constant 1 : index
    %134 = vector.load %arg11[%c0_136, %c1_137] : memref<128x176xf32, #tpu.memory_space<vmem>>, vector<128x128xf32>
    %cst_138 = arith.constant dense<0.000000e+00> : vector<64x128xf32>
    %135 = tpu.matmul %133, %134, %cst_138 {dimension_numbers = #tpu.dot_dimension_numbers<[1], [0], [0], [1], [0, 0, 1, 1], [], []>} : vector<64x128xf32>, vector<128x128xf32>, vector<64x128xf32> -> vector<64x128xf32>
    %136 = arith.addf %131, %135 : vector<64x128xf32>
    %c2_139 = arith.constant 2 : index
    %c0_140 = arith.constant 0 : index
    %c0_141 = arith.constant 0 : index
    %137 = vector.load %arg7[%c2_139, %c0_140, %c0_141] : memref<9x64x128xf32, #tpu.memory_space<vmem>>, vector<1x64x128xf32>
    %138 = vector.shape_cast %137 : vector<1x64x128xf32> to vector<64x128xf32>
    %c0_142 = arith.constant 0 : index
    %c2_143 = arith.constant 2 : index
    %139 = vector.load %arg11[%c0_142, %c2_143] : memref<128x176xf32, #tpu.memory_space<vmem>>, vector<128x128xf32>
    %cst_144 = arith.constant dense<0.000000e+00> : vector<64x128xf32>
    %140 = tpu.matmul %138, %139, %cst_144 {dimension_numbers = #tpu.dot_dimension_numbers<[1], [0], [0], [1], [0, 0, 1, 1], [], []>} : vector<64x128xf32>, vector<128x128xf32>, vector<64x128xf32> -> vector<64x128xf32>
    %141 = arith.addf %136, %140 : vector<64x128xf32>
    %c3_145 = arith.constant 3 : index
    %c0_146 = arith.constant 0 : index
    %c0_147 = arith.constant 0 : index
    %142 = vector.load %arg7[%c3_145, %c0_146, %c0_147] : memref<9x64x128xf32, #tpu.memory_space<vmem>>, vector<1x64x128xf32>
    %143 = vector.shape_cast %142 : vector<1x64x128xf32> to vector<64x128xf32>
    %c0_148 = arith.constant 0 : index
    %c16_149 = arith.constant 16 : index
    %144 = vector.load %arg11[%c0_148, %c16_149] : memref<128x176xf32, #tpu.memory_space<vmem>>, vector<128x128xf32>
    %cst_150 = arith.constant dense<0.000000e+00> : vector<64x128xf32>
    %145 = tpu.matmul %143, %144, %cst_150 {dimension_numbers = #tpu.dot_dimension_numbers<[1], [0], [0], [1], [0, 0, 1, 1], [], []>} : vector<64x128xf32>, vector<128x128xf32>, vector<64x128xf32> -> vector<64x128xf32>
    %146 = arith.addf %141, %145 : vector<64x128xf32>
    %c4_151 = arith.constant 4 : index
    %c0_152 = arith.constant 0 : index
    %c0_153 = arith.constant 0 : index
    %147 = vector.load %arg7[%c4_151, %c0_152, %c0_153] : memref<9x64x128xf32, #tpu.memory_space<vmem>>, vector<1x64x128xf32>
    %148 = vector.shape_cast %147 : vector<1x64x128xf32> to vector<64x128xf32>
    %c0_154 = arith.constant 0 : index
    %c17_155 = arith.constant 17 : index
    %149 = vector.load %arg11[%c0_154, %c17_155] : memref<128x176xf32, #tpu.memory_space<vmem>>, vector<128x128xf32>
    %cst_156 = arith.constant dense<0.000000e+00> : vector<64x128xf32>
    %150 = tpu.matmul %148, %149, %cst_156 {dimension_numbers = #tpu.dot_dimension_numbers<[1], [0], [0], [1], [0, 0, 1, 1], [], []>} : vector<64x128xf32>, vector<128x128xf32>, vector<64x128xf32> -> vector<64x128xf32>
    %151 = arith.addf %146, %150 : vector<64x128xf32>
    %c5_157 = arith.constant 5 : index
    %c0_158 = arith.constant 0 : index
    %c0_159 = arith.constant 0 : index
    %152 = vector.load %arg7[%c5_157, %c0_158, %c0_159] : memref<9x64x128xf32, #tpu.memory_space<vmem>>, vector<1x64x128xf32>
    %153 = vector.shape_cast %152 : vector<1x64x128xf32> to vector<64x128xf32>
    %c0_160 = arith.constant 0 : index
    %c18_161 = arith.constant 18 : index
    %154 = vector.load %arg11[%c0_160, %c18_161] : memref<128x176xf32, #tpu.memory_space<vmem>>, vector<128x128xf32>
    %cst_162 = arith.constant dense<0.000000e+00> : vector<64x128xf32>
    %155 = tpu.matmul %153, %154, %cst_162 {dimension_numbers = #tpu.dot_dimension_numbers<[1], [0], [0], [1], [0, 0, 1, 1], [], []>} : vector<64x128xf32>, vector<128x128xf32>, vector<64x128xf32> -> vector<64x128xf32>
    %156 = arith.addf %151, %155 : vector<64x128xf32>
    %c6_163 = arith.constant 6 : index
    %c0_164 = arith.constant 0 : index
    %c0_165 = arith.constant 0 : index
    %157 = vector.load %arg7[%c6_163, %c0_164, %c0_165] : memref<9x64x128xf32, #tpu.memory_space<vmem>>, vector<1x64x128xf32>
    %158 = vector.shape_cast %157 : vector<1x64x128xf32> to vector<64x128xf32>
    %c0_166 = arith.constant 0 : index
    %c32_167 = arith.constant 32 : index
    %159 = vector.load %arg11[%c0_166, %c32_167] : memref<128x176xf32, #tpu.memory_space<vmem>>, vector<128x128xf32>
    %cst_168 = arith.constant dense<0.000000e+00> : vector<64x128xf32>
    %160 = tpu.matmul %158, %159, %cst_168 {dimension_numbers = #tpu.dot_dimension_numbers<[1], [0], [0], [1], [0, 0, 1, 1], [], []>} : vector<64x128xf32>, vector<128x128xf32>, vector<64x128xf32> -> vector<64x128xf32>
    %161 = arith.addf %156, %160 : vector<64x128xf32>
    %c7_169 = arith.constant 7 : index
    %c0_170 = arith.constant 0 : index
    %c0_171 = arith.constant 0 : index
    %162 = vector.load %arg7[%c7_169, %c0_170, %c0_171] : memref<9x64x128xf32, #tpu.memory_space<vmem>>, vector<1x64x128xf32>
    %163 = vector.shape_cast %162 : vector<1x64x128xf32> to vector<64x128xf32>
    %c0_172 = arith.constant 0 : index
    %c33_173 = arith.constant 33 : index
    %164 = vector.load %arg11[%c0_172, %c33_173] : memref<128x176xf32, #tpu.memory_space<vmem>>, vector<128x128xf32>
    %cst_174 = arith.constant dense<0.000000e+00> : vector<64x128xf32>
    %165 = tpu.matmul %163, %164, %cst_174 {dimension_numbers = #tpu.dot_dimension_numbers<[1], [0], [0], [1], [0, 0, 1, 1], [], []>} : vector<64x128xf32>, vector<128x128xf32>, vector<64x128xf32> -> vector<64x128xf32>
    %166 = arith.addf %161, %165 : vector<64x128xf32>
    %c8_175 = arith.constant 8 : index
    %c0_176 = arith.constant 0 : index
    %c0_177 = arith.constant 0 : index
    %167 = vector.load %arg7[%c8_175, %c0_176, %c0_177] : memref<9x64x128xf32, #tpu.memory_space<vmem>>, vector<1x64x128xf32>
    %168 = vector.shape_cast %167 : vector<1x64x128xf32> to vector<64x128xf32>
    %c0_178 = arith.constant 0 : index
    %c34_179 = arith.constant 34 : index
    %169 = vector.load %arg11[%c0_178, %c34_179] : memref<128x176xf32, #tpu.memory_space<vmem>>, vector<128x128xf32>
    %cst_180 = arith.constant dense<0.000000e+00> : vector<64x128xf32>
    %170 = tpu.matmul %168, %169, %cst_180 {dimension_numbers = #tpu.dot_dimension_numbers<[1], [0], [0], [1], [0, 0, 1, 1], [], []>} : vector<64x128xf32>, vector<128x128xf32>, vector<64x128xf32> -> vector<64x128xf32>
    %171 = arith.addf %166, %170 : vector<64x128xf32>
    %c0_181 = arith.constant 0 : index
    %c0_182 = arith.constant 0 : index
    %172 = vector.load %arg8[%c0_181, %c0_182] : memref<64x1xf32, #tpu.memory_space<vmem>>, vector<64x1xf32>
    %173 = vector.broadcast %172 : vector<64x1xf32> to vector<64x128xf32>
    %174 = arith.addf %171, %173 : vector<64x128xf32>
    %c0_183 = arith.constant 0 : index
    %c0_184 = arith.constant 0 : index
    %c0_185 = arith.constant 0 : index
    %175 = vector.load %arg9[%c0_183, %c0_184, %c0_185] : memref<1x64x128xf32, #tpu.memory_space<vmem>>, vector<1x64x128xf32>
    %176 = vector.shape_cast %175 : vector<1x64x128xf32> to vector<64x128xf32>
    %177 = vector.shape_cast %174 : vector<64x128xf32> to vector<1x64x128xf32>
    tpu.vector_store %arg9[%c0_183, %c0_184, %c0_185], %177 {strides = array<i32>} : memref<1x64x128xf32, #tpu.memory_space<vmem>>, vector<1x64x128xf32>,
    return
  }
  func.func @transform_0(%arg0: i32) -> (i32, i32) {
    %c0_i32 = arith.constant 0 : i32
    %c0_i32_0 = arith.constant 0 : i32
    %c0_i32_1 = arith.constant 0 : i32
    return %c0_i32, %c0_i32_0 : i32, i32
  }
  func.func @transform_1(%arg0: i32) -> (i32, i32, i32) {
    %c0_i32 = arith.constant 0 : i32
    %c0_i32_0 = arith.constant 0 : i32
    %c0_i32_1 = arith.constant 0 : i32
    return %arg0, %c0_i32, %c0_i32_0 : i32, i32, i32
  }
  func.func @transform_2(%arg0: i32) -> (i32, i32, i32) {
    %c0_i32 = arith.constant 0 : i32
    %c0_i32_0 = arith.constant 0 : i32
    %c0_i32_1 = arith.constant 0 : i32
    %c0_i32_2 = arith.constant 0 : i32
    return %c0_i32, %c0_i32_0, %c0_i32_1 : i32, i32, i32
  }
  func.func @transform_3(%arg0: i32) -> (i32, i32) {
    %c0_i32 = arith.constant 0 : i32
    %c0_i32_0 = arith.constant 0 : i32
    %c0_i32_1 = arith.constant 0 : i32
    return %c0_i32, %c0_i32_0 : i32, i32
  }
  func.func @transform_4(%arg0: i32) -> (i32, i32, i32) {
    %c0_i32 = arith.constant 0 : i32
    %c0_i32_0 = arith.constant 0 : i32
    %c0_i32_1 = arith.constant 0 : i32
    %c0_i32_2 = arith.constant 0 : i32
    return %c0_i32, %c0_i32_0, %c0_i32_1 : i32, i32, i32
  }
  func.func @transform_5(%arg0: i32) -> (i32, i32) {
    %c0_i32 = arith.constant 0 : i32
    %c0_i32_0 = arith.constant 0 : i32
    %c0_i32_1 = arith.constant 0 : i32
    return %c0_i32, %c0_i32_0 : i32, i32
  }
  func.func @transform_6(%arg0: i32) -> (i32, i32, i32) {
    %c0_i32 = arith.constant 0 : i32
    %c0_i32_0 = arith.constant 0 : i32
    %c0_i32_1 = arith.constant 0 : i32
    %c0_i32_2 = arith.constant 0 : i32
    return %c0_i32, %c0_i32_0, %c0_i32_1 : i32, i32, i32
  }
  func.func @transform_7(%arg0: i32) -> (i32, i32) {
    %c0_i32 = arith.constant 0 : i32
    %c0_i32_0 = arith.constant 0 : i32
    %c0_i32_1 = arith.constant 0 : i32
    return %c0_i32, %c0_i32_0 : i32, i32
  }
  func.func @transform_8(%arg0: i32) -> (i32, i32, i32) {
    %c0_i32 = arith.constant 0 : i32
    %c0_i32_0 = arith.constant 0 : i32
    %c0_i32_1 = arith.constant 0 : i32
    return %arg0, %c0_i32, %c0_i32_0 : i32, i32, i32
  }
}

</mosaic_0001>

<bundles_post_ra>
// kernel: a_call__.1
= control target key start
LH: loop header
LB: loop body
LE: loop exit
PB: predicated region body
PF: predicated region fallthrough
CT: control target
= control target key end

     0   :  { %13 = vsyncpa [#allocation5], 0  ;;  %s10582_s0 = inlined_call_operand.vmem [shape: f32[1,128], index: 0, kind: input, shape index: {}]   ;;  %s10583_s1 = inlined_call_operand.vmem [shape: f32[2,8,176], index: 1, kind: input, shape index: {}]   ;;  %s10584_s2 = inlined_call_operand.hbm [shape: f32[9,32,8], index: 2, kind: input, shape index: {}]   ;;  %s10585_s3 = inlined_call_operand.vmem [shape: f32[32,1], index: 3, kind: input, shape index: {}]   ;;  %s10586_s4 = inlined_call_operand.hbm [shape: f32[9,128,32], index: 4, kind: input, shape index: {}]   ;;  %s10587_s5 = inlined_call_operand.hbm [shape: f32[128,1], index: 5, kind: input, shape index: {}]   ;;  %s10588_s6 = inlined_call_operand.vmem [shape: f32[9,64,128], index: 6, kind: input, shape index: {}]   ;;  %s10589_s7 = inlined_call_operand.hbm [shape: f32[64,1], index: 7, kind: input, shape index: {}]   ;;  %s10590_s8 = inlined_call_operand.vmem [shape: f32[2,64,128], index: 8, kind: output, shape index: {}]  }
   0x1   :  { %14 = vsyncpa [#allocation7], 0 }
   0x2   :  { %15 = vsyncpa [#allocation10], 0  ;;  %s9110_s27 = smov 0  }
   0x3 LB: > { %s9116_s28 = sadd.s32 4294967295, %s9046_s27   ;;  %p6006_p0 = scmp.ge.s32.totalorder %s9046_s27, 1  ;;  %s9046_s27 = sphi %s9110_s27, %s21_s27  }
   0x4   : > { %p225_p1 = scmp.lt.s32.totalorder %s9046_s27, 3  ;;  %p10591_p2 = scmp.eq.s32.totalorder %s9116_s28, 0 }
   0x5   : > { %s9048_s30 = smov [#allocation6]   ;;  %s9049_s10 = smov [#allocation4]  }
   0x6   : > { %p9121_p3 = pnand %p6006_p0, %p225_p1  ;;  %s256_s9 = sshll.u32 %s9048_s30, 4  ;;  %s9125_s9 = int_to_ptr.vmem [resolvable:$true] %s256_s9 }
   0x7   : > { %s240_s11 = sshll.u32 %s9049_s10, 4  ;;  %s9050_s13 = smov [#allocation8]   ;;  %s9129_s11 = int_to_ptr.vmem [resolvable:$true] %s240_s11 }
   0x8   : > { %s10593_s29 = scalar_select %p9121_p3, 1, 0 }
   0x9   : > { %p8067_p4 = pneg %p9121_p3  ;;  %s269_s14 = sshll.u32 %s9050_s13, 4  ;;  %s9137_s14 = int_to_ptr.vmem [resolvable:$true] %s269_s14 }
   0xa   : > { %s9051_s15 = smov [#allocation9]   ;;  %s8916_s19 = scalar_lea.hbm %s10586_s4, 18432 }
   0xb   : > { %p9133_p5 = pnand %p10591_p2, %p8067_p4  ;;  %s9139_s16 = sshll.u32 %s9051_s15, 4  ;;  %s286_s16 = int_to_ptr.vmem [resolvable:$true] %s9139_s16 }
   0xc   : > { %p8917_p6 = scmp.ne.s32.totalorder %s10586_s4, %s8916_s19  ;;  %p8923_p10 = scmp.lt.u32.totalorder %s8916_s19, %s10586_s4 }
   0xd   : > { %p9149_p7 = pneg %p9133_p5 }
   0xf   : > { %p8919_p8 = pnand %p9149_p7, %p8917_p6 }
  0x11   : > { %p8920_p9 = pneg %p8919_p8 }
  0x13   : > { %p8925_p11 = pnand %p8923_p10, %p8920_p9 }
  0x15   : > { %8928 = shalt.err (!%p8925_p11)
}
  0x16   : > { %s8929_s25 = scalar_lea.vmem %s9125_s9, 18432  ;;  %p8937_p1 = scmp.lt.s32.totalorder %s9125_s9, %s9125_s9 }
  0x17   : > { %p8930_p12 = scmp.ne.s32.totalorder %s9125_s9, %s8929_s25  ;;  %p8938_p4 = scmp.lt.s32.totalorder %s8929_s25, %s8929_s25 }
  0x19   : > { %p8932_p13 = pnand %p8930_p12, %p9149_p7  ;;  %p8939_p6 = por %p8938_p4, %p8937_p1 }
  0x1b   : > { %p8933_p0 = pneg %p8932_p13 }
  0x1d   : > { %p8940_p8 = pnand %p8939_p6, %p8933_p0 }
  0x1f   : > { %8943 = shalt.err (!%p8940_p8)
}
  0x20   : > { %s9052_s26 = smov 128   ;;  %s9053_s30 = smov 8  }
  0x21   : > { %8073 = dma.hbm_to_vmem [thread:$0]  (!%p9133_p5), %s10586_s4, 18432, %s9125_s9, [#allocation7], %s9052_s26, %s9052_s26, %s9053_s30  }
  0x22   : > { %s8944_s18 = scalar_lea.hbm %s10584_s2, 4608 }
  0x23   : > { %p8945_p9 = scmp.ne.s32.totalorder %s10584_s2, %s8944_s18  ;;  %p8951_p12 = scmp.lt.u32.totalorder %s8944_s18, %s10584_s2 }
  0x25   : > { %p8947_p10 = pnand %p8945_p9, %p9149_p7 }
  0x27   : > { %p8948_p11 = pneg %p8947_p10 }
  0x29   : > { %p8953_p13 = pnand %p8951_p12, %p8948_p11 }
  0x2b   : > { %8956 = shalt.err (!%p8953_p13)
}
  0x2c   : > { %s8957_s9 = scalar_lea.vmem %s9129_s11, 4608  ;;  %p8965_p6 = scmp.lt.s32.totalorder %s9129_s11, %s9129_s11 }
  0x2d   : > { %p8958_p0 = scmp.ne.s32.totalorder %s9129_s11, %s8957_s9  ;;  %p8966_p8 = scmp.lt.s32.totalorder %s8957_s9, %s8957_s9 }
  0x2f   : > { %p8960_p1 = pnand %p8958_p0, %p9149_p7  ;;  %p8967_p9 = por %p8966_p8, %p8965_p6 }
  0x31   : > { %p8961_p4 = pneg %p8960_p1 }
  0x33   : > { %p8968_p10 = pnand %p8967_p9, %p8961_p4 }
  0x35   : > { %8971 = shalt.err (!%p8968_p10)
}
  0x36   : > { %8070 = dma.hbm_to_vmem [thread:$0]  (!%p9133_p5), %s10584_s2, 4608, %s9129_s11, [#allocation5], %s9052_s26, %s9052_s26, %s9053_s30  }
  0x37   : > { %s8972_s15 = scalar_lea.hbm %s10587_s5, 2048 }
  0x38   : > { %p8973_p11 = scmp.ne.s32.totalorder %s10587_s5, %s8972_s15  ;;  %p8979_p0 = scmp.lt.u32.totalorder %s8972_s15, %s10587_s5 }
  0x3a   : > { %p8975_p12 = pnand %p8973_p11, %p9149_p7 }
  0x3c   : > { %p8976_p13 = pneg %p8975_p12 }
  0x3e   : > { %p8981_p1 = pnand %p8979_p0, %p8976_p13 }
  0x40   : > { %8984 = shalt.err (!%p8981_p1)
}
  0x41   : > { %s8985_s11 = scalar_lea.vmem %s9137_s14, 2048  ;;  %p8993_p9 = scmp.lt.s32.totalorder %s9137_s14, %s9137_s14 }
  0x42   : > { %p8986_p4 = scmp.ne.s32.totalorder %s9137_s14, %s8985_s11  ;;  %p8994_p10 = scmp.lt.s32.totalorder %s8985_s11, %s8985_s11 }
  0x44   : > { %p8988_p6 = pnand %p8986_p4, %p9149_p7  ;;  %p8995_p11 = por %p8994_p10, %p8993_p9 }
  0x46   : > { %p8989_p8 = pneg %p8988_p6 }
  0x48   : > { %p8996_p12 = pnand %p8995_p11, %p8989_p8 }
  0x4a   : > { %8999 = shalt.err (!%p8996_p12)
}
  0x4b   : > { %8076 = dma.hbm_to_vmem [thread:$0]  (!%p9133_p5), %s10587_s5, 2048, %s9137_s14, [#allocation7], %s9052_s26, %s9052_s26, %s9053_s30  }
  0x4c   : > { %s9000_s25 = scalar_lea.hbm %s10589_s7, 1024 }
  0x4d   : > { %p9001_p13 = scmp.ne.s32.totalorder %s10589_s7, %s9000_s25  ;;  %p9007_p4 = scmp.lt.u32.totalorder %s9000_s25, %s10589_s7 }
  0x4f   : > { %p9003_p0 = pnand %p9001_p13, %p9149_p7 }
  0x51   : > { %p9004_p1 = pneg %p9003_p0 }
  0x53   : > { %p9009_p6 = pnand %p9007_p4, %p9004_p1 }
  0x55   : > { %9012 = shalt.err (!%p9009_p6)
}
  0x56   : > { %s9013_s18 = scalar_lea.vmem %s286_s16, 1024  ;;  %p9021_p11 = scmp.lt.s32.totalorder %s286_s16, %s286_s16 }
  0x57   : > { %p9014_p8 = scmp.ne.s32.totalorder %s286_s16, %s9013_s18  ;;  %p9022_p12 = scmp.lt.s32.totalorder %s9013_s18, %s9013_s18 }
  0x59   : > { %p9016_p9 = pnand %p9014_p8, %p9149_p7  ;;  %p9023_p2 = por %p9022_p12, %p9021_p11 }
  0x5b   : > { %p9017_p10 = pneg %p9016_p9 }
  0x5d   : > { %p9024_p3 = pnand %p9023_p2, %p9017_p10 }
  0x5f   : > { %9027 = shalt.err (!%p9024_p3)
}
  0x60   : > { %8079 = dma.hbm_to_vmem [thread:$0]  (!%p9133_p5), %s10589_s7, 1024, %s286_s16, [#allocation10], %s9052_s26, %s9052_s26, %s9053_s30  }
  0x61   : > { %p10596_p13 = scmp.ne.s32.totalorder %s10593_s29, 0 }
  0x62   : > { %p10597_p7 = scmp.eq.s32.totalorder (!%p10596_p13), %s9116_s28, 0 }
  0x63   : > { %309 = sbr.rel (%p10596_p13) target bundleno = 1974 (0x7b6), region = 52 }
  0x6a   : > { %9033 = dma.done.wait (%p10597_p7), [#allocation5], 4608   ;;  %p10598_p0 = pmov %p10597_p7 }
  0x6c   : > { %9035 = vsyncadd (%p10598_p0), [#allocation5], 4294962688  ;;  %p10599_p2 = pmov %p10598_p0 }
  0x6d   : > { %p10600_p3 = pmov %p10598_p0 }
  0x6e   : > { %9037 = dma.done.wait (%p10599_p2), [#allocation7], 20480  }
  0x6f   : > { %9039 = vsyncadd (%p10600_p3), [#allocation7], 4294946816  ;;  %p10601_p1 = pmov %p10598_p0 }
  0x70   : > { %p10602_p5 = pmov %p10598_p0 }
  0x71   : > { %9041 = dma.done.wait (%p10601_p1), [#allocation10], 1024  }
  0x72   : > { %9043 = vsyncadd (%p10602_p5), [#allocation10], 4294966272  ;;  %p355_p4 = scmp.lt.s32.totalorder %s9116_s28, 1  ;;  %vm386_vm0 = vcmask 64512   ;;  %v582_v1 = vld [vmem:[#allocation4 + $0x40] sm:$0xff]  ;;  %s9054_s26 = smov 112  }
  0x73   : > { %s9055_s30 = smov 126   ;;  %6729 = vmatprep.mubr.msk.f32.mxu0 %vm386_vm0, %v582_v1  ;;  %s9056_s20 = smov 111   ;;  %v372_v3 = vld [vmem:[#allocation4 + $0x20] sm:$0xff]  ;;  %v1373_v4 = vld [vmem:[%s10585_s3 + $0x8] sm:$0xff]  ;;  %v9062_v6 = vmov 0   ;;  %v1374_v7 = vld [vmem:[%s10585_s3 + $0x10] sm:$0xff] }
  0x74   : > { %s10604_s28 = smov (!%p355_p4, %s9116_s28), 1  ;;  %s9057_s11 = smov 110   ;;  %6713 = vmatprep.mubr.msk.f32.mxu1 %vm386_vm0, %v372_v3  ;;  %v1372_v5 = vld [vmem:[%s10585_s3] sm:$0xff]  ;;  %8114 = vset.pattern.permute.xlu1 %v9062_v6  ;;  %v1375_v8 = vld [vmem:[%s10585_s3 + $0x18] sm:$0xff]  ;;  %vm590_vm1 = vcmask 1031168   ;;  %vm703_vm2 = vcmask 916480  }
  0x75   : > { %s6268_s29 = sshll.u32 %s10604_s28, 4  ;;  %s9058_s21 = smov 96   ;;  %8113 = vset.pattern.permute.xlu0 %v9062_v6  ;;  %v583_v14 = vld [vmem:[#allocation4 + $0x48] sm:$0xff]  ;;  %v584_v16 = vld [vmem:[#allocation4 + $0x50] sm:$0xff]  ;;  %vm816_vm3 = vcmask 908288   ;;  %v585_v19 = vld [vmem:[#allocation4 + $0x58] sm:$0xff] }
  0x76   : > { %s359_s22 = scalar_lea.vmem %s10583_s1, %s6268_s29  ;;  %s9059_s23 = smov 127   ;;  %v695_v21 = vld [vmem:[#allocation4 + $0x60] sm:$0xff]  ;;  %vm929_vm4 = vcmask 900096   ;;  %v696_v24 = vld [vmem:[#allocation4 + $0x68] sm:$0xff]  ;;  %v697_v25 = vld [vmem:[#allocation4 + $0x70] sm:$0xff]  ;;  %vm383_vm5 = vcmask 1039360  }
  0x77   : > { %v9269_v0 = vld [vmem:[%s359_s22] sm:$0xff]  ;;  %v376_v2 = vld [vmem:[%s359_s22 + $0x8] sm:$0xff]  ;;  %s9060_s9 = smov 95   ;;  %s9061_s24 = smov 94   ;;  %v698_v29 = vld [vmem:[#allocation4 + $0x78] sm:$0xff]  ;;  %vm1042_vm6 = vcmask 785408  }
  0x78   : > { %699 = vrot.lane.b32.xlu1 %v9269_v0, %s9054_s26  ;;  %586 = vrot.lane.b32.xlu0 %v9269_v0, %s9055_s30  ;;  %v808_v30 = vld [vmem:[#allocation4 + $0x80] sm:$0xff]  ;;  %v809_v33 = vld [vmem:[#allocation4 + $0x88] sm:$0xff]  ;;  %v810_v36 = vld [vmem:[#allocation4 + $0x90] sm:$0xff]  ;;  %vm1155_vm7 = vcmask 777216   ;;  %vm1268_vm8 = vcmask 769024   ;;  %vm1404_vm9 = vcmask 138240  }
  0x79   : > { %v373_v35 = vld [vmem:[#allocation4 + $0x28] sm:$0xff]  ;;  %v374_v38 = vld [vmem:[#allocation4 + $0x30] sm:$0xff]  ;;  %v811_v39 = vld [vmem:[#allocation4 + $0x98] sm:$0xff]  ;;  %v9063_v3 = vmov 0.0   ;;  %s9064_s16 = smov 17   ;;  %vm1435_vm10 = vcmask 1047688  }
  0x7a   : > { %v375_v40 = vld [vmem:[#allocation4 + $0x38] sm:$0xff]  ;;  %v921_v41 = vld [vmem:[#allocation4 + $0xa0] sm:$0xff]  ;;  %v922_v45 = vld [vmem:[#allocation4 + $0xa8] sm:$0xff]  ;;  %1406 = vst.msk [vmem:[#allocation2 + $0x10] sm:$0xff] %vm1404_vm9, %v9063_v3  ;;  %vm1444_vm11 = vcmask 392328   ;;  %vm1522_vm12 = vcmask 261120  }
  0x7b   : > { %v366_v42 = vld [vmem:[#allocation4] sm:$0xff]  ;;  %v367_v46 = vld [vmem:[#allocation4 + $0x8] sm:$0xff]  ;;  %v923_v47 = vld [vmem:[#allocation4 + $0xb0] sm:$0xff]  ;;  %1405 = vst.msk [vmem:[#allocation2] sm:$0xff] %vm1404_vm9, %v9063_v3 }
  0x7c   : > { %701 = vrot.lane.b32.xlu1 %v376_v2, %s9054_s26  ;;  %588 = vrot.lane.b32.xlu0 %v376_v2, %s9055_s30  ;;  %v368_v49 = vld [vmem:[#allocation4 + $0x10] sm:$0xff]  ;;  %v924_v50 = vld [vmem:[#allocation4 + $0xb8] sm:$0xff]  ;;  %v1034_v52 = vld [vmem:[#allocation4 + $0xc0] sm:$0xff]  ;;  %1407 = vst.msk [vmem:[#allocation2 + $0x20] sm:$0xff] %vm1404_vm9, %v9063_v3 }
  0x7d   : > { %v369_v51 = vld [vmem:[#allocation4 + $0x18] sm:$0xff]  ;;  %v1035_v55 = vld [vmem:[#allocation4 + $0xc8] sm:$0xff]  ;;  %v1036_v56 = vld [vmem:[#allocation4 + $0xd0] sm:$0xff]  ;;  %1408 = vst.msk [vmem:[#allocation2 + $0x30] sm:$0xff] %vm1404_vm9, %v9063_v3 }
  0x7e   : > { %v1037_v58 = vld [vmem:[#allocation4 + $0xd8] sm:$0xff]  ;;  %v1147_v59 = vld [vmem:[#allocation4 + $0xe0] sm:$0xff]  ;;  %v1148_v60 = vld [vmem:[#allocation4 + $0xe8] sm:$0xff]  ;;  %3787 = vst.msk [vmem:[#allocation3] sm:$0xff] %vm1404_vm9, %v9063_v3 }
  0x7f   : > { %v1149_v61 = vld [vmem:[#allocation4 + $0xf0] sm:$0xff]  ;;  %v1150_v62 = vld [vmem:[#allocation4 + $0xf8] sm:$0xff]  ;;  %v1260_v63 = vld [vmem:[#allocation4 + $0x100] sm:$0xff]  ;;  %3788 = vst.msk [vmem:[#allocation3 + $0x10] sm:$0xff] %vm1404_vm9, %v9063_v3 }
  0x80   : > { %814 = vrot.lane.b32.xlu1 %v376_v2, %s9056_s20  ;;  %812 = vrot.lane.b32.xlu0 %v9269_v0, %s9056_s20  ;;  %v1262_v1 = vld [vmem:[#allocation4 + $0x110] sm:$0xff]  ;;  %3789 = vst.msk [vmem:[#allocation3 + $0x20] sm:$0xff] %vm1404_vm9, %v9063_v3  ;;  %3790 = vst.msk [vmem:[#allocation3 + $0x30] sm:$0xff] %vm1404_vm9, %v9063_v3 }
  0x81   : > { %3791 = vst.msk [vmem:[#allocation3 + $0x40] sm:$0xff] %vm1404_vm9, %v9063_v3  ;;  %3792 = vst.msk [vmem:[#allocation3 + $0x50] sm:$0xff] %vm1404_vm9, %v9063_v3 }
  0x82   : > { %3793 = vst.msk [vmem:[#allocation3 + $0x60] sm:$0xff] %vm1404_vm9, %v9063_v3  ;;  %3794 = vst.msk [vmem:[#allocation3 + $0x70] sm:$0xff] %vm1404_vm9, %v9063_v3 }
  0x83   : > { %3795 = vst.msk [vmem:[#allocation3 + $0x80] sm:$0xff] %vm1404_vm9, %v9063_v3  ;;  %3796 = vst.msk [vmem:[#allocation3 + $0x90] sm:$0xff] %vm1404_vm9, %v9063_v3 }
  0x84   : > { %927 = vrot.lane.b32.xlu1 %v376_v2, %s9057_s11  ;;  %925 = vrot.lane.b32.xlu0 %v9269_v0, %s9057_s11  ;;  %3797 = vst.msk [vmem:[#allocation3 + $0xa0] sm:$0xff] %vm1404_vm9, %v9063_v3  ;;  %3798 = vst.msk [vmem:[#allocation3 + $0xb0] sm:$0xff] %vm1404_vm9, %v9063_v3 }
  0x85   : > { %3799 = vst.msk [vmem:[#allocation3 + $0xc0] sm:$0xff] %vm1404_vm9, %v9063_v3  ;;  %3800 = vst.msk [vmem:[#allocation3 + $0xd0] sm:$0xff] %vm1404_vm9, %v9063_v3 }
  0x86   : > { %3801 = vst.msk [vmem:[#allocation3 + $0xe0] sm:$0xff] %vm1404_vm9, %v9063_v3  ;;  %3802 = vst.msk [vmem:[#allocation3 + $0xf0] sm:$0xff] %vm1404_vm9, %v9063_v3 }
  0x88   : > { %1040 = vrot.lane.b32.xlu1 %v376_v2, %s9058_s21  ;;  %1038 = vrot.lane.b32.xlu0 %v9269_v0, %s9058_s21 }
  0x8c   : > { %381 = vrot.lane.b32.xlu1 %v376_v2, %s9059_s23  ;;  %379 = vrot.lane.b32.xlu0 %v9269_v0, %s9059_s23 }
  0x90   : > { %1153 = vrot.lane.b32.xlu1 %v376_v2, %s9060_s9  ;;  %1151 = vrot.lane.b32.xlu0 %v9269_v0, %s9060_s9 }
  0x94   : > { %1266 = vrot.lane.b32.xlu1 %v376_v2, %s9061_s24  ;;  %1264 = vrot.lane.b32.xlu0 %v9269_v0, %s9061_s24  ;;  %v1263_v2 = vld [vmem:[#allocation4 + $0x118] sm:$0xff] }
  0x98   : > { %1383 = vperm.xlu1 %8114, %v1373_v4   ;;  %1378 = vperm.xlu0 %8113, %v1372_v5  }
  0x9c   : > { %1388 = vperm.xlu1 %8114, %v1374_v7   ;;  %1393 = vperm.xlu0 %8113, %v1375_v8  }
  0xea   : > { %v700_v9 = vpop.permute.xlu1 %699  ;;  %v587_v10 = vpop.permute.xlu0 %586 }
  0xee   : > { %v702_v11 = vpop.permute.xlu1 %701  ;;  %v589_v12 = vpop.permute.xlu0 %588 }
  0xef   : > { %v591_v13 = vsel %vm590_vm1, %v587_v10, %v589_v12  ;;  %v704_v15 = vsel %vm703_vm2, %v700_v9, %v702_v11 }
  0xf0   : > { %6727 = vmatprep.subr.mxu0 %v591_v13 }
  0xf1   : > { %6728 = vmatpush3.msra.mxu0 %v591_v13 }
  0xf2   : > { %6730 = vmatmul.mubr.msk.f32.vlgmr.msra.gmra.mrb[0].mxu0 %vm386_vm0, %v583_v14  ;;  %6735 = vmatprep.subr.mxu0 %v704_v15  ;;  %v815_v17 = vpop.permute.xlu1 %814  ;;  %v813_v18 = vpop.permute.xlu0 %812 }
  0xf3   : > { %6736 = vmatpush3.msra.mxu0 %v704_v15  ;;  %6732 = vmatprep.mubr.msk.f32.mxu0 %vm386_vm0, %v584_v16  ;;  %v817_v20 = vsel %vm816_vm3, %v813_v18, %v815_v17  ;;  %v6057_v17 = vld [vmem:[%s10582_s0] ss:$0 sm:$0xff] }
  0xf4   : > { %6743 = vmatprep.subr.mxu0 %v817_v20 }
  0xf6   : > { %6733 = vmatmul.mubr.msk.f32.gmra.mrb[2].mxu0 %vm386_vm0, %v585_v19  ;;  %v928_v22 = vpop.permute.xlu1 %927  ;;  %v926_v23 = vpop.permute.xlu0 %925 }
  0xf7   : > { %6737 = vmatprep.mubr.msk.f32.mxu0 %vm386_vm0, %v695_v21  ;;  %v930_v26 = vsel %vm929_vm4, %v926_v23, %v928_v22 }
  0xfa   : > { %6738 = vmatmul.mubr.msk.f32.vlgmr.msra.gmra.mrb[0].mxu0 %vm386_vm0, %v696_v24  ;;  %v1041_v27 = vpop.permute.xlu1 %1040  ;;  %v1039_v28 = vpop.permute.xlu0 %1038 }
  0xfb   : > { %6744 = vmatpush3.msra.mxu0 %v817_v20  ;;  %6740 = vmatprep.mubr.msk.f32.mxu0 %vm386_vm0, %v697_v25  ;;  %v1043_v37 = vsel %vm1042_vm6, %v1039_v28, %v1041_v27 }
  0xfc   : > { %6751 = vmatprep.subr.mxu0 %v930_v26 }
  0xfe   : > { %6741 = vmatmul.mubr.msk.f32.gmra.mrb[2].mxu0 %vm386_vm0, %v698_v29  ;;  %v382_v31 = vpop.permute.xlu1 %381  ;;  %v380_v32 = vpop.permute.xlu0 %379 }
  0xff   : > { %6745 = vmatprep.mubr.msk.f32.mxu0 %vm386_vm0, %v808_v30  ;;  %v384_v34 = vsel %vm383_vm5, %v380_v32, %v382_v31 }
 0x100   : > { %6711 = vmatprep.subr.mxu1 %v384_v34 }
 0x101   : > { %6712 = vmatpush3.msra.mxu1 %v384_v34 }
 0x102   : > { %6746 = vmatmul.mubr.msk.f32.vlgmr.msra.gmra.mrb[0].mxu0 %vm386_vm0, %v809_v33  ;;  %6714 = vmatmul.mubr.msk.f32.vlgmr.msra.gmra.mrb[0].mxu1 %vm386_vm0, %v373_v35  ;;  %v1154_v43 = vpop.permute.xlu1 %1153  ;;  %v1152_v44 = vpop.permute.xlu0 %1151 }
 0x103   : > { %6752 = vmatpush3.msra.mxu0 %v930_v26  ;;  %6748 = vmatprep.mubr.msk.f32.mxu0 %vm386_vm0, %v810_v36  ;;  %v1156_v48 = vsel %vm1155_vm7, %v1152_v44, %v1154_v43 }
 0x104   : > { %6759 = vmatprep.subr.mxu0 %v1043_v37  ;;  %6716 = vmatprep.mubr.msk.f32.mxu1 %vm386_vm0, %v374_v38 }
 0x105   : > { %6719 = vmatprep.subr.mxu1 %v9269_v0 }
 0x106   : > { %6749 = vmatmul.mubr.msk.f32.gmra.mrb[2].mxu0 %vm386_vm0, %v811_v39  ;;  %6717 = vmatmul.mubr.msk.f32.gmra.mrb[2].mxu1 %vm386_vm0, %v375_v40  ;;  %v1267_v53 = vpop.permute.xlu1 %1266  ;;  %v1265_v54 = vpop.permute.xlu0 %1264 }
 0x107   : > { %6753 = vmatprep.mubr.msk.f32.mxu0 %vm386_vm0, %v921_v41  ;;  %6720 = vmatpush3.msra.mxu1 %v9269_v0  ;;  %v1269_v57 = vsel %vm1268_vm8, %v1265_v54, %v1267_v53  ;;  %v1261_v0 = vld [vmem:[#allocation4 + $0x108] sm:$0xff]  ;;  %v3659_v53 = vld [vmem:[#allocation8] sm:$0xff]  ;;  %v3662_v54 = vld [vmem:[#allocation8 + $0x18] sm:$0xff] }
 0x108   : > { %6721 = vmatprep.mubr.msk.f32.mxu1 %vm386_vm0, %v366_v42 }
 0x10a   : > { %6754 = vmatmul.mubr.msk.f32.vlgmr.msra.gmra.mrb[0].mxu0 %vm386_vm0, %v922_v45  ;;  %6722 = vmatmul.mubr.msk.f32.vlgmr.msra.gmra.mrb[0].mxu1 %vm386_vm0, %v367_v46 }
 0x10b   : > { %6760 = vmatpush3.msra.mxu0 %v1043_v37  ;;  %6756 = vmatprep.mubr.msk.f32.mxu0 %vm386_vm0, %v923_v47 }
 0x10c   : > { %6767 = vmatprep.subr.mxu0 %v1156_v48  ;;  %6724 = vmatprep.mubr.msk.f32.mxu1 %vm386_vm0, %v368_v49  ;;  %v1470_v49 = vld [vmem:[#allocation6 + $0x80] sm:$0xff] }
 0x10e   : > { %6757 = vmatmul.mubr.msk.f32.gmra.mrb[2].mxu0 %vm386_vm0, %v924_v50  ;;  %6725 = vmatmul.mubr.msk.f32.gmra.mrb[2].mxu1 %vm386_vm0, %v369_v51 }
 0x10f   : > { %6761 = vmatprep.mubr.msk.f32.mxu0 %vm386_vm0, %v1034_v52  ;;  %6791 = vmatprep.mubr.msk.f32.mxu1 %vm1522_vm12, %v1470_v49  ;;  %v3660_v52 = vld [vmem:[#allocation8 + $0x8] sm:$0xff] }
 0x112   : > { %6762 = vmatmul.mubr.msk.f32.vlgmr.msra.gmra.mrb[0].mxu0 %vm386_vm0, %v1035_v55  ;;  %v3661_v55 = vld [vmem:[#allocation8 + $0x10] sm:$0xff] }
 0x113   : > { %6768 = vmatpush3.msra.mxu0 %v1156_v48  ;;  %6764 = vmatprep.mubr.msk.f32.mxu0 %vm386_vm0, %v1036_v56  ;;  %v3664_v56 = vld [vmem:[#allocation8 + $0x28] sm:$0xff] }
 0x114   : > { %6775 = vmatprep.subr.mxu0 %v1269_v57 }
 0x116   : > { %6765 = vmatmul.mubr.msk.f32.gmra.mrb[2].mxu0 %vm386_vm0, %v1037_v58  ;;  %v3666_v58 = vld [vmem:[#allocation8 + $0x38] sm:$0xff] }
 0x117   : > { %6769 = vmatprep.mubr.msk.f32.mxu0 %vm386_vm0, %v1147_v59  ;;  %v1379_v8 = vpop.permute.xlu0 %1378  ;;  %v1384_v10 = vpop.permute.xlu1 %1383  ;;  %v3665_v59 = vld [vmem:[#allocation8 + $0x30] sm:$0xff] }
 0x11a   : > { %6770 = vmatmul.mubr.msk.f32.vlgmr.msra.gmra.mrb[0].mxu0 %vm386_vm0, %v1148_v60  ;;  %v3668_v60 = vld [vmem:[#allocation8 + $0x48] sm:$0xff] }
 0x11b   : > { %6776 = vmatpush3.msra.mxu0 %v1269_v57  ;;  %6772 = vmatprep.mubr.msk.f32.mxu0 %vm386_vm0, %v1149_v61  ;;  %v1394_v22 = vpop.permute.xlu0 %1393  ;;  %v1389_v24 = vpop.permute.xlu1 %1388  ;;  %v3663_v57 = vld [vmem:[#allocation8 + $0x20] sm:$0xff] }
 0x11c   : > { %v3667_v61 = vld [vmem:[#allocation8 + $0x40] sm:$0xff] }
 0x11e   : > { %6773 = vmatmul.mubr.msk.f32.gmra.mrb[2].mxu0 %vm386_vm0, %v1150_v62  ;;  %v3670_v62 = vld [vmem:[#allocation8 + $0x58] sm:$0xff] }
 0x11f   : > { %6777 = vmatprep.mubr.msk.f32.mxu0 %vm386_vm0, %v1260_v63  ;;  %v3669_v63 = vld [vmem:[#allocation8 + $0x50] sm:$0xff] }
 0x122   : > { %6778 = vmatmul.mubr.msk.f32.vlgmr.msra.gmra.mrb[0].mxu0 %vm386_vm0, %v1261_v0  ;;  %v3672_v0 = vld [vmem:[#allocation8 + $0x68] sm:$0xff] }
 0x123   : > { %6780 = vmatprep.mubr.msk.f32.mxu0 %vm386_vm0, %v1262_v1  ;;  %v3671_v1 = vld [vmem:[#allocation8 + $0x60] sm:$0xff] }
 0x126   : > { %6781 = vmatmul.mubr.msk.f32.gmra.mrb[2].mxu0 %vm386_vm0, %v1263_v2  ;;  %v3674_v2 = vld [vmem:[#allocation8 + $0x78] sm:$0xff] }
 0x1dd   : > { %v6723_v4 = vpop.f32.mrb[0].mxu1 }
 0x1de   : > { %v562_v5 = vpop.f32.mrb[1].mxu1 }
 0x1e1   : > { %v6726_v6 = vpop.f32.mrb[2].mxu1 }
 0x1e2   : > { %v572_v7 = vpop.f32.mrb[3].mxu1 }
 0x1f5   : > { %v6779_v9 = vpop.f32.mrb[0].mxu0 }
 0x1f6   : > { %v7827_v11 = vadd.f32 %v6779_v9, %v6723_v4  ;;  %v1349_v12 = vpop.f32.mrb[1].mxu0  ;;  %v3673_v4 = vld [vmem:[#allocation8 + $0x70] sm:$0xff] }
 0x1f7   : > { %v7828_v13 = vadd.f32 %v1349_v12, %v562_v5 }
 0x1f8   : > { %v1397_v14 = vadd.f32 %v7827_v11, %v1384_v10 }
 0x1f9   : > { %v1396_v15 = vadd.f32 %v7828_v13, %v1379_v8  ;;  %v6782_v16 = vpop.f32.mrb[2].mxu0 }
 0x1fa   : > { %v1401_v18 = vmax.f32 %v1397_v14, 0.0  ;;  %v7829_v19 = vadd.f32 %v6782_v16, %v6726_v6  ;;  %v1359_v20 = vpop.f32.mrb[3].mxu0 }
 0x1fb   : > { %v1400_v21 = vmax.f32 %v1396_v15, 0.0  ;;  %v7830_v23 = vadd.f32 %v1359_v20, %v572_v7 }
 0x1fc   : > { %v1399_v25 = vadd.f32 %v7829_v19, %v1394_v22  ;;  %v1416_v26 = vmul.f32 %v6057_v17, %v1401_v18 }
 0x1fd   : > { %v1398_v27 = vadd.f32 %v7830_v23, %v1389_v24  ;;  %v1415_v28 = vmul.f32 %v6057_v17, %v1400_v21 }
 0x1fe   : > { %v1403_v29 = vmax.f32 %v1399_v25, 0.0  ;;  %1425 = vrot.lane.b32.xlu0 %v1416_v26, %s9064_s16 }
 0x1ff   : > { %v1402_v30 = vmax.f32 %v1398_v27, 0.0  ;;  %1423 = vrot.lane.b32.xlu1 %v1415_v28, %s9064_s16 }
 0x200   : > { %v1418_v31 = vmul.f32 %v6057_v17, %v1403_v29  ;;  %v1471_v29 = vld [vmem:[#allocation6 + $0x88] sm:$0xff] }
 0x201   : > { %v1417_v32 = vmul.f32 %v6057_v17, %v1402_v30  ;;  %v1472_v30 = vld [vmem:[#allocation6 + $0x90] sm:$0xff] }
 0x202   : > { %1429 = vrot.lane.b32.xlu0 %v1418_v31, %s9064_s16  ;;  %v1473_v31 = vld [vmem:[#allocation6 + $0x98] sm:$0xff] }
 0x203   : > { %1427 = vrot.lane.b32.xlu1 %v1417_v32, %s9064_s16 }
 0x270   : > { %v1426_v33 = vpop.permute.xlu0 %1425 }
 0x271   : > { %1438 = vst.msk [vmem:[#allocation2 + $0x10] sm:$0xff] %vm1435_vm10, %v1426_v33  ;;  %v1424_v34 = vpop.permute.xlu1 %1423 }
 0x272   : > { %1439 = vst.msk [vmem:[#allocation2 + $0x18] sm:$0xff] %vm1404_vm9, %v1426_v33  ;;  %1437 = vst.msk [vmem:[#allocation2 + $0x8] sm:$0xff] %vm1404_vm9, %v1424_v34 }
 0x273   : > { %1446 = vst.msk [vmem:[#allocation2 + $0x18] sm:$0xff] %vm1444_vm11, %v9063_v3  ;;  %1445 = vst.msk [vmem:[#allocation2 + $0x8] sm:$0xff] %vm1444_vm11, %v9063_v3 }
 0x274   : > { %1436 = vst.msk [vmem:[#allocation2] sm:$0xff] %vm1435_vm10, %v1424_v34  ;;  %v1430_v35 = vpop.permute.xlu0 %1429  ;;  %v1474_v34 = vld [vmem:[#allocation6 + $0xa0] sm:$0xff] }
 0x275   : > { %1442 = vst.msk [vmem:[#allocation2 + $0x30] sm:$0xff] %vm1435_vm10, %v1430_v35  ;;  %v1428_v36 = vpop.permute.xlu1 %1427 }
 0x276   : > { %1443 = vst.msk [vmem:[#allocation2 + $0x38] sm:$0xff] %vm1404_vm9, %v1430_v35  ;;  %1441 = vst.msk [vmem:[#allocation2 + $0x28] sm:$0xff] %vm1404_vm9, %v1428_v36 }
 0x277   : > { %1448 = vst.msk [vmem:[#allocation2 + $0x38] sm:$0xff] %vm1444_vm11, %v9063_v3  ;;  %1447 = vst.msk [vmem:[#allocation2 + $0x28] sm:$0xff] %vm1444_vm11, %v9063_v3 }
 0x278   : > { %1440 = vst.msk [vmem:[#allocation2 + $0x20] sm:$0xff] %vm1435_vm10, %v1428_v36  ;;  %v1466_v37 = vld [vmem:[#allocation2 + $0x10] sm:$0xff]  ;;  %v1475_v36 = vld [vmem:[#allocation6 + $0xa8] sm:$0xff] }
 0x27a   : > { %v1487_v38 = vld [vmem:[#allocation2 + $0x18] sm:$0xff]  ;;  %v1486_v41 = vld [vmem:[#allocation2 + $0x8] sm:$0xff] }
 0x27b   : > { %v1465_v39 = vld [vmem:[#allocation2] sm:$0xff]  ;;  %v8115_v40 = vpack.i.bf16 %v1487_v38, %v1466_v37  ;;  %v1477_v38 = vld [vmem:[#allocation6 + $0xb8] sm:$0xff] }
 0x27c   : > { %v8120_v42 = vpack.i.bf16 %v1486_v41, %v1465_v39  ;;  %v1468_v43 = vld [vmem:[#allocation2 + $0x30] sm:$0xff]  ;;  %v9420_v50 = vpack.c.bf16 %v1466_v37, %v1465_v39  ;;  %v1478_v39 = vld [vmem:[#allocation6 + $0xc0] sm:$0xff] }
 0x27d   : > { %8116 = vrot.lane.b32.xlu0 %v8115_v40, %s9059_s23  ;;  %v1476_v37 = vld [vmem:[#allocation6 + $0xb0] sm:$0xff] }
 0x27e   : > { %8121 = vrot.lane.b32.xlu1 %v8120_v42, %s9059_s23  ;;  %v1489_v44 = vld [vmem:[#allocation2 + $0x38] sm:$0xff]  ;;  %v1488_v47 = vld [vmem:[#allocation2 + $0x28] sm:$0xff]  ;;  %v1480_v41 = vld [vmem:[#allocation6 + $0xd0] sm:$0xff] }
 0x27f   : > { %v1467_v45 = vld [vmem:[#allocation2 + $0x20] sm:$0xff]  ;;  %v8130_v46 = vpack.i.bf16 %v1489_v44, %v1468_v43 }
 0x280   : > { %v8125_v48 = vpack.i.bf16 %v1488_v47, %v1467_v45  ;;  %v9422_v51 = vpack.c.bf16 %v1468_v43, %v1467_v45  ;;  %v1482_v43 = vld [vmem:[#allocation6 + $0xe0] sm:$0xff]  ;;  %v1484_v47 = vld [vmem:[#allocation6 + $0xf0] sm:$0xff] }
 0x281   : > { %8131 = vrot.lane.b32.xlu0 %v8130_v46, %s9059_s23 }
 0x282   : > { %8126 = vrot.lane.b32.xlu1 %v8125_v48, %s9059_s23 }
 0x285   : > { %8141 = vrot.lane.b32.xlu0 %v8115_v40, %s9055_s30 }
 0x286   : > { %8136 = vrot.lane.b32.xlu1 %v8120_v42, %s9055_s30 }
 0x289   : > { %8151 = vrot.lane.b32.xlu0 %v8130_v46, %s9055_s30 }
 0x28a   : > { %8146 = vrot.lane.b32.xlu1 %v8125_v48, %s9055_s30 }
 0x28d   : > { %8161 = vrot.lane.b32.xlu0 %v8115_v40, %s9054_s26 }
 0x28e   : > { %8156 = vrot.lane.b32.xlu1 %v8120_v42, %s9054_s26 }
 0x291   : > { %8171 = vrot.lane.b32.xlu0 %v8130_v46, %s9054_s26 }
 0x292   : > { %8166 = vrot.lane.b32.xlu1 %v8125_v48, %s9054_s26 }
 0x295   : > { %8181 = vrot.lane.b32.xlu0 %v8115_v40, %s9056_s20 }
 0x296   : > { %8176 = vrot.lane.b32.xlu1 %v8120_v42, %s9056_s20 }
 0x299   : > { %8191 = vrot.lane.b32.xlu0 %v8130_v46, %s9056_s20 }
 0x29a   : > { %8186 = vrot.lane.b32.xlu1 %v8125_v48, %s9056_s20 }
 0x29d   : > { %8201 = vrot.lane.b32.xlu0 %v8115_v40, %s9057_s11 }
 0x29e   : > { %8196 = vrot.lane.b32.xlu1 %v8120_v42, %s9057_s11 }
 0x2a1   : > { %8211 = vrot.lane.b32.xlu0 %v8130_v46, %s9057_s11 }
 0x2a2   : > { %8206 = vrot.lane.b32.xlu1 %v8125_v48, %s9057_s11 }
 0x2a5   : > { %8221 = vrot.lane.b32.xlu0 %v8115_v40, %s9058_s21 }
 0x2a6   : > { %8216 = vrot.lane.b32.xlu1 %v8120_v42, %s9058_s21 }
 0x2a9   : > { %8231 = vrot.lane.b32.xlu0 %v8130_v46, %s9058_s21 }
 0x2aa   : > { %8226 = vrot.lane.b32.xlu1 %v8125_v48, %s9058_s21 }
 0x2ad   : > { %8241 = vrot.lane.b32.xlu0 %v8115_v40, %s9060_s9 }
 0x2ae   : > { %8236 = vrot.lane.b32.xlu1 %v8120_v42, %s9060_s9 }
 0x2b1   : > { %8251 = vrot.lane.b32.xlu0 %v8130_v46, %s9060_s9 }
 0x2b2   : > { %8246 = vrot.lane.b32.xlu1 %v8125_v48, %s9060_s9 }
 0x2b5   : > { %8261 = vrot.lane.b32.xlu0 %v8115_v40, %s9061_s24  ;;  %v1479_v40 = vld [vmem:[#allocation6 + $0xc8] sm:$0xff] }
 0x2b6   : > { %8256 = vrot.lane.b32.xlu1 %v8120_v42, %s9061_s24  ;;  %v1481_v42 = vld [vmem:[#allocation6 + $0xd8] sm:$0xff] }
 0x2b9   : > { %8271 = vrot.lane.b32.xlu0 %v8130_v46, %s9061_s24  ;;  %v1483_v46 = vld [vmem:[#allocation6 + $0xe8] sm:$0xff] }
 0x2ba   : > { %8266 = vrot.lane.b32.xlu1 %v8125_v48, %s9061_s24 }
 0x2bd   : > { %3682 = vperm.xlu0 %8113, %v3660_v52   ;;  %v1485_v52 = vld [vmem:[#allocation6 + $0xf8] sm:$0xff] }
 0x2be   : > { %3677 = vperm.xlu1 %8114, %v3659_v53  }
 0x2c1   : > { %3692 = vperm.xlu0 %8113, %v3662_v54  }
 0x2c2   : > { %3687 = vperm.xlu1 %8114, %v3661_v55   ;;  %v1449_v55 = vld [vmem:[#allocation6] sm:$0xff] }
 0x2c5   : > { %3702 = vperm.xlu0 %8113, %v3664_v56  }
 0x2c6   : > { %3697 = vperm.xlu1 %8114, %v3663_v57  }
 0x2c9   : > { %3712 = vperm.xlu0 %8113, %v3666_v58  }
 0x2ca   : > { %3707 = vperm.xlu1 %8114, %v3665_v59  }
 0x2cd   : > { %3722 = vperm.xlu0 %8113, %v3668_v60  }
 0x2ce   : > { %3717 = vperm.xlu1 %8114, %v3667_v61  }
 0x2d1   : > { %3732 = vperm.xlu0 %8113, %v3670_v62   ;;  %v1450_v62 = vld [vmem:[#allocation6 + $0x8] sm:$0xff] }
 0x2d2   : > { %3727 = vperm.xlu1 %8114, %v3669_v63   ;;  %v1451_v63 = vld [vmem:[#allocation6 + $0x10] sm:$0xff] }
 0x2d5   : > { %3742 = vperm.xlu0 %8113, %v3672_v0  }
 0x2d6   : > { %3737 = vperm.xlu1 %8114, %v3671_v1   ;;  %v1452_v1 = vld [vmem:[#allocation6 + $0x18] sm:$0xff] }
 0x2d9   : > { %3752 = vperm.xlu0 %8113, %v3674_v2  }
 0x2da   : > { %3747 = vperm.xlu1 %8114, %v3673_v4  }
 0x2ef   : > { %v8117_v5 = vpop.permute.xlu0 %8116 }
 0x2f0   : > { %v8119_v6 = vunpack.i.h.bf16 %v8117_v5  ;;  %v8118_v7 = vunpack.i.l.bf16 %v8117_v5  ;;  %v8122_v8 = vpop.permute.xlu1 %8121  ;;  %v1453_v5 = vld [vmem:[#allocation6 + $0x20] sm:$0xff] }
 0x2f1   : > { %v8124_v9 = vunpack.i.h.bf16 %v8122_v8  ;;  %v8123_v10 = vunpack.i.l.bf16 %v8122_v8  ;;  %v1455_v8 = vld [vmem:[#allocation6 + $0x30] sm:$0xff] }
 0x2f2   : > { %v1515_v11 = vsel %vm383_vm5, %v8118_v7, %v8119_v6  ;;  %v1454_v7 = vld [vmem:[#allocation6 + $0x28] sm:$0xff] }
 0x2f3   : > { %v8132_v12 = vpop.permute.xlu0 %8131  ;;  %v1514_v13 = vsel %vm383_vm5, %v8123_v10, %v8124_v9  ;;  %v1456_v9 = vld [vmem:[#allocation6 + $0x38] sm:$0xff]  ;;  %v1457_v10 = vld [vmem:[#allocation6 + $0x40] sm:$0xff] }
 0x2f4   : > { %v8134_v14 = vunpack.i.h.bf16 %v8132_v12  ;;  %v8133_v15 = vunpack.i.l.bf16 %v8132_v12  ;;  %v8127_v16 = vpop.permute.xlu1 %8126  ;;  %v7467_v17 = vpack.c.bf16 %v1515_v11, %v1514_v13  ;;  %v1458_v11 = vld [vmem:[#allocation6 + $0x48] sm:$0xff]  ;;  %v1459_v12 = vld [vmem:[#allocation6 + $0x50] sm:$0xff]  ;;  %v1460_v13 = vld [vmem:[#allocation6 + $0x58] sm:$0xff] }
 0x2f5   : > { %v8129_v18 = vunpack.i.h.bf16 %v8127_v16  ;;  %v8128_v19 = vunpack.i.l.bf16 %v8127_v16 }
 0x2f6   : > { %7468 = vmatprep.subr.bf16.mxu1 %v7467_v17  ;;  %v1517_v20 = vsel %vm383_vm5, %v8133_v15, %v8134_v14  ;;  %v1461_v14 = vld [vmem:[#allocation6 + $0x60] sm:$0xff] }
 0x2f7   : > { %7470 = vmatpush3.bf16.msra.mxu1 %v7467_v17  ;;  %v1516_v21 = vsel %vm383_vm5, %v8128_v19, %v8129_v18  ;;  %v8142_v22 = vpop.permute.xlu0 %8141  ;;  %v1462_v17 = vld [vmem:[#allocation6 + $0x68] sm:$0xff]  ;;  %v1463_v18 = vld [vmem:[#allocation6 + $0x70] sm:$0xff] }
 0x2f8   : > { %v8137_v23 = vpop.permute.xlu1 %8136  ;;  %v7471_v24 = vpack.c.bf16 %v1517_v20, %v1516_v21  ;;  %v8144_v25 = vunpack.i.h.bf16 %v8142_v22  ;;  %v8143_v26 = vunpack.i.l.bf16 %v8142_v22 }
 0x2f9   : > { %v8139_v27 = vunpack.i.h.bf16 %v8137_v23  ;;  %v8138_v28 = vunpack.i.l.bf16 %v8137_v23  ;;  %v1464_v23 = vld [vmem:[#allocation6 + $0x78] sm:$0xff] }
 0x2fa   : > { %7472 = vmatprep.subr.bf16.mxu1 %v7471_v24  ;;  %v1943_v33 = vsel %vm590_vm1, %v8143_v26, %v8144_v25  ;;  %v1910_v26 = vld [vmem:[#allocation6 + $0x100] sm:$0xff] }
 0x2fb   : > { %7474 = vmatpush3.bf16.msra.mxu1 %v7471_v24  ;;  %v1942_v32 = vsel %vm590_vm1, %v8138_v28, %v8139_v27  ;;  %v8152_v44 = vpop.permute.xlu0 %8151 }
 0x2fc   : > { %7476 = vmatprep.subr.bf16.mxu1 %v9420_v50  ;;  %v7483_v35 = vpack.c.bf16 %v1943_v33, %v1942_v32  ;;  %v8147_v45 = vpop.permute.xlu1 %8146  ;;  %v8154_v48 = vunpack.i.h.bf16 %v8152_v44  ;;  %v8153_v49 = vunpack.i.l.bf16 %v8152_v44  ;;  %v1911_v33 = vld [vmem:[#allocation6 + $0x108] sm:$0xff]  ;;  %v1918_v44 = vld [vmem:[#allocation6 + $0x140] sm:$0xff] }
 0x2fe   : > { %6792 = vmatmul.mubr.msk.f32.vlgmr.msra.gmra.mrb[4].mxu1 %vm1522_vm12, %v1471_v29  ;;  %v1945_v57 = vsel %vm590_vm1, %v8153_v49, %v8154_v48  ;;  %v1922_v48 = vld [vmem:[#allocation6 + $0x160] sm:$0xff] }
 0x2ff   : > { %7478 = vmatpush3.bf16.msra.mxu1 %v9420_v50  ;;  %6794 = vmatprep.mubr.msk.f32.mxu1 %vm1522_vm12, %v1472_v30  ;;  %v8149_v50 = vunpack.i.h.bf16 %v8147_v45  ;;  %v8162_v53 = vpop.permute.xlu0 %8161 }
 0x300   : > { %7480 = vmatprep.subr.bf16.mxu1 %v9422_v51  ;;  %v8157_v54 = vpop.permute.xlu1 %8156  ;;  %v8164_v58 = vunpack.i.h.bf16 %v8162_v53  ;;  %v8163_v59 = vunpack.i.l.bf16 %v8162_v53 }
 0x301   : > { %v8159_v60 = vunpack.i.h.bf16 %v8157_v54  ;;  %v8158_v61 = vunpack.i.l.bf16 %v8157_v54 }
 0x302   : > { %6795 = vmatmul.mubr.msk.f32.gmra.mrb[6].mxu1 %vm1522_vm12, %v1473_v31  ;;  %v2193_v4 = vsel %vm703_vm2, %v8163_v59, %v8164_v58 }
 0x303   : > { %7482 = vmatpush3.bf16.msra.mxu1 %v9422_v51  ;;  %6797 = vmatprep.mubr.msk.f32.mxu1 %vm1522_vm12, %v1474_v34  ;;  %v8148_v51 = vunpack.i.l.bf16 %v8147_v45  ;;  %v2192_v2 = vsel %vm703_vm2, %v8158_v61, %v8159_v60  ;;  %v8172_v15 = vpop.permute.xlu0 %8171  ;;  %v1912_v34 = vld [vmem:[#allocation6 + $0x110] sm:$0xff]  ;;  %v1919_v45 = vld [vmem:[#allocation6 + $0x148] sm:$0xff]  ;;  %v2160_v60 = vld [vmem:[#allocation6 + $0x180] sm:$0xff] }
 0x304   : > { %7484 = vmatprep.subr.bf16.mxu1 %v7483_v35  ;;  %v7491_v6 = vpack.c.bf16 %v2193_v4, %v2192_v2  ;;  %v8167_v16 = vpop.permute.xlu1 %8166  ;;  %v8174_v19 = vunpack.i.h.bf16 %v8172_v15  ;;  %v8173_v20 = vunpack.i.l.bf16 %v8172_v15  ;;  %v2161_v4 = vld [vmem:[#allocation6 + $0x188] sm:$0xff]  ;;  %v2168_v15 = vld [vmem:[#allocation6 + $0x1c0] sm:$0xff] }
 0x305   : > { %v1944_v56 = vsel %vm590_vm1, %v8148_v51, %v8149_v50  ;;  %v8169_v21 = vunpack.i.h.bf16 %v8167_v16  ;;  %v8168_v22 = vunpack.i.l.bf16 %v8167_v16  ;;  %v1923_v51 = vld [vmem:[#allocation6 + $0x168] sm:$0xff] }
 0x306   : > { %6798 = vmatmul.mubr.msk.f32.gmra.mrb[8].mxu1 %vm1522_vm12, %v1475_v36  ;;  %v7487_v0 = vpack.c.bf16 %v1945_v57, %v1944_v56  ;;  %v2195_v28 = vsel %vm703_vm2, %v8173_v20, %v8174_v19  ;;  %v1913_v36 = vld [vmem:[#allocation6 + $0x118] sm:$0xff]  ;;  %v2169_v16 = vld [vmem:[#allocation6 + $0x1c8] sm:$0xff]  ;;  %v2172_v19 = vld [vmem:[#allocation6 + $0x1e0] sm:$0xff] }
 0x307   : > { %6800 = vmatprep.mubr.msk.f32.mxu1 %vm1522_vm12, %v1476_v37  ;;  %v8182_v24 = vpop.permute.xlu0 %8181  ;;  %v2194_v27 = vsel %vm703_vm2, %v8168_v22, %v8169_v21  ;;  %v1925_v57 = vld [vmem:[#allocation6 + $0x178] sm:$0xff]  ;;  %v2173_v22 = vld [vmem:[#allocation6 + $0x1e8] sm:$0xff] }
 0x308   : > { %v8177_v25 = vpop.permute.xlu1 %8176  ;;  %v8184_v29 = vunpack.i.h.bf16 %v8182_v24  ;;  %v8183_v30 = vunpack.i.l.bf16 %v8182_v24 }
 0x309   : > { %v8179_v31 = vunpack.i.h.bf16 %v8177_v25  ;;  %v8178_v32 = vunpack.i.l.bf16 %v8177_v25 }
 0x30a   : > { %6801 = vmatmul.mubr.msk.f32.gmra.mrb[10].mxu1 %vm1522_vm12, %v1477_v38  ;;  %v2443_v38 = vsel %vm816_vm3, %v8183_v30, %v8184_v29 }
 0x30b   : > { %6803 = vmatprep.mubr.msk.f32.mxu1 %vm1522_vm12, %v1478_v39  ;;  %v2442_v37 = vsel %vm816_vm3, %v8178_v32, %v8179_v31  ;;  %v1914_v39 = vld [vmem:[#allocation6 + $0x120] sm:$0xff]  ;;  %v8192_v49 = vpop.permute.xlu0 %8191 }
 0x30c   : > { %v8187_v50 = vpop.permute.xlu1 %8186  ;;  %v8194_v53 = vunpack.i.h.bf16 %v8192_v49  ;;  %v8193_v54 = vunpack.i.l.bf16 %v8192_v49  ;;  %v2410_v31 = vld [vmem:[#allocation6 + $0x200] sm:$0xff] }
 0x30d   : > { %v8188_v56 = vunpack.i.l.bf16 %v8187_v50  ;;  %v2418_v49 = vld [vmem:[#allocation6 + $0x240] sm:$0xff] }
 0x30e   : > { %6804 = vmatmul.mubr.msk.f32.gmra.mrb[12].mxu1 %vm1522_vm12, %v1479_v40  ;;  %v7499_v40 = vpack.c.bf16 %v2443_v38, %v2442_v37  ;;  %v2411_v38 = vld [vmem:[#allocation6 + $0x208] sm:$0xff] }
 0x30f   : > { %6806 = vmatprep.mubr.msk.f32.mxu1 %vm1522_vm12, %v1480_v41  ;;  %v1915_v41 = vld [vmem:[#allocation6 + $0x128] sm:$0xff]  ;;  %v8202_v58 = vpop.permute.xlu0 %8201 }
 0x310   : > { %v8197_v59 = vpop.permute.xlu1 %8196 }
 0x311   : > { %v8198_v2 = vunpack.i.l.bf16 %v8197_v59 }
 0x312   : > { %6807 = vmatmul.mubr.msk.f32.gmra.mrb[14].mxu1 %vm1522_vm12, %v1481_v42  ;;  %v1916_v42 = vld [vmem:[#allocation6 + $0x130] sm:$0xff] }
 0x313   : > { %6809 = vmatprep.mubr.msk.f32.mxu1 %vm1522_vm12, %v1482_v43  ;;  %v1917_v43 = vld [vmem:[#allocation6 + $0x138] sm:$0xff]  ;;  %v8212_v20 = vpop.permute.xlu0 %8211 }
 0x314   : > { %v8207_v21 = vpop.permute.xlu1 %8206  ;;  %v8214_v24 = vunpack.i.h.bf16 %v8212_v20  ;;  %v8213_v25 = vunpack.i.l.bf16 %v8212_v20  ;;  %v2668_v20 = vld [vmem:[#allocation6 + $0x2c0] sm:$0xff] }
 0x316   : > { %6810 = vmatmul.mubr.msk.f32.gmra.mrb[16].mxu1 %vm1522_vm12, %v1483_v46  ;;  %v1920_v46 = vld [vmem:[#allocation6 + $0x150] sm:$0xff] }
 0x317   : > { %6812 = vmatprep.mubr.msk.f32.mxu1 %vm1522_vm12, %v1484_v47  ;;  %v1921_v47 = vld [vmem:[#allocation6 + $0x158] sm:$0xff]  ;;  %v8222_v29 = vpop.permute.xlu0 %8221 }
 0x318   : > { %v8217_v30 = vpop.permute.xlu1 %8216 }
 0x319   : > { %v8218_v37 = vunpack.i.l.bf16 %v8217_v30 }
 0x31a   : > { %6813 = vmatmul.mubr.msk.f32.gmra.mrb[18].mxu1 %vm1522_vm12, %v1485_v52  ;;  %v1924_v52 = vld [vmem:[#allocation6 + $0x170] sm:$0xff] }
 0x31b   : > { %6823 = vmatprep.mubr.msk.f32.mxu1 %vm1522_vm12, %v1449_v55  ;;  %v8189_v55 = vunpack.i.h.bf16 %v8187_v50  ;;  %v2419_v50 = vld [vmem:[#allocation6 + $0x248] sm:$0xff] }
 0x31d   : > { %v2444_v61 = vsel %vm816_vm3, %v8188_v56, %v8189_v55  ;;  %v8227_v55 = vpop.permute.xlu1 %8226  ;;  %v2423_v56 = vld [vmem:[#allocation6 + $0x268] sm:$0xff] }
 0x31e   : > { %6824 = vmatmul.mubr.msk.f32.vlgmr.msra.gmra.mrb[4].mxu1 %vm1522_vm12, %v1450_v62  ;;  %v2445_v62 = vsel %vm816_vm3, %v8193_v54, %v8194_v53  ;;  %v2422_v53 = vld [vmem:[#allocation6 + $0x260] sm:$0xff]  ;;  %v8232_v54 = vpop.permute.xlu0 %8231 }
 0x31f   : > { %7486 = vmatpush3.bf16.msra.mxu1 %v7483_v35  ;;  %6826 = vmatprep.mubr.msk.f32.mxu1 %vm1522_vm12, %v1451_v63  ;;  %v7495_v35 = vpack.c.bf16 %v2195_v28, %v2194_v27  ;;  %v8204_v63 = vunpack.i.h.bf16 %v8202_v58  ;;  %v8208_v27 = vunpack.i.l.bf16 %v8207_v21  ;;  %v2175_v28 = vld [vmem:[#allocation6 + $0x1f8] sm:$0xff] }
 0x320   : > { %7488 = vmatprep.subr.bf16.mxu1 %v7487_v0 }
 0x322   : > { %6827 = vmatmul.mubr.msk.f32.gmra.mrb[6].mxu1 %vm1522_vm12, %v1452_v1  ;;  %v8199_v1 = vunpack.i.h.bf16 %v8197_v59  ;;  %v8233_v59 = vunpack.i.l.bf16 %v8232_v54 }
 0x323   : > { %7490 = vmatpush3.bf16.msra.mxu1 %v7487_v0  ;;  %6829 = vmatprep.mubr.msk.f32.mxu1 %vm1522_vm12, %v1453_v5  ;;  %v8203_v0 = vunpack.i.l.bf16 %v8202_v58  ;;  %v2162_v5 = vld [vmem:[#allocation6 + $0x190] sm:$0xff]  ;;  %v8234_v58 = vunpack.i.h.bf16 %v8232_v54  ;;  %v2918_v54 = vld [vmem:[#allocation6 + $0x340] sm:$0xff] }
 0x324   : > { %7492 = vmatprep.subr.bf16.mxu1 %v7491_v6 }
 0x326   : > { %6830 = vmatmul.mubr.msk.f32.gmra.mrb[8].mxu1 %vm1522_vm12, %v1454_v7  ;;  %v2163_v7 = vld [vmem:[#allocation6 + $0x198] sm:$0xff] }
 0x327   : > { %6832 = vmatprep.mubr.msk.f32.mxu1 %vm1522_vm12, %v1455_v8  ;;  %v2692_v8 = vsel %vm929_vm4, %v8198_v2, %v8199_v1  ;;  %v2660_v1 = vld [vmem:[#allocation6 + $0x280] sm:$0xff] }
 0x32a   : > { %6833 = vmatmul.mubr.msk.f32.gmra.mrb[10].mxu1 %vm1522_vm12, %v1456_v9  ;;  %v2693_v9 = vsel %vm929_vm4, %v8203_v0, %v8204_v63  ;;  %v8242_v63 = vpop.permute.xlu0 %8241  ;;  %v8237_v0 = vpop.permute.xlu1 %8236 }
 0x32b   : > { %6835 = vmatprep.mubr.msk.f32.mxu1 %vm1522_vm12, %v1457_v10  ;;  %v2164_v10 = vld [vmem:[#allocation6 + $0x1a0] sm:$0xff] }
 0x32e   : > { %6836 = vmatmul.mubr.msk.f32.gmra.mrb[12].mxu1 %vm1522_vm12, %v1458_v11  ;;  %v7507_v11 = vpack.c.bf16 %v2693_v9, %v2692_v8  ;;  %v8238_v8 = vunpack.i.l.bf16 %v8237_v0  ;;  %v2661_v9 = vld [vmem:[#allocation6 + $0x288] sm:$0xff] }
 0x32f   : > { %6838 = vmatprep.mubr.msk.f32.mxu1 %vm1522_vm12, %v1459_v12  ;;  %v2165_v12 = vld [vmem:[#allocation6 + $0x1a8] sm:$0xff] }
 0x332   : > { %6839 = vmatmul.mubr.msk.f32.gmra.mrb[14].mxu1 %vm1522_vm12, %v1460_v13  ;;  %v2166_v13 = vld [vmem:[#allocation6 + $0x1b0] sm:$0xff] }
 0x333   : > { %6841 = vmatprep.mubr.msk.f32.mxu1 %vm1522_vm12, %v1461_v14  ;;  %v2167_v14 = vld [vmem:[#allocation6 + $0x1b8] sm:$0xff] }
 0x336   : > { %6842 = vmatmul.mubr.msk.f32.gmra.mrb[16].mxu1 %vm1522_vm12, %v1462_v17  ;;  %v2170_v17 = vld [vmem:[#allocation6 + $0x1d0] sm:$0xff] }
 0x337   : > { %6844 = vmatprep.mubr.msk.f32.mxu1 %vm1522_vm12, %v1463_v18  ;;  %v2171_v18 = vld [vmem:[#allocation6 + $0x1d8] sm:$0xff] }
 0x33a   : > { %6845 = vmatmul.mubr.msk.f32.gmra.mrb[18].mxu1 %vm1522_vm12, %v1464_v23  ;;  %v2174_v23 = vld [vmem:[#allocation6 + $0x1f0] sm:$0xff] }
 0x33b   : > { %6855 = vmatprep.mubr.msk.f32.mxu1 %vm1522_vm12, %v1910_v26  ;;  %v8209_v26 = vunpack.i.h.bf16 %v8207_v21  ;;  %v2669_v21 = vld [vmem:[#allocation6 + $0x2c8] sm:$0xff] }
 0x33d   : > { %v2694_v32 = vsel %vm929_vm4, %v8208_v27, %v8209_v26  ;;  %v8247_v26 = vpop.permute.xlu1 %8246  ;;  %v2673_v27 = vld [vmem:[#allocation6 + $0x2e8] sm:$0xff] }
 0x33e   : > { %6856 = vmatmul.mubr.msk.f32.vlgmr.msra.gmra.mrb[4].mxu1 %vm1522_vm12, %v1911_v33  ;;  %v2695_v33 = vsel %vm929_vm4, %v8213_v25, %v8214_v24  ;;  %v2672_v24 = vld [vmem:[#allocation6 + $0x2e0] sm:$0xff]  ;;  %v8252_v25 = vpop.permute.xlu0 %8251 }
 0x33f   : > { %7494 = vmatpush3.bf16.msra.mxu1 %v7491_v6  ;;  %6858 = vmatprep.mubr.msk.f32.mxu1 %vm1522_vm12, %v1912_v34  ;;  %v7503_v6 = vpack.c.bf16 %v2445_v62, %v2444_v61  ;;  %v8224_v34 = vunpack.i.h.bf16 %v8222_v29  ;;  %v8228_v61 = vunpack.i.l.bf16 %v8227_v55  ;;  %v2425_v62 = vld [vmem:[#allocation6 + $0x278] sm:$0xff] }
 0x340   : > { %7496 = vmatprep.subr.bf16.mxu1 %v7495_v35 }
 0x342   : > { %6859 = vmatmul.mubr.msk.f32.gmra.mrb[6].mxu1 %vm1522_vm12, %v1913_v36  ;;  %v8219_v36 = vunpack.i.h.bf16 %v8217_v30  ;;  %v8253_v30 = vunpack.i.l.bf16 %v8252_v25 }
 0x343   : > { %7498 = vmatpush3.bf16.msra.mxu1 %v7495_v35  ;;  %6861 = vmatprep.mubr.msk.f32.mxu1 %vm1522_vm12, %v1914_v39  ;;  %v8223_v35 = vunpack.i.l.bf16 %v8222_v29  ;;  %v2412_v39 = vld [vmem:[#allocation6 + $0x210] sm:$0xff]  ;;  %v8254_v29 = vunpack.i.h.bf16 %v8252_v25  ;;  %v3411_v25 = vld [vmem:[#allocation6 + $0x408] sm:$0xff] }
 0x344   : > { %7500 = vmatprep.subr.bf16.mxu1 %v7499_v40 }
 0x346   : > { %6862 = vmatmul.mubr.msk.f32.gmra.mrb[8].mxu1 %vm1522_vm12, %v1915_v41  ;;  %v2413_v41 = vld [vmem:[#allocation6 + $0x218] sm:$0xff] }
 0x347   : > { %6864 = vmatprep.mubr.msk.f32.mxu1 %vm1522_vm12, %v1916_v42  ;;  %v2942_v42 = vsel %vm1042_vm6, %v8218_v37, %v8219_v36  ;;  %v2910_v36 = vld [vmem:[#allocation6 + $0x300] sm:$0xff] }
 0x34a   : > { %6865 = vmatmul.mubr.msk.f32.gmra.mrb[10].mxu1 %vm1522_vm12, %v1917_v43  ;;  %v2943_v43 = vsel %vm1042_vm6, %v8223_v35, %v8224_v34  ;;  %v8262_v34 = vpop.permute.xlu0 %8261  ;;  %v8257_v35 = vpop.permute.xlu1 %8256 }
 0x34b   : > { %6867 = vmatprep.mubr.msk.f32.mxu1 %vm1522_vm12, %v1918_v44  ;;  %v2414_v44 = vld [vmem:[#allocation6 + $0x220] sm:$0xff] }
 0x34e   : > { %6868 = vmatmul.mubr.msk.f32.gmra.mrb[12].mxu1 %vm1522_vm12, %v1919_v45  ;;  %v7515_v45 = vpack.c.bf16 %v2943_v43, %v2942_v42  ;;  %v8258_v42 = vunpack.i.l.bf16 %v8257_v35  ;;  %v2911_v43 = vld [vmem:[#allocation6 + $0x308] sm:$0xff] }
 0x34f   : > { %6870 = vmatprep.mubr.msk.f32.mxu1 %vm1522_vm12, %v1920_v46  ;;  %v2415_v46 = vld [vmem:[#allocation6 + $0x228] sm:$0xff] }
 0x352   : > { %6871 = vmatmul.mubr.msk.f32.gmra.mrb[14].mxu1 %vm1522_vm12, %v1921_v47  ;;  %v2416_v47 = vld [vmem:[#allocation6 + $0x230] sm:$0xff] }
 0x353   : > { %6873 = vmatprep.mubr.msk.f32.mxu1 %vm1522_vm12, %v1922_v48  ;;  %v2417_v48 = vld [vmem:[#allocation6 + $0x238] sm:$0xff] }
 0x356   : > { %6874 = vmatmul.mubr.msk.f32.gmra.mrb[16].mxu1 %vm1522_vm12, %v1923_v51  ;;  %v2420_v51 = vld [vmem:[#allocation6 + $0x250] sm:$0xff] }
 0x357   : > { %6876 = vmatprep.mubr.msk.f32.mxu1 %vm1522_vm12, %v1924_v52  ;;  %v2421_v52 = vld [vmem:[#allocation6 + $0x258] sm:$0xff] }
 0x35a   : > { %6877 = vmatmul.mubr.msk.f32.gmra.mrb[18].mxu1 %vm1522_vm12, %v1925_v57  ;;  %v2424_v57 = vld [vmem:[#allocation6 + $0x270] sm:$0xff] }
 0x35b   : > { %6887 = vmatprep.mubr.msk.f32.mxu1 %vm1522_vm12, %v2160_v60  ;;  %v8229_v60 = vunpack.i.h.bf16 %v8227_v55  ;;  %v2919_v55 = vld [vmem:[#allocation6 + $0x348] sm:$0xff] }
 0x35d   : > { %v2944_v2 = vsel %vm1042_vm6, %v8228_v61, %v8229_v60  ;;  %v8272_v60 = vpop.permute.xlu0 %8271  ;;  %v8267_v61 = vpop.permute.xlu1 %8266 }
 0x35e   : > { %6888 = vmatmul.mubr.msk.f32.vlgmr.msra.gmra.mrb[4].mxu1 %vm1522_vm12, %v2161_v4  ;;  %v2945_v4 = vsel %vm1042_vm6, %v8233_v59, %v8234_v58  ;;  %v2922_v58 = vld [vmem:[#allocation6 + $0x360] sm:$0xff]  ;;  %v2923_v59 = vld [vmem:[#allocation6 + $0x368] sm:$0xff] }
 0x35f   : > { %7502 = vmatpush3.bf16.msra.mxu1 %v7499_v40  ;;  %6890 = vmatprep.mubr.msk.f32.mxu1 %vm1522_vm12, %v2162_v5  ;;  %v7511_v40 = vpack.c.bf16 %v2695_v33, %v2694_v32  ;;  %v8244_v5 = vunpack.i.h.bf16 %v8242_v63  ;;  %v8248_v32 = vunpack.i.l.bf16 %v8247_v26  ;;  %v2675_v33 = vld [vmem:[#allocation6 + $0x2f8] sm:$0xff] }
 0x360   : > { %7504 = vmatprep.subr.bf16.mxu1 %v7503_v6 }
 0x362   : > { %6891 = vmatmul.mubr.msk.f32.gmra.mrb[6].mxu1 %vm1522_vm12, %v2163_v7  ;;  %v8239_v7 = vunpack.i.h.bf16 %v8237_v0  ;;  %v8273_v0 = vunpack.i.l.bf16 %v8272_v60 }
 0x363   : > { %7506 = vmatpush3.bf16.msra.mxu1 %v7503_v6  ;;  %6893 = vmatprep.mubr.msk.f32.mxu1 %vm1522_vm12, %v2164_v10  ;;  %v8243_v6 = vunpack.i.l.bf16 %v8242_v63  ;;  %v2662_v10 = vld [vmem:[#allocation6 + $0x290] sm:$0xff]  ;;  %v8274_v63 = vunpack.i.h.bf16 %v8272_v60 }
 0x364   : > { %7508 = vmatprep.subr.bf16.mxu1 %v7507_v11 }
 0x366   : > { %6894 = vmatmul.mubr.msk.f32.gmra.mrb[8].mxu1 %vm1522_vm12, %v2165_v12  ;;  %v2663_v12 = vld [vmem:[#allocation6 + $0x298] sm:$0xff] }
 0x367   : > { %6896 = vmatprep.mubr.msk.f32.mxu1 %vm1522_vm12, %v2166_v13  ;;  %v3192_v13 = vsel %vm1155_vm7, %v8238_v8, %v8239_v7  ;;  %v3445_v8 = vsel %vm1268_vm8, %v8273_v0, %v8274_v63 }
 0x36a   : > { %6897 = vmatmul.mubr.msk.f32.gmra.mrb[10].mxu1 %vm1522_vm12, %v2167_v14  ;;  %v3193_v14 = vsel %vm1155_vm7, %v8243_v6, %v8244_v5  ;;  %v3160_v5 = vld [vmem:[#allocation6 + $0x380] sm:$0xff]  ;;  %v3161_v6 = vld [vmem:[#allocation6 + $0x388] sm:$0xff] }
 0x36b   : > { %6899 = vmatprep.mubr.msk.f32.mxu1 %vm1522_vm12, %v2168_v15  ;;  %v2664_v15 = vld [vmem:[#allocation6 + $0x2a0] sm:$0xff] }
 0x36e   : > { %6900 = vmatmul.mubr.msk.f32.gmra.mrb[12].mxu1 %vm1522_vm12, %v2169_v16  ;;  %v7523_v16 = vpack.c.bf16 %v3193_v14, %v3192_v13  ;;  %v3165_v13 = vld [vmem:[#allocation6 + $0x3a8] sm:$0xff]  ;;  %v3166_v14 = vld [vmem:[#allocation6 + $0x3b0] sm:$0xff] }
 0x36f   : > { %6902 = vmatprep.mubr.msk.f32.mxu1 %vm1522_vm12, %v2170_v17  ;;  %v2665_v17 = vld [vmem:[#allocation6 + $0x2a8] sm:$0xff] }
 0x372   : > { %6903 = vmatmul.mubr.msk.f32.gmra.mrb[14].mxu1 %vm1522_vm12, %v2171_v18  ;;  %v2666_v18 = vld [vmem:[#allocation6 + $0x2b0] sm:$0xff] }
 0x373   : > { %6905 = vmatprep.mubr.msk.f32.mxu1 %vm1522_vm12, %v2172_v19  ;;  %v2667_v19 = vld [vmem:[#allocation6 + $0x2b8] sm:$0xff] }
 0x376   : > { %6906 = vmatmul.mubr.msk.f32.gmra.mrb[16].mxu1 %vm1522_vm12, %v2173_v22  ;;  %v2670_v22 = vld [vmem:[#allocation6 + $0x2d0] sm:$0xff] }
 0x377   : > { %6908 = vmatprep.mubr.msk.f32.mxu1 %vm1522_vm12, %v2174_v23  ;;  %v2671_v23 = vld [vmem:[#allocation6 + $0x2d8] sm:$0xff] }
 0x37a   : > { %6909 = vmatmul.mubr.msk.f32.gmra.mrb[18].mxu1 %vm1522_vm12, %v2175_v28  ;;  %v2674_v28 = vld [vmem:[#allocation6 + $0x2f0] sm:$0xff] }
 0x37b   : > { %6919 = vmatprep.mubr.msk.f32.mxu1 %vm1522_vm12, %v2410_v31  ;;  %v8249_v31 = vunpack.i.h.bf16 %v8247_v26  ;;  %v3412_v26 = vld [vmem:[#allocation6 + $0x410] sm:$0xff] }
 0x37d   : > { %v3194_v37 = vsel %vm1155_vm7, %v8248_v32, %v8249_v31  ;;  %v3417_v31 = vld [vmem:[#allocation6 + $0x438] sm:$0xff]  ;;  %v3418_v32 = vld [vmem:[#allocation6 + $0x440] sm:$0xff] }
 0x37e   : > { %6920 = vmatmul.mubr.msk.f32.vlgmr.msra.gmra.mrb[4].mxu1 %vm1522_vm12, %v2411_v38  ;;  %v3195_v38 = vsel %vm1155_vm7, %v8253_v30, %v8254_v29  ;;  %v3415_v29 = vld [vmem:[#allocation6 + $0x428] sm:$0xff]  ;;  %v3416_v30 = vld [vmem:[#allocation6 + $0x430] sm:$0xff] }
 0x37f   : > { %7510 = vmatpush3.bf16.msra.mxu1 %v7507_v11  ;;  %6922 = vmatprep.mubr.msk.f32.mxu1 %vm1522_vm12, %v2412_v39  ;;  %v7519_v11 = vpack.c.bf16 %v2945_v4, %v2944_v2  ;;  %v8264_v39 = vunpack.i.h.bf16 %v8262_v34  ;;  %v8268_v2 = vunpack.i.l.bf16 %v8267_v61  ;;  %v2925_v4 = vld [vmem:[#allocation6 + $0x378] sm:$0xff] }
 0x380   : > { %7512 = vmatprep.subr.bf16.mxu1 %v7511_v40 }
 0x382   : > { %6923 = vmatmul.mubr.msk.f32.gmra.mrb[6].mxu1 %vm1522_vm12, %v2413_v41  ;;  %v8259_v41 = vunpack.i.h.bf16 %v8257_v35  ;;  %v3421_v35 = vld [vmem:[#allocation6 + $0x458] sm:$0xff] }
 0x383   : > { %7514 = vmatpush3.bf16.msra.mxu1 %v7511_v40  ;;  %6925 = vmatprep.mubr.msk.f32.mxu1 %vm1522_vm12, %v2414_v44  ;;  %v8263_v40 = vunpack.i.l.bf16 %v8262_v34  ;;  %v2912_v44 = vld [vmem:[#allocation6 + $0x310] sm:$0xff] }
 0x384   : > { %7516 = vmatprep.subr.bf16.mxu1 %v7515_v45  ;;  %v3420_v34 = vld [vmem:[#allocation6 + $0x450] sm:$0xff] }
 0x386   : > { %6926 = vmatmul.mubr.msk.f32.gmra.mrb[8].mxu1 %vm1522_vm12, %v2415_v46  ;;  %v2913_v46 = vld [vmem:[#allocation6 + $0x318] sm:$0xff] }
 0x387   : > { %6928 = vmatprep.mubr.msk.f32.mxu1 %vm1522_vm12, %v2416_v47  ;;  %v3442_v47 = vsel %vm1268_vm8, %v8258_v42, %v8259_v41  ;;  %v3678_v41 = vpop.permute.xlu1 %3677 }
 0x38a   : > { %6929 = vmatmul.mubr.msk.f32.gmra.mrb[10].mxu1 %vm1522_vm12, %v2417_v48  ;;  %v3443_v48 = vsel %vm1268_vm8, %v8263_v40, %v8264_v39  ;;  %v3425_v39 = vld [vmem:[#allocation6 + $0x478] sm:$0xff]  ;;  %v3683_v40 = vpop.permute.xlu0 %3682 }
 0x38b   : > { %6931 = vmatprep.mubr.msk.f32.mxu1 %vm1522_vm12, %v2418_v49  ;;  %v2914_v49 = vld [vmem:[#allocation6 + $0x320] sm:$0xff] }
 0x38e   : > { %6932 = vmatmul.mubr.msk.f32.gmra.mrb[12].mxu1 %vm1522_vm12, %v2419_v50  ;;  %v7531_v50 = vpack.c.bf16 %v3443_v48, %v3442_v47  ;;  %v3693_v42 = vpop.permute.xlu0 %3692 }
 0x38f   : > { %6934 = vmatprep.mubr.msk.f32.mxu1 %vm1522_vm12, %v2420_v51  ;;  %v2915_v51 = vld [vmem:[#allocation6 + $0x328] sm:$0xff] }
 0x392   : > { %6935 = vmatmul.mubr.msk.f32.gmra.mrb[14].mxu1 %vm1522_vm12, %v2421_v52  ;;  %v2916_v52 = vld [vmem:[#allocation6 + $0x330] sm:$0xff] }
 0x393   : > { %6937 = vmatprep.mubr.msk.f32.mxu1 %vm1522_vm12, %v2422_v53  ;;  %v2917_v53 = vld [vmem:[#allocation6 + $0x338] sm:$0xff] }
 0x396   : > { %6938 = vmatmul.mubr.msk.f32.gmra.mrb[16].mxu1 %vm1522_vm12, %v2423_v56  ;;  %v2920_v56 = vld [vmem:[#allocation6 + $0x350] sm:$0xff] }
 0x397   : > { %6940 = vmatprep.mubr.msk.f32.mxu1 %vm1522_vm12, %v2424_v57  ;;  %v2921_v57 = vld [vmem:[#allocation6 + $0x358] sm:$0xff] }
 0x39a   : > { %6941 = vmatmul.mubr.msk.f32.gmra.mrb[18].mxu1 %vm1522_vm12, %v2425_v62  ;;  %v2924_v62 = vld [vmem:[#allocation6 + $0x370] sm:$0xff] }
 0x39b   : > { %6951 = vmatprep.mubr.msk.f32.mxu1 %vm1522_vm12, %v2660_v1  ;;  %v8269_v1 = vunpack.i.h.bf16 %v8267_v61 }
 0x39d   : > { %v3444_v7 = vsel %vm1268_vm8, %v8268_v2, %v8269_v1 }
 0x39e   : > { %6952 = vmatmul.mubr.msk.f32.vlgmr.msra.gmra.mrb[4].mxu1 %vm1522_vm12, %v2661_v9  ;;  %v3162_v9 = vld [vmem:[#allocation6 + $0x390] sm:$0xff] }
 0x39f   : > { %7518 = vmatpush3.bf16.msra.mxu1 %v7515_v45  ;;  %6954 = vmatprep.mubr.msk.f32.mxu1 %vm1522_vm12, %v2662_v10  ;;  %v7527_v45 = vpack.c.bf16 %v3195_v38, %v3194_v37  ;;  %v7535_v10 = vpack.c.bf16 %v3445_v8, %v3444_v7  ;;  %v3423_v37 = vld [vmem:[#allocation6 + $0x468] sm:$0xff]  ;;  %v3424_v38 = vld [vmem:[#allocation6 + $0x470] sm:$0xff] }
 0x3a0   : > { %7520 = vmatprep.subr.bf16.mxu1 %v7519_v11 }
 0x3a2   : > { %6955 = vmatmul.mubr.msk.f32.gmra.mrb[6].mxu1 %vm1522_vm12, %v2663_v12  ;;  %v3164_v12 = vld [vmem:[#allocation6 + $0x3a0] sm:$0xff] }
 0x3a3   : > { %7522 = vmatpush3.bf16.msra.mxu1 %v7519_v11  ;;  %6957 = vmatprep.mubr.msk.f32.mxu1 %vm1522_vm12, %v2664_v15  ;;  %v3163_v11 = vld [vmem:[#allocation6 + $0x398] sm:$0xff] }
 0x3a4   : > { %7524 = vmatprep.subr.bf16.mxu1 %v7523_v16  ;;  %v3167_v15 = vld [vmem:[#allocation6 + $0x3b8] sm:$0xff] }
 0x3a6   : > { %6958 = vmatmul.mubr.msk.f32.gmra.mrb[8].mxu1 %vm1522_vm12, %v2665_v17  ;;  %v3169_v17 = vld [vmem:[#allocation6 + $0x3c8] sm:$0xff] }
 0x3a7   : > { %6960 = vmatprep.mubr.msk.f32.mxu1 %vm1522_vm12, %v2666_v18  ;;  %v3170_v18 = vld [vmem:[#allocation6 + $0x3d0] sm:$0xff] }
 0x3aa   : > { %6961 = vmatmul.mubr.msk.f32.gmra.mrb[10].mxu1 %vm1522_vm12, %v2667_v19  ;;  %v3171_v19 = vld [vmem:[#allocation6 + $0x3d8] sm:$0xff] }
 0x3ab   : > { %6963 = vmatprep.mubr.msk.f32.mxu1 %vm1522_vm12, %v2668_v20  ;;  %v3172_v20 = vld [vmem:[#allocation6 + $0x3e0] sm:$0xff] }
 0x3ae   : > { %6964 = vmatmul.mubr.msk.f32.gmra.mrb[12].mxu1 %vm1522_vm12, %v2669_v21  ;;  %v3173_v21 = vld [vmem:[#allocation6 + $0x3e8] sm:$0xff] }
 0x3af   : > { %6966 = vmatprep.mubr.msk.f32.mxu1 %vm1522_vm12, %v2670_v22  ;;  %v3174_v22 = vld [vmem:[#allocation6 + $0x3f0] sm:$0xff] }
 0x3b2   : > { %6967 = vmatmul.mubr.msk.f32.gmra.mrb[14].mxu1 %vm1522_vm12, %v2671_v23  ;;  %v3175_v23 = vld [vmem:[#allocation6 + $0x3f8] sm:$0xff] }
 0x3b3   : > { %6969 = vmatprep.mubr.msk.f32.mxu1 %vm1522_vm12, %v2672_v24  ;;  %v3410_v24 = vld [vmem:[#allocation6 + $0x400] sm:$0xff] }
 0x3b6   : > { %6970 = vmatmul.mubr.msk.f32.gmra.mrb[16].mxu1 %vm1522_vm12, %v2673_v27  ;;  %v3413_v27 = vld [vmem:[#allocation6 + $0x418] sm:$0xff] }
 0x3b7   : > { %6972 = vmatprep.mubr.msk.f32.mxu1 %vm1522_vm12, %v2674_v28  ;;  %v3414_v28 = vld [vmem:[#allocation6 + $0x420] sm:$0xff] }
 0x3ba   : > { %6973 = vmatmul.mubr.msk.f32.gmra.mrb[18].mxu1 %vm1522_vm12, %v2675_v33  ;;  %v3419_v33 = vld [vmem:[#allocation6 + $0x448] sm:$0xff] }
 0x3bb   : > { %6983 = vmatprep.mubr.msk.f32.mxu1 %vm1522_vm12, %v2910_v36  ;;  %v3422_v36 = vld [vmem:[#allocation6 + $0x460] sm:$0xff] }
 0x3be   : > { %6984 = vmatmul.mubr.msk.f32.vlgmr.msra.gmra.mrb[4].mxu1 %vm1522_vm12, %v2911_v43  ;;  %v3688_v43 = vpop.permute.xlu1 %3687 }
 0x3bf   : > { %7526 = vmatpush3.bf16.msra.mxu1 %v7523_v16  ;;  %6986 = vmatprep.mubr.msk.f32.mxu1 %vm1522_vm12, %v2912_v44  ;;  %v3168_v16 = vld [vmem:[#allocation6 + $0x3c0] sm:$0xff]  ;;  %v3703_v44 = vpop.permute.xlu0 %3702 }
 0x3c0   : > { %7528 = vmatprep.subr.bf16.mxu1 %v7527_v45 }
 0x3c2   : > { %6987 = vmatmul.mubr.msk.f32.gmra.mrb[6].mxu1 %vm1522_vm12, %v2913_v46 }
 0x3c3   : > { %7530 = vmatpush3.bf16.msra.mxu1 %v7527_v45  ;;  %6989 = vmatprep.mubr.msk.f32.mxu1 %vm1522_vm12, %v2914_v49  ;;  %v3698_v45 = vpop.permute.xlu1 %3697 }
 0x3c4   : > { %7532 = vmatprep.subr.bf16.mxu1 %v7531_v50 }
 0x3c6   : > { %6990 = vmatmul.mubr.msk.f32.gmra.mrb[8].mxu1 %vm1522_vm12, %v2915_v51  ;;  %v3713_v51 = vpop.permute.xlu0 %3712 }
 0x3c7   : > { %6992 = vmatprep.mubr.msk.f32.mxu1 %vm1522_vm12, %v2916_v52 }
 0x3ca   : > { %6993 = vmatmul.mubr.msk.f32.gmra.mrb[10].mxu1 %vm1522_vm12, %v2917_v53 }
 0x3cb   : > { %6995 = vmatprep.mubr.msk.f32.mxu1 %vm1522_vm12, %v2918_v54  ;;  %v3708_v54 = vpop.permute.xlu1 %3707 }
 0x3ce   : > { %6996 = vmatmul.mubr.msk.f32.gmra.mrb[12].mxu1 %vm1522_vm12, %v2919_v55  ;;  %v9635_v55 = vld [vmem:[%s10582_s0] ss:$0 sm:$0xff] }
 0x3cf   : > { %6998 = vmatprep.mubr.msk.f32.mxu1 %vm1522_vm12, %v2920_v56  ;;  %v3718_v7 = vpop.permute.xlu1 %3717 }
 0x3d2   : > { %6999 = vmatmul.mubr.msk.f32.gmra.mrb[14].mxu1 %vm1522_vm12, %v2921_v57 }
 0x3d3   : > { %7001 = vmatprep.mubr.msk.f32.mxu1 %vm1522_vm12, %v2922_v58 }
 0x3d6   : > { %7002 = vmatmul.mubr.msk.f32.gmra.mrb[16].mxu1 %vm1522_vm12, %v2923_v59 }
 0x3d7   : > { %7004 = vmatprep.mubr.msk.f32.mxu1 %vm1522_vm12, %v2924_v62 }
 0x3da   : > { %7005 = vmatmul.mubr.msk.f32.gmra.mrb[18].mxu1 %vm1522_vm12, %v2925_v4  ;;  %v3723_v4 = vpop.permute.xlu0 %3722 }
 0x3db   : > { %7015 = vmatprep.mubr.msk.f32.mxu1 %vm1522_vm12, %v3160_v5 }
 0x3de   : > { %7016 = vmatmul.mubr.msk.f32.vlgmr.msra.gmra.mrb[4].mxu1 %vm1522_vm12, %v3161_v6 }
 0x3df   : > { %7534 = vmatpush3.bf16.msra.mxu1 %v7531_v50  ;;  %7018 = vmatprep.mubr.msk.f32.mxu1 %vm1522_vm12, %v3162_v9 }
 0x3e0   : > { %7536 = vmatprep.subr.bf16.mxu1 %v7535_v10 }
 0x3e2   : > { %7019 = vmatmul.mubr.msk.f32.gmra.mrb[6].mxu1 %vm1522_vm12, %v3163_v11 }
 0x3e3   : > { %7538 = vmatpush3.bf16.msra.mxu1 %v7535_v10  ;;  %7021 = vmatprep.mubr.msk.f32.mxu1 %vm1522_vm12, %v3164_v12 }
 0x3e6   : > { %7022 = vmatmul.mubr.msk.f32.gmra.mrb[8].mxu1 %vm1522_vm12, %v3165_v13 }
 0x3e7   : > { %7024 = vmatprep.mubr.msk.f32.mxu1 %vm1522_vm12, %v3166_v14 }
 0x3ea   : > { %7025 = vmatmul.mubr.msk.f32.gmra.mrb[10].mxu1 %vm1522_vm12, %v3167_v15 }
 0x3eb   : > { %7027 = vmatprep.mubr.msk.f32.mxu1 %vm1522_vm12, %v3168_v16 }
 0x3ee   : > { %7028 = vmatmul.mubr.msk.f32.gmra.mrb[12].mxu1 %vm1522_vm12, %v3169_v17  ;;  %v3733_v17 = vpop.permute.xlu0 %3732 }
 0x3ef   : > { %7030 = vmatprep.mubr.msk.f32.mxu1 %vm1522_vm12, %v3170_v18 }
 0x3f2   : > { %7031 = vmatmul.mubr.msk.f32.gmra.mrb[14].mxu1 %vm1522_vm12, %v3171_v19 }
 0x3f3   : > { %7033 = vmatprep.mubr.msk.f32.mxu1 %vm1522_vm12, %v3172_v20  ;;  %v3728_v20 = vpop.permute.xlu1 %3727 }
 0x3f6   : > { %7034 = vmatmul.mubr.msk.f32.gmra.mrb[16].mxu1 %vm1522_vm12, %v3173_v21 }
 0x3f7   : > { %7036 = vmatprep.mubr.msk.f32.mxu1 %vm1522_vm12, %v3174_v22 }
 0x3fa   : > { %7037 = vmatmul.mubr.msk.f32.gmra.mrb[18].mxu1 %vm1522_vm12, %v3175_v23 }
 0x3fb   : > { %7047 = vmatprep.mubr.msk.f32.mxu1 %vm1522_vm12, %v3410_v24 }
 0x3fe   : > { %7048 = vmatmul.mubr.msk.f32.vlgmr.msra.gmra.mrb[4].mxu1 %vm1522_vm12, %v3411_v25 }
 0x3ff   : > { %7050 = vmatprep.mubr.msk.f32.mxu1 %vm1522_vm12, %v3412_v26 }
 0x402   : > { %7051 = vmatmul.mubr.msk.f32.gmra.mrb[6].mxu1 %vm1522_vm12, %v3413_v27 }
 0x403   : > { %7053 = vmatprep.mubr.msk.f32.mxu1 %vm1522_vm12, %v3414_v28 }
 0x406   : > { %7054 = vmatmul.mubr.msk.f32.gmra.mrb[8].mxu1 %vm1522_vm12, %v3415_v29 }
 0x407   : > { %7056 = vmatprep.mubr.msk.f32.mxu1 %vm1522_vm12, %v3416_v30 }
 0x40a   : > { %7057 = vmatmul.mubr.msk.f32.gmra.mrb[10].mxu1 %vm1522_vm12, %v3417_v31 }
 0x40b   : > { %7059 = vmatprep.mubr.msk.f32.mxu1 %vm1522_vm12, %v3418_v32  ;;  %v3743_v32 = vpop.permute.xlu0 %3742 }
 0x40e   : > { %7060 = vmatmul.mubr.msk.f32.gmra.mrb[12].mxu1 %vm1522_vm12, %v3419_v33 }
 0x40f   : > { %7062 = vmatprep.mubr.msk.f32.mxu1 %vm1522_vm12, %v3420_v34 }
 0x412   : > { %7063 = vmatmul.mubr.msk.f32.gmra.mrb[14].mxu1 %vm1522_vm12, %v3421_v35  ;;  %v3738_v35 = vpop.permute.xlu1 %3737 }
 0x413   : > { %7065 = vmatprep.mubr.msk.f32.mxu1 %vm1522_vm12, %v3422_v36 }
 0x416   : > { %7066 = vmatmul.mubr.msk.f32.gmra.mrb[16].mxu1 %vm1522_vm12, %v3423_v37 }
 0x417   : > { %7068 = vmatprep.mubr.msk.f32.mxu1 %vm1522_vm12, %v3424_v38 }
 0x41a   : > { %7069 = vmatmul.mubr.msk.f32.gmra.mrb[18].mxu1 %vm1522_vm12, %v3425_v39 }
 0x4d1   : > { %v7049_v46 = vpop.f32.mrb[4].mxu1 }
 0x4d2   : > { %v3756_v47 = vadd.f32 %v7049_v46, %v3683_v40  ;;  %v3564_v48 = vpop.f32.mrb[5].mxu1 }
 0x4d3   : > { %v3755_v49 = vadd.f32 %v3678_v41, %v3564_v48  ;;  %v3748_v48 = vpop.permute.xlu1 %3747 }
 0x4d4   : > { %v3772_v50 = vmax.f32 %v3756_v47, 0.0 }
 0x4d5   : > { %v3771_v52 = vmax.f32 %v3755_v49, 0.0  ;;  %v7052_v53 = vpop.f32.mrb[6].mxu1 }
 0x4d6   : > { %v3804_v56 = vmul.f32 %v9635_v55, %v3772_v50  ;;  %v3758_v57 = vadd.f32 %v7052_v53, %v3693_v42  ;;  %v3574_v58 = vpop.f32.mrb[7].mxu1 }
 0x4d7   : > { %v3803_v59 = vmul.f32 %v9635_v55, %v3771_v52  ;;  %v3757_v60 = vadd.f32 %v3688_v43, %v3574_v58 }
 0x4d8   : > { %v3774_v61 = vmax.f32 %v3758_v57, 0.0  ;;  %3837 = vrot.lane.b32.xlu0 %v3804_v56, %s9064_s16 }
 0x4d9   : > { %v3773_v62 = vmax.f32 %v3757_v60, 0.0  ;;  %3835 = vrot.lane.b32.xlu1 %v3803_v59, %s9064_s16  ;;  %v7055_v63 = vpop.f32.mrb[8].mxu1 }
 0x4da   : > { %v3806_v0 = vmul.f32 %v9635_v55, %v3774_v61  ;;  %v3760_v1 = vadd.f32 %v7055_v63, %v3703_v44  ;;  %v3584_v2 = vpop.f32.mrb[9].mxu1 }
 0x4db   : > { %v3805_v5 = vmul.f32 %v9635_v55, %v3773_v62  ;;  %v3759_v6 = vadd.f32 %v3698_v45, %v3584_v2  ;;  %v3753_v45 = vpop.permute.xlu0 %3752 }
 0x4dc   : > { %v3776_v8 = vmax.f32 %v3760_v1, 0.0  ;;  %3841 = vrot.lane.b32.xlu0 %v3806_v0, %s9064_s16  ;;  %v3931_v0 = vld [vmem:[%s10588_s6] sm:$0xff] }
 0x4dd   : > { %v3775_v9 = vmax.f32 %v3759_v6, 0.0  ;;  %3839 = vrot.lane.b32.xlu1 %v3805_v5, %s9064_s16  ;;  %v7058_v10 = vpop.f32.mrb[10].mxu1  ;;  %7147 = vmatprep.mubr.f32.mxu0 %v3931_v0 }
 0x4de   : > { %v3808_v11 = vmul.f32 %v9635_v55, %v3776_v8  ;;  %v3762_v12 = vadd.f32 %v7058_v10, %v3713_v51  ;;  %v3594_v13 = vpop.f32.mrb[11].mxu1 }
 0x4df   : > { %v3807_v14 = vmul.f32 %v9635_v55, %v3775_v9  ;;  %v3761_v15 = vadd.f32 %v3708_v54, %v3594_v13 }
 0x4e0   : > { %v3778_v16 = vmax.f32 %v3762_v12, 0.0  ;;  %3845 = vrot.lane.b32.xlu0 %v3808_v11, %s9064_s16 }
 0x4e1   : > { %v3777_v18 = vmax.f32 %v3761_v15, 0.0  ;;  %3843 = vrot.lane.b32.xlu1 %v3807_v14, %s9064_s16  ;;  %v7061_v19 = vpop.f32.mrb[12].mxu1 }
 0x4e2   : > { %v3810_v21 = vmul.f32 %v9635_v55, %v3778_v16  ;;  %v3764_v22 = vadd.f32 %v7061_v19, %v3723_v4  ;;  %v3604_v23 = vpop.f32.mrb[13].mxu1 }
 0x4e3   : > { %v3809_v24 = vmul.f32 %v9635_v55, %v3777_v18  ;;  %v3763_v25 = vadd.f32 %v3718_v7, %v3604_v23 }
 0x4e4   : > { %v3780_v26 = vmax.f32 %v3764_v22, 0.0  ;;  %3849 = vrot.lane.b32.xlu0 %v3810_v21, %s9064_s16 }
 0x4e5   : > { %v3779_v27 = vmax.f32 %v3763_v25, 0.0  ;;  %3847 = vrot.lane.b32.xlu1 %v3809_v24, %s9064_s16  ;;  %v7064_v28 = vpop.f32.mrb[14].mxu1 }
 0x4e6   : > { %v3812_v29 = vmul.f32 %v9635_v55, %v3780_v26  ;;  %v3766_v30 = vadd.f32 %v7064_v28, %v3733_v17  ;;  %v3614_v31 = vpop.f32.mrb[15].mxu1 }
 0x4e7   : > { %v3811_v33 = vmul.f32 %v9635_v55, %v3779_v27  ;;  %v3765_v34 = vadd.f32 %v3728_v20, %v3614_v31 }
 0x4e8   : > { %v3782_v36 = vmax.f32 %v3766_v30, 0.0  ;;  %3853 = vrot.lane.b32.xlu0 %v3812_v29, %s9064_s16 }
 0x4e9   : > { %v3781_v37 = vmax.f32 %v3765_v34, 0.0  ;;  %3851 = vrot.lane.b32.xlu1 %v3811_v33, %s9064_s16  ;;  %v7067_v38 = vpop.f32.mrb[16].mxu1 }
 0x4ea   : > { %v3814_v39 = vmul.f32 %v9635_v55, %v3782_v36  ;;  %v3768_v40 = vadd.f32 %v7067_v38, %v3743_v32  ;;  %v3624_v41 = vpop.f32.mrb[17].mxu1 }
 0x4eb   : > { %v3813_v42 = vmul.f32 %v9635_v55, %v3781_v37  ;;  %v3767_v43 = vadd.f32 %v3738_v35, %v3624_v41 }
 0x4ec   : > { %v3784_v44 = vmax.f32 %v3768_v40, 0.0  ;;  %3857 = vrot.lane.b32.xlu0 %v3814_v39, %s9064_s16 }
 0x4ed   : > { %v3783_v46 = vmax.f32 %v3767_v43, 0.0  ;;  %3855 = vrot.lane.b32.xlu1 %v3813_v42, %s9064_s16  ;;  %v7070_v47 = vpop.f32.mrb[18].mxu1 }
 0x4ee   : > { %v3816_v49 = vmul.f32 %v9635_v55, %v3784_v44  ;;  %v3770_v50 = vadd.f32 %v7070_v47, %v3753_v45  ;;  %v3634_v51 = vpop.f32.mrb[19].mxu1 }
 0x4ef   : > { %v3815_v52 = vmul.f32 %v9635_v55, %v3783_v46  ;;  %v3769_v53 = vadd.f32 %v3748_v48, %v3634_v51 }
 0x4f0   : > { %v3786_v54 = vmax.f32 %v3770_v50, 0.0  ;;  %3861 = vrot.lane.b32.xlu0 %v3816_v49, %s9064_s16 }
 0x4f1   : > { %v3785_v56 = vmax.f32 %v3769_v53, 0.0  ;;  %3859 = vrot.lane.b32.xlu1 %v3815_v52, %s9064_s16 }
 0x4f2   : > { %v3818_v57 = vmul.f32 %v9635_v55, %v3786_v54 }
 0x4f3   : > { %v3817_v58 = vmul.f32 %v9635_v55, %v3785_v56 }
 0x4f4   : > { %3865 = vrot.lane.b32.xlu0 %v3818_v57, %s9064_s16 }
 0x4f5   : > { %3863 = vrot.lane.b32.xlu1 %v3817_v58, %s9064_s16 }
 0x54a   : > { %v3838_v59 = vpop.permute.xlu0 %3837 }
 0x54b   : > { %3885 = vst.msk [vmem:[#allocation3 + $0x10] sm:$0xff] %vm1435_vm10, %v3838_v59  ;;  %v3836_v60 = vpop.permute.xlu1 %3835 }
 0x54c   : > { %3886 = vst.msk [vmem:[#allocation3 + $0x18] sm:$0xff] %vm1404_vm9, %v3838_v59  ;;  %3884 = vst.msk [vmem:[#allocation3 + $0x8] sm:$0xff] %vm1404_vm9, %v3836_v60 }
 0x54d   : > { %3916 = vst.msk [vmem:[#allocation3 + $0x18] sm:$0xff] %vm1444_vm11, %v9063_v3  ;;  %3915 = vst.msk [vmem:[#allocation3 + $0x8] sm:$0xff] %vm1444_vm11, %v9063_v3 }
 0x54e   : > { %3883 = vst.msk [vmem:[#allocation3] sm:$0xff] %vm1435_vm10, %v3836_v60  ;;  %v3842_v55 = vpop.permute.xlu0 %3841 }
 0x54f   : > { %3889 = vst.msk [vmem:[#allocation3 + $0x30] sm:$0xff] %vm1435_vm10, %v3842_v55  ;;  %v3840_v61 = vpop.permute.xlu1 %3839 }
 0x550   : > { %3890 = vst.msk [vmem:[#allocation3 + $0x38] sm:$0xff] %vm1404_vm9, %v3842_v55  ;;  %3888 = vst.msk [vmem:[#allocation3 + $0x28] sm:$0xff] %vm1404_vm9, %v3840_v61 }
 0x551   : > { %3918 = vst.msk [vmem:[#allocation3 + $0x38] sm:$0xff] %vm1444_vm11, %v9063_v3  ;;  %3917 = vst.msk [vmem:[#allocation3 + $0x28] sm:$0xff] %vm1444_vm11, %v9063_v3 }
 0x552   : > { %3887 = vst.msk [vmem:[#allocation3 + $0x20] sm:$0xff] %vm1435_vm10, %v3840_v61  ;;  %v3846_v62 = vpop.permute.xlu0 %3845  ;;  %v3940_v63 = vld [vmem:[#allocation3 + $0x10] sm:$0xff] }
 0x553   : > { %3893 = vst.msk [vmem:[#allocation3 + $0x50] sm:$0xff] %vm1435_vm10, %v3846_v62  ;;  %v3844_v1 = vpop.permute.xlu1 %3843 }
 0x554   : > { %3894 = vst.msk [vmem:[#allocation3 + $0x58] sm:$0xff] %vm1404_vm9, %v3846_v62  ;;  %v3965_v4 = vld [vmem:[#allocation3 + $0x18] sm:$0xff]  ;;  %3892 = vst.msk [vmem:[#allocation3 + $0x48] sm:$0xff] %vm1404_vm9, %v3844_v1  ;;  %v3964_v7 = vld [vmem:[#allocation3 + $0x8] sm:$0xff] }
 0x555   : > { %v3939_v2 = vld [vmem:[#allocation3] sm:$0xff]  ;;  %3920 = vst.msk [vmem:[#allocation3 + $0x58] sm:$0xff] %vm1444_vm11, %v9063_v3  ;;  %v9694_v6 = vpack.i.bf16 %v3965_v4, %v3940_v63  ;;  %3919 = vst.msk [vmem:[#allocation3 + $0x48] sm:$0xff] %vm1444_vm11, %v9063_v3  ;;  %v3932_v4 = vld [vmem:[%s10588_s6 + $0x8] sm:$0xff] }
 0x556   : > { %3891 = vst.msk [vmem:[#allocation3 + $0x40] sm:$0xff] %vm1435_vm10, %v3844_v1  ;;  %v7571_v5 = vpack.c.bf16 %v3940_v63, %v3939_v2  ;;  %v9698_v8 = vpack.i.bf16 %v3964_v7, %v3939_v2  ;;  %v3850_v9 = vpop.permute.xlu0 %3849  ;;  %v3942_v10 = vld [vmem:[#allocation3 + $0x30] sm:$0xff]  ;;  %v3934_v7 = vld [vmem:[%s10588_s6 + $0x18] sm:$0xff] }
 0x557   : > { %8276 = vrot.lane.b32.xlu0 %v9694_v6, %s9059_s23  ;;  %3897 = vst.msk [vmem:[#allocation3 + $0x70] sm:$0xff] %vm1435_vm10, %v3850_v9  ;;  %v3848_v11 = vpop.permute.xlu1 %3847 }
 0x558   : > { %7572 = vmatprep.subr.bf16.mxu0 %v7571_v5  ;;  %3898 = vst.msk [vmem:[#allocation3 + $0x78] sm:$0xff] %vm1404_vm9, %v3850_v9  ;;  %8291 = vrot.lane.b32.xlu1 %v9698_v8, %s9059_s23  ;;  %v3967_v13 = vld [vmem:[#allocation3 + $0x38] sm:$0xff]  ;;  %3896 = vst.msk [vmem:[#allocation3 + $0x68] sm:$0xff] %vm1404_vm9, %v3848_v11  ;;  %v3966_v15 = vld [vmem:[#allocation3 + $0x28] sm:$0xff] }
 0x559   : > { %7574 = vmatpush3.bf16.msra.mxu0 %v7571_v5  ;;  %v3941_v12 = vld [vmem:[#allocation3 + $0x20] sm:$0xff]  ;;  %3922 = vst.msk [vmem:[#allocation3 + $0x78] sm:$0xff] %vm1444_vm11, %v9063_v3  ;;  %3921 = vst.msk [vmem:[#allocation3 + $0x68] sm:$0xff] %vm1444_vm11, %v9063_v3  ;;  %v9716_v19 = vpack.i.bf16 %v3967_v13, %v3942_v10  ;;  %v3933_v5 = vld [vmem:[%s10588_s6 + $0x10] sm:$0xff] }
 0x55a   : > { %3895 = vst.msk [vmem:[#allocation3 + $0x60] sm:$0xff] %vm1435_vm10, %v3848_v11  ;;  %v7575_v14 = vpack.c.bf16 %v3942_v10, %v3941_v12  ;;  %v9712_v16 = vpack.i.bf16 %v3966_v15, %v3941_v12  ;;  %v3854_v17 = vpop.permute.xlu0 %3853  ;;  %v3944_v18 = vld [vmem:[#allocation3 + $0x50] sm:$0xff]  ;;  %v3935_v9 = vld [vmem:[%s10588_s6 + $0x20] sm:$0xff]  ;;  %v3936_v10 = vld [vmem:[%s10588_s6 + $0x28] sm:$0xff] }
 0x55b   : > { %8281 = vrot.lane.b32.xlu0 %v9694_v6, %s9055_s30  ;;  %3901 = vst.msk [vmem:[#allocation3 + $0x90] sm:$0xff] %vm1435_vm10, %v3854_v17  ;;  %v3852_v20 = vpop.permute.xlu1 %3851  ;;  %v3937_v11 = vld [vmem:[%s10588_s6 + $0x30] sm:$0xff]  ;;  %v3938_v12 = vld [vmem:[%s10588_s6 + $0x38] sm:$0xff]  ;;  %v6210_v13 = vld [vmem:[%s10588_s6 + $0x80] sm:$0xff] }
 0x55c   : > { %7576 = vmatprep.subr.bf16.mxu0 %v7575_v14  ;;  %3902 = vst.msk [vmem:[#allocation3 + $0x98] sm:$0xff] %vm1404_vm9, %v3854_v17  ;;  %8296 = vrot.lane.b32.xlu1 %v9698_v8, %s9055_s30  ;;  %v3969_v22 = vld [vmem:[#allocation3 + $0x58] sm:$0xff]  ;;  %3900 = vst.msk [vmem:[#allocation3 + $0x88] sm:$0xff] %vm1404_vm9, %v3852_v20  ;;  %v3968_v24 = vld [vmem:[#allocation3 + $0x48] sm:$0xff] }
 0x55d   : > { %7578 = vmatpush3.bf16.msra.mxu0 %v7575_v14  ;;  %v3943_v21 = vld [vmem:[#allocation3 + $0x40] sm:$0xff]  ;;  %3924 = vst.msk [vmem:[#allocation3 + $0x98] sm:$0xff] %vm1444_vm11, %v9063_v3  ;;  %3923 = vst.msk [vmem:[#allocation3 + $0x88] sm:$0xff] %vm1444_vm11, %v9063_v3  ;;  %v9730_v27 = vpack.i.bf16 %v3969_v22, %v3944_v18 }
 0x55e   : > { %3899 = vst.msk [vmem:[#allocation3 + $0x80] sm:$0xff] %vm1435_vm10, %v3852_v20  ;;  %v7579_v23 = vpack.c.bf16 %v3944_v18, %v3943_v21  ;;  %v3858_v25 = vpop.permute.xlu0 %3857  ;;  %v3946_v26 = vld [vmem:[#allocation3 + $0x70] sm:$0xff]  ;;  %v9732_v28 = vpack.i.bf16 %v3968_v24, %v3943_v21 }
 0x55f   : > { %8286 = vrot.lane.b32.xlu0 %v9694_v6, %s9054_s26  ;;  %3905 = vst.msk [vmem:[#allocation3 + $0xb0] sm:$0xff] %vm1435_vm10, %v3858_v25  ;;  %v3856_v29 = vpop.permute.xlu1 %3855 }
 0x560   : > { %7580 = vmatprep.subr.bf16.mxu0 %v7579_v23  ;;  %3906 = vst.msk [vmem:[#allocation3 + $0xb8] sm:$0xff] %vm1404_vm9, %v3858_v25  ;;  %8301 = vrot.lane.b32.xlu1 %v9698_v8, %s9054_s26  ;;  %v3971_v31 = vld [vmem:[#allocation3 + $0x78] sm:$0xff]  ;;  %3904 = vst.msk [vmem:[#allocation3 + $0xa8] sm:$0xff] %vm1404_vm9, %v3856_v29  ;;  %v3970_v33 = vld [vmem:[#allocation3 + $0x68] sm:$0xff] }
 0x561   : > { %7582 = vmatpush3.bf16.msra.mxu0 %v7579_v23  ;;  %v3945_v30 = vld [vmem:[#allocation3 + $0x60] sm:$0xff]  ;;  %3926 = vst.msk [vmem:[#allocation3 + $0xb8] sm:$0xff] %vm1444_vm11, %v9063_v3  ;;  %3925 = vst.msk [vmem:[#allocation3 + $0xa8] sm:$0xff] %vm1444_vm11, %v9063_v3  ;;  %v9748_v37 = vpack.i.bf16 %v3971_v31, %v3946_v26 }
 0x562   : > { %3903 = vst.msk [vmem:[#allocation3 + $0xa0] sm:$0xff] %vm1435_vm10, %v3856_v29  ;;  %v7583_v32 = vpack.c.bf16 %v3946_v26, %v3945_v30  ;;  %v3862_v34 = vpop.permute.xlu0 %3861  ;;  %v3948_v35 = vld [vmem:[#allocation3 + $0x90] sm:$0xff]  ;;  %v9746_v36 = vpack.i.bf16 %v3970_v33, %v3945_v30 }
 0x563   : > { %8306 = vrot.lane.b32.xlu0 %v9716_v19, %s9059_s23  ;;  %3909 = vst.msk [vmem:[#allocation3 + $0xd0] sm:$0xff] %vm1435_vm10, %v3862_v34  ;;  %v3860_v38 = vpop.permute.xlu1 %3859 }
 0x564   : > { %7584 = vmatprep.subr.bf16.mxu0 %v7583_v32  ;;  %3910 = vst.msk [vmem:[#allocation3 + $0xd8] sm:$0xff] %vm1404_vm9, %v3862_v34  ;;  %8321 = vrot.lane.b32.xlu1 %v9712_v16, %s9059_s23  ;;  %v3973_v40 = vld [vmem:[#allocation3 + $0x98] sm:$0xff]  ;;  %3908 = vst.msk [vmem:[#allocation3 + $0xc8] sm:$0xff] %vm1404_vm9, %v3860_v38  ;;  %v3972_v42 = vld [vmem:[#allocation3 + $0x88] sm:$0xff] }
 0x565   : > { %7586 = vmatpush3.bf16.msra.mxu0 %v7583_v32  ;;  %v3947_v39 = vld [vmem:[#allocation3 + $0x80] sm:$0xff]  ;;  %3928 = vst.msk [vmem:[#allocation3 + $0xd8] sm:$0xff] %vm1444_vm11, %v9063_v3  ;;  %3927 = vst.msk [vmem:[#allocation3 + $0xc8] sm:$0xff] %vm1444_vm11, %v9063_v3  ;;  %v9760_v43 = vpack.i.bf16 %v3973_v40, %v3948_v35 }
 0x566   : > { %3907 = vst.msk [vmem:[#allocation3 + $0xc0] sm:$0xff] %vm1435_vm10, %v3860_v38  ;;  %v7587_v41 = vpack.c.bf16 %v3948_v35, %v3947_v39  ;;  %v3866_v44 = vpop.permute.xlu0 %3865  ;;  %v3950_v45 = vld [vmem:[#allocation3 + $0xb0] sm:$0xff]  ;;  %v9764_v46 = vpack.i.bf16 %v3972_v42, %v3947_v39 }
 0x567   : > { %8311 = vrot.lane.b32.xlu0 %v9716_v19, %s9055_s30  ;;  %3913 = vst.msk [vmem:[#allocation3 + $0xf0] sm:$0xff] %vm1435_vm10, %v3866_v44  ;;  %v3864_v47 = vpop.permute.xlu1 %3863 }
 0x568   : > { %7588 = vmatprep.subr.bf16.mxu0 %v7587_v41  ;;  %3914 = vst.msk [vmem:[#allocation3 + $0xf8] sm:$0xff] %vm1404_vm9, %v3866_v44  ;;  %8326 = vrot.lane.b32.xlu1 %v9712_v16, %s9055_s30  ;;  %v3975_v49 = vld [vmem:[#allocation3 + $0xb8] sm:$0xff]  ;;  %3912 = vst.msk [vmem:[#allocation3 + $0xe8] sm:$0xff] %vm1404_vm9, %v3864_v47  ;;  %v3974_v51 = vld [vmem:[#allocation3 + $0xa8] sm:$0xff] }
 0x569   : > { %7590 = vmatpush3.bf16.msra.mxu0 %v7587_v41  ;;  %v3949_v48 = vld [vmem:[#allocation3 + $0xa0] sm:$0xff]  ;;  %3930 = vst.msk [vmem:[#allocation3 + $0xf8] sm:$0xff] %vm1444_vm11, %v9063_v3  ;;  %3929 = vst.msk [vmem:[#allocation3 + $0xe8] sm:$0xff] %vm1444_vm11, %v9063_v3  ;;  %v9776_v52 = vpack.i.bf16 %v3975_v49, %v3950_v45 }
 0x56a   : > { %3911 = vst.msk [vmem:[#allocation3 + $0xe0] sm:$0xff] %vm1435_vm10, %v3864_v47  ;;  %v7591_v50 = vpack.c.bf16 %v3950_v45, %v3949_v48  ;;  %v3952_v53 = vld [vmem:[#allocation3 + $0xd0] sm:$0xff]  ;;  %v9780_v54 = vpack.i.bf16 %v3974_v51, %v3949_v48 }
 0x56b   : > { %8316 = vrot.lane.b32.xlu0 %v9716_v19, %s9054_s26 }
 0x56c   : > { %7592 = vmatprep.subr.bf16.mxu0 %v7591_v50  ;;  %8331 = vrot.lane.b32.xlu1 %v9712_v16, %s9054_s26  ;;  %v3977_v57 = vld [vmem:[#allocation3 + $0xd8] sm:$0xff]  ;;  %v3976_v59 = vld [vmem:[#allocation3 + $0xc8] sm:$0xff] }
 0x56d   : > { %7594 = vmatpush3.bf16.msra.mxu0 %v7591_v50  ;;  %v3951_v56 = vld [vmem:[#allocation3 + $0xc0] sm:$0xff]  ;;  %v9784_v60 = vpack.i.bf16 %v3977_v57, %v3952_v53 }
 0x56e   : > { %v7595_v58 = vpack.c.bf16 %v3952_v53, %v3951_v56  ;;  %v3954_v3 = vld [vmem:[#allocation3 + $0xf0] sm:$0xff]  ;;  %v9788_v55 = vpack.i.bf16 %v3976_v59, %v3951_v56 }
 0x56f   : > { %8336 = vrot.lane.b32.xlu0 %v9730_v27, %s9059_s23 }
 0x570   : > { %7596 = vmatprep.subr.bf16.mxu0 %v7595_v58  ;;  %8351 = vrot.lane.b32.xlu1 %v9732_v28, %s9059_s23  ;;  %v3979_v62 = vld [vmem:[#allocation3 + $0xf8] sm:$0xff]  ;;  %v3978_v0 = vld [vmem:[#allocation3 + $0xe8] sm:$0xff] }
 0x571   : > { %7598 = vmatpush3.bf16.msra.mxu0 %v7595_v58  ;;  %v3953_v61 = vld [vmem:[#allocation3 + $0xe0] sm:$0xff]  ;;  %v9794_v2 = vpack.i.bf16 %v3979_v62, %v3954_v3 }
 0x572   : > { %v7599_v63 = vpack.c.bf16 %v3954_v3, %v3953_v61  ;;  %v9792_v1 = vpack.i.bf16 %v3978_v0, %v3953_v61 }
 0x573   : > { %8341 = vrot.lane.b32.xlu0 %v9730_v27, %s9055_s30 }
 0x574   : > { %7600 = vmatprep.subr.bf16.mxu0 %v7599_v63  ;;  %8356 = vrot.lane.b32.xlu1 %v9732_v28, %s9055_s30 }
 0x575   : > { %7602 = vmatpush3.bf16.msra.mxu0 %v7599_v63 }
 0x577   : > { %8346 = vrot.lane.b32.xlu0 %v9730_v27, %s9054_s26 }
 0x578   : > { %7148 = vmatmul.mubr.f32.vlgmr.msra.gmra.mrb[4].mxu0 %v3932_v4  ;;  %8361 = vrot.lane.b32.xlu1 %v9732_v28, %s9054_s26 }
 0x579   : > { %7150 = vmatprep.mubr.f32.mxu0 %v3933_v5 }
 0x57b   : > { %8366 = vrot.lane.b32.xlu0 %v9748_v37, %s9059_s23 }
 0x57c   : > { %8381 = vrot.lane.b32.xlu1 %v9746_v36, %s9059_s23  ;;  %7151 = vmatmul.mubr.f32.gmra.mrb[6].mxu0 %v3934_v7 }
 0x57d   : > { %7153 = vmatprep.mubr.f32.mxu0 %v3935_v9 }
 0x57f   : > { %8371 = vrot.lane.b32.xlu0 %v9748_v37, %s9055_s30 }
 0x580   : > { %8386 = vrot.lane.b32.xlu1 %v9746_v36, %s9055_s30  ;;  %7154 = vmatmul.mubr.f32.gmra.mrb[8].mxu0 %v3936_v10 }
 0x581   : > { %7156 = vmatprep.mubr.f32.mxu0 %v3937_v11 }
 0x583   : > { %8376 = vrot.lane.b32.xlu0 %v9748_v37, %s9054_s26 }
 0x584   : > { %8391 = vrot.lane.b32.xlu1 %v9746_v36, %s9054_s26  ;;  %7157 = vmatmul.mubr.f32.gmra.mrb[10].mxu0 %v3938_v12 }
 0x585   : > { %7191 = vmatprep.mubr.f32.mxu0 %v6210_v13 }
 0x587   : > { %8396 = vrot.lane.b32.xlu0 %v9760_v43, %s9055_s30 }
 0x588   : > { %8401 = vrot.lane.b32.xlu1 %v9764_v46, %s9055_s30 }
 0x58b   : > { %8406 = vrot.lane.b32.xlu0 %v9776_v52, %s9055_s30 }
 0x58c   : > { %8411 = vrot.lane.b32.xlu1 %v9780_v54, %s9055_s30 }
 0x58f   : > { %8416 = vrot.lane.b32.xlu0 %v9784_v60, %s9055_s30 }
 0x590   : > { %8421 = vrot.lane.b32.xlu1 %v9788_v55, %s9055_s30 }
 0x593   : > { %8426 = vrot.lane.b32.xlu0 %v9794_v2, %s9055_s30 }
 0x594   : > { %8431 = vrot.lane.b32.xlu1 %v9792_v1, %s9055_s30 }
 0x597   : > { %8441 = vrot.lane.b32.xlu0 %v9760_v43, %s9054_s26 }
 0x598   : > { %8436 = vrot.lane.b32.xlu1 %v9764_v46, %s9054_s26 }
 0x59b   : > { %8451 = vrot.lane.b32.xlu0 %v9776_v52, %s9054_s26 }
 0x59c   : > { %8446 = vrot.lane.b32.xlu1 %v9780_v54, %s9054_s26 }
 0x59f   : > { %8461 = vrot.lane.b32.xlu0 %v9784_v60, %s9054_s26 }
 0x5a0   : > { %8456 = vrot.lane.b32.xlu1 %v9788_v55, %s9054_s26 }
 0x5a3   : > { %8466 = vrot.lane.b32.xlu0 %v9794_v2, %s9054_s26 }
 0x5a4   : > { %8471 = vrot.lane.b32.xlu1 %v9698_v8, %s9056_s20 }
 0x5a7   : > { %8476 = vrot.lane.b32.xlu0 %v9694_v6, %s9056_s20 }
 0x5a8   : > { %8481 = vrot.lane.b32.xlu1 %v9712_v16, %s9056_s20 }
 0x5ab   : > { %8486 = vrot.lane.b32.xlu0 %v9716_v19, %s9056_s20 }
 0x5ac   : > { %8491 = vrot.lane.b32.xlu1 %v9732_v28, %s9056_s20 }
 0x5af   : > { %8496 = vrot.lane.b32.xlu0 %v9730_v27, %s9056_s20 }
 0x5b0   : > { %8501 = vrot.lane.b32.xlu1 %v9746_v36, %s9056_s20 }
 0x5b3   : > { %8506 = vrot.lane.b32.xlu0 %v9748_v37, %s9056_s20 }
 0x5b4   : > { %8511 = vrot.lane.b32.xlu1 %v9792_v1, %s9054_s26 }
 0x5b7   : > { %8521 = vrot.lane.b32.xlu0 %v9760_v43, %s9056_s20 }
 0x5b8   : > { %8516 = vrot.lane.b32.xlu1 %v9764_v46, %s9056_s20 }
 0x5bb   : > { %8531 = vrot.lane.b32.xlu0 %v9776_v52, %s9056_s20 }
 0x5bc   : > { %8526 = vrot.lane.b32.xlu1 %v9780_v54, %s9056_s20 }
 0x5bf   : > { %8541 = vrot.lane.b32.xlu0 %v9784_v60, %s9056_s20 }
 0x5c0   : > { %8536 = vrot.lane.b32.xlu1 %v9788_v55, %s9056_s20 }
 0x5c3   : > { %8546 = vrot.lane.b32.xlu0 %v9794_v2, %s9056_s20 }
 0x5c4   : > { %8551 = vrot.lane.b32.xlu1 %v9698_v8, %s9057_s11 }
 0x5c7   : > { %8556 = vrot.lane.b32.xlu0 %v9694_v6, %s9057_s11 }
 0x5c8   : > { %8561 = vrot.lane.b32.xlu1 %v9712_v16, %s9057_s11 }
 0x5c9   : > { %v8277_v14 = vpop.permute.xlu0 %8276 }
 0x5ca   : > { %v8279_v15 = vunpack.i.h.bf16 %v8277_v14  ;;  %v8278_v17 = vunpack.i.l.bf16 %v8277_v14  ;;  %v8292_v18 = vpop.permute.xlu1 %8291 }
 0x5cb   : > { %v8294_v20 = vunpack.i.h.bf16 %v8292_v18  ;;  %v8293_v21 = vunpack.i.l.bf16 %v8292_v18  ;;  %8566 = vrot.lane.b32.xlu0 %v9716_v19, %s9057_s11 }
 0x5cc   : > { %8571 = vrot.lane.b32.xlu1 %v9732_v28, %s9057_s11  ;;  %v4077_v22 = vsel %vm383_vm5, %v8278_v17, %v8279_v15 }
 0x5cd   : > { %v8282_v23 = vpop.permute.xlu0 %8281  ;;  %v4076_v24 = vsel %vm383_vm5, %v8293_v21, %v8294_v20 }
 0x5ce   : > { %v8284_v25 = vunpack.i.h.bf16 %v8282_v23  ;;  %v8283_v26 = vunpack.i.l.bf16 %v8282_v23  ;;  %v8297_v29 = vpop.permute.xlu1 %8296  ;;  %v7539_v30 = vpack.c.bf16 %v4077_v22, %v4076_v24 }
 0x5cf   : > { %v8299_v31 = vunpack.i.h.bf16 %v8297_v29  ;;  %v8298_v32 = vunpack.i.l.bf16 %v8297_v29  ;;  %8576 = vrot.lane.b32.xlu0 %v9730_v27, %s9057_s11 }
 0x5d0   : > { %8581 = vrot.lane.b32.xlu1 %v9746_v36, %s9057_s11  ;;  %7540 = vmatprep.subr.bf16.mxu1 %v7539_v30  ;;  %v4392_v33 = vsel %vm590_vm1, %v8283_v26, %v8284_v25 }
 0x5d1   : > { %v9919_v34 = vpop.permute.xlu0 %8286  ;;  %7542 = vmatpush3.bf16.msra.mxu1 %v7539_v30  ;;  %v4391_v35 = vsel %vm590_vm1, %v8298_v32, %v8299_v31 }
 0x5d2   : > { %v9922_v38 = vpop.permute.xlu1 %8301  ;;  %v7603_v39 = vpack.c.bf16 %v4392_v33, %v4391_v35 }
 0x5d3   : > { %8586 = vrot.lane.b32.xlu0 %v9748_v37, %s9057_s11 }
 0x5d4   : > { %8591 = vrot.lane.b32.xlu1 %v9792_v1, %s9056_s20  ;;  %7604 = vmatprep.subr.bf16.mxu0 %v7603_v39 }
 0x5d5   : > { %v8307_v40 = vpop.permute.xlu0 %8306  ;;  %7606 = vmatpush3.bf16.msra.mxu0 %v7603_v39 }
 0x5d6   : > { %v8309_v41 = vunpack.i.h.bf16 %v8307_v40  ;;  %v8308_v42 = vunpack.i.l.bf16 %v8307_v40  ;;  %v8322_v44 = vpop.permute.xlu1 %8321 }
 0x5d7   : > { %v8324_v45 = vunpack.i.h.bf16 %v8322_v44  ;;  %v8323_v47 = vunpack.i.l.bf16 %v8322_v44  ;;  %8601 = vrot.lane.b32.xlu0 %v9760_v43, %s9057_s11 }
 0x5d8   : > { %8596 = vrot.lane.b32.xlu1 %v9764_v46, %s9057_s11  ;;  %v4079_v48 = vsel %vm383_vm5, %v8308_v42, %v8309_v41 }
 0x5d9   : > { %v8312_v49 = vpop.permute.xlu0 %8311  ;;  %v4078_v50 = vsel %vm383_vm5, %v8323_v47, %v8324_v45 }
 0x5da   : > { %v8314_v51 = vunpack.i.h.bf16 %v8312_v49  ;;  %v8313_v53 = vunpack.i.l.bf16 %v8312_v49  ;;  %v8327_v56 = vpop.permute.xlu1 %8326  ;;  %v7543_v57 = vpack.c.bf16 %v4079_v48, %v4078_v50 }
 0x5db   : > { %v8329_v58 = vunpack.i.h.bf16 %v8327_v56  ;;  %v8328_v59 = vunpack.i.l.bf16 %v8327_v56  ;;  %8611 = vrot.lane.b32.xlu0 %v9776_v52, %s9057_s11 }
 0x5dc   : > { %8606 = vrot.lane.b32.xlu1 %v9780_v54, %s9057_s11  ;;  %7544 = vmatprep.subr.bf16.mxu1 %v7543_v57  ;;  %v4394_v3 = vsel %vm590_vm1, %v8313_v53, %v8314_v51 }
 0x5dd   : > { %v9939_v61 = vpop.permute.xlu0 %8316  ;;  %7546 = vmatpush3.bf16.msra.mxu1 %v7543_v57  ;;  %v4393_v62 = vsel %vm590_vm1, %v8328_v59, %v8329_v58 }
 0x5de   : > { %v9942_v63 = vpop.permute.xlu1 %8331  ;;  %v7607_v0 = vpack.c.bf16 %v4394_v3, %v4393_v62 }
 0x5df   : > { %8621 = vrot.lane.b32.xlu0 %v9784_v60, %s9057_s11 }
 0x5e0   : > { %8616 = vrot.lane.b32.xlu1 %v9788_v55, %s9057_s11  ;;  %7608 = vmatprep.subr.bf16.mxu0 %v7607_v0 }
 0x5e1   : > { %v8337_v4 = vpop.permute.xlu0 %8336  ;;  %7610 = vmatpush3.bf16.msra.mxu0 %v7607_v0 }
 0x5e2   : > { %v8339_v5 = vunpack.i.h.bf16 %v8337_v4  ;;  %v8338_v7 = vunpack.i.l.bf16 %v8337_v4  ;;  %v8352_v9 = vpop.permute.xlu1 %8351 }
 0x5e3   : > { %v8354_v10 = vunpack.i.h.bf16 %v8352_v9  ;;  %v8353_v11 = vunpack.i.l.bf16 %v8352_v9  ;;  %8626 = vrot.lane.b32.xlu0 %v9794_v2, %s9057_s11 }
 0x5e4   : > { %8631 = vrot.lane.b32.xlu1 %v9698_v8, %s9058_s21  ;;  %v4081_v12 = vsel %vm383_vm5, %v8338_v7, %v8339_v5 }
 0x5e5   : > { %v8342_v13 = vpop.permute.xlu0 %8341  ;;  %v4080_v14 = vsel %vm383_vm5, %v8353_v11, %v8354_v10 }
 0x5e6   : > { %v8344_v15 = vunpack.i.h.bf16 %v8342_v13  ;;  %v8343_v17 = vunpack.i.l.bf16 %v8342_v13  ;;  %v8357_v18 = vpop.permute.xlu1 %8356  ;;  %v7547_v20 = vpack.c.bf16 %v4081_v12, %v4080_v14 }
 0x5e7   : > { %v8359_v21 = vunpack.i.h.bf16 %v8357_v18  ;;  %v8358_v22 = vunpack.i.l.bf16 %v8357_v18  ;;  %8636 = vrot.lane.b32.xlu0 %v9694_v6, %s9058_s21 }
 0x5e8   : > { %8641 = vrot.lane.b32.xlu1 %v9712_v16, %s9058_s21  ;;  %7548 = vmatprep.subr.bf16.mxu1 %v7547_v20  ;;  %v4396_v23 = vsel %vm590_vm1, %v8343_v17, %v8344_v15 }
 0x5e9   : > { %v9959_v24 = vpop.permute.xlu0 %8346  ;;  %7550 = vmatpush3.bf16.msra.mxu1 %v7547_v20  ;;  %v4395_v25 = vsel %vm590_vm1, %v8358_v22, %v8359_v21 }
 0x5ea   : > { %v9962_v26 = vpop.permute.xlu1 %8361  ;;  %v7611_v29 = vpack.c.bf16 %v4396_v23, %v4395_v25 }
 0x5eb   : > { %8646 = vrot.lane.b32.xlu0 %v9716_v19, %s9058_s21 }
 0x5ec   : > { %8651 = vrot.lane.b32.xlu1 %v9732_v28, %s9058_s21  ;;  %7612 = vmatprep.subr.bf16.mxu0 %v7611_v29 }
 0x5ed   : > { %v8367_v30 = vpop.permute.xlu0 %8366  ;;  %7614 = vmatpush3.bf16.msra.mxu0 %v7611_v29 }
 0x5ee   : > { %v8369_v31 = vunpack.i.h.bf16 %v8367_v30  ;;  %v8368_v32 = vunpack.i.l.bf16 %v8367_v30  ;;  %v8382_v33 = vpop.permute.xlu1 %8381 }
 0x5ef   : > { %v8384_v35 = vunpack.i.h.bf16 %v8382_v33  ;;  %v8383_v39 = vunpack.i.l.bf16 %v8382_v33  ;;  %8656 = vrot.lane.b32.xlu0 %v9730_v27, %s9058_s21 }
 0x5f0   : > { %8661 = vrot.lane.b32.xlu1 %v9746_v36, %s9058_s21  ;;  %v4083_v40 = vsel %vm383_vm5, %v8368_v32, %v8369_v31  ;;  %v8289_v32 = vunpack.i.h.bf16 %v9919_v34 }
 0x5f1   : > { %v8372_v41 = vpop.permute.xlu0 %8371  ;;  %v4082_v42 = vsel %vm383_vm5, %v8383_v39, %v8384_v35  ;;  %v8288_v35 = vunpack.i.l.bf16 %v9919_v34  ;;  %v8304_v39 = vunpack.i.h.bf16 %v9922_v38  ;;  %v8318_v34 = vunpack.i.l.bf16 %v9939_v61 }
 0x5f2   : > { %v8374_v44 = vunpack.i.h.bf16 %v8372_v41  ;;  %v8373_v45 = vunpack.i.l.bf16 %v8372_v41  ;;  %v8387_v47 = vpop.permute.xlu1 %8386  ;;  %v7551_v48 = vpack.c.bf16 %v4083_v40, %v4082_v42  ;;  %v8303_v40 = vunpack.i.l.bf16 %v9922_v38 }
 0x5f3   : > { %v8389_v49 = vunpack.i.h.bf16 %v8387_v47  ;;  %v8388_v50 = vunpack.i.l.bf16 %v8387_v47  ;;  %8666 = vrot.lane.b32.xlu0 %v9748_v37, %s9058_s21  ;;  %v8333_v38 = vunpack.i.l.bf16 %v9942_v63 }
 0x5f4   : > { %8671 = vrot.lane.b32.xlu1 %v9792_v1, %s9057_s11  ;;  %7552 = vmatprep.subr.bf16.mxu1 %v7551_v48  ;;  %v4398_v51 = vsel %vm590_vm1, %v8373_v45, %v8374_v44 }
 0x5f5   : > { %v9979_v53 = vpop.permute.xlu0 %8376  ;;  %7554 = vmatpush3.bf16.msra.mxu1 %v7551_v48  ;;  %v4397_v56 = vsel %vm590_vm1, %v8388_v50, %v8389_v49  ;;  %v8319_v49 = vunpack.i.h.bf16 %v9939_v61 }
 0x5f6   : > { %v9982_v57 = vpop.permute.xlu1 %8391  ;;  %v7615_v58 = vpack.c.bf16 %v4398_v51, %v4397_v56  ;;  %v8334_v56 = vunpack.i.h.bf16 %v9942_v63 }
 0x5f7   : > { %8681 = vrot.lane.b32.xlu0 %v9760_v43, %s9058_s21 }
 0x5f8   : > { %8676 = vrot.lane.b32.xlu1 %v9764_v46, %s9058_s21  ;;  %7616 = vmatprep.subr.bf16.mxu0 %v7615_v58 }
 0x5f9   : > { %v8397_v59 = vpop.permute.xlu0 %8396  ;;  %7618 = vmatpush3.bf16.msra.mxu0 %v7615_v58 }
 0x5fa   : > { %v8399_v3 = vunpack.i.h.bf16 %v8397_v59  ;;  %v8398_v62 = vunpack.i.l.bf16 %v8397_v59  ;;  %v8402_v0 = vpop.permute.xlu1 %8401 }
 0x5fb   : > { %v8404_v4 = vunpack.i.h.bf16 %v8402_v0  ;;  %v8403_v5 = vunpack.i.l.bf16 %v8402_v0  ;;  %8691 = vrot.lane.b32.xlu0 %v9776_v52, %s9058_s21  ;;  %v4610_v0 = vsel %vm703_vm2, %v8288_v35, %v8289_v32 }
 0x5fc   : > { %8686 = vrot.lane.b32.xlu1 %v9780_v54, %s9058_s21  ;;  %v4400_v7 = vsel %vm590_vm1, %v8398_v62, %v8399_v3  ;;  %v4609_v62 = vsel %vm703_vm2, %v8303_v40, %v8304_v39 }
 0x5fd   : > { %v8407_v9 = vpop.permute.xlu0 %8406  ;;  %v4399_v10 = vsel %vm590_vm1, %v8403_v5, %v8404_v4  ;;  %v7635_v63 = vpack.c.bf16 %v4610_v0, %v4609_v62  ;;  %v4611_v5 = vsel %vm703_vm2, %v8333_v38, %v8334_v56 }
 0x5fe   : > { %v8409_v11 = vunpack.i.h.bf16 %v8407_v9  ;;  %v8408_v12 = vunpack.i.l.bf16 %v8407_v9  ;;  %v8412_v13 = vpop.permute.xlu1 %8411  ;;  %v7619_v14 = vpack.c.bf16 %v4400_v7, %v4399_v10  ;;  %v4612_v7 = vsel %vm703_vm2, %v8318_v34, %v8319_v49 }
 0x5ff   : > { %v8414_v15 = vunpack.i.h.bf16 %v8412_v13  ;;  %v8413_v17 = vunpack.i.l.bf16 %v8412_v13  ;;  %8701 = vrot.lane.b32.xlu0 %v9784_v60, %s9058_s21  ;;  %v8349_v9 = vunpack.i.h.bf16 %v9959_v24  ;;  %v8348_v10 = vunpack.i.l.bf16 %v9959_v24 }
 0x600   : > { %8696 = vrot.lane.b32.xlu1 %v9788_v55, %s9058_s21  ;;  %7620 = vmatprep.subr.bf16.mxu0 %v7619_v14  ;;  %v4402_v18 = vsel %vm590_vm1, %v8408_v12, %v8409_v11  ;;  %v8364_v11 = vunpack.i.h.bf16 %v9962_v26  ;;  %v8363_v12 = vunpack.i.l.bf16 %v9962_v26  ;;  %v7639_v24 = vpack.c.bf16 %v4612_v7, %v4611_v5 }
 0x601   : > { %v8417_v20 = vpop.permute.xlu0 %8416  ;;  %7622 = vmatpush3.bf16.msra.mxu0 %v7619_v14  ;;  %v4401_v21 = vsel %vm590_vm1, %v8413_v17, %v8414_v15  ;;  %v6211_v14 = vld [vmem:[%s10588_s6 + $0x88] sm:$0xff]  ;;  %v6212_v17 = vld [vmem:[%s10588_s6 + $0x90] sm:$0xff]  ;;  %v8378_v26 = vunpack.i.l.bf16 %v9979_v53 }
 0x602   : > { %v8419_v22 = vunpack.i.h.bf16 %v8417_v20  ;;  %v8418_v23 = vunpack.i.l.bf16 %v8417_v20  ;;  %v8422_v25 = vpop.permute.xlu1 %8421  ;;  %v7623_v29 = vpack.c.bf16 %v4402_v18, %v4401_v21  ;;  %v8379_v18 = vunpack.i.h.bf16 %v9979_v53  ;;  %v6213_v53 = vld [vmem:[%s10588_s6 + $0x98] sm:$0xff] }
 0x603   : > { %v8424_v30 = vunpack.i.h.bf16 %v8422_v25  ;;  %v8423_v31 = vunpack.i.l.bf16 %v8422_v25  ;;  %8706 = vrot.lane.b32.xlu0 %v9794_v2, %s9058_s21  ;;  %v8394_v20 = vunpack.i.h.bf16 %v9982_v57  ;;  %v8393_v21 = vunpack.i.l.bf16 %v9982_v57  ;;  %v6214_v57 = vld [vmem:[%s10588_s6 + $0xa0] sm:$0xff] }
 0x604   : > { %8711 = vrot.lane.b32.xlu1 %v9698_v8, %s9060_s9  ;;  %7624 = vmatprep.subr.bf16.mxu0 %v7623_v29  ;;  %v4404_v33 = vsel %vm590_vm1, %v8418_v23, %v8419_v22  ;;  %v4613_v23 = vsel %vm703_vm2, %v8363_v12, %v8364_v11  ;;  %v4614_v25 = vsel %vm703_vm2, %v8348_v10, %v8349_v9 }
 0x605   : > { %v8427_v41 = vpop.permute.xlu0 %8426  ;;  %7626 = vmatpush3.bf16.msra.mxu0 %v7623_v29  ;;  %v4403_v42 = vsel %vm590_vm1, %v8423_v31, %v8424_v30  ;;  %v7643_v30 = vpack.c.bf16 %v4614_v25, %v4613_v23  ;;  %v4615_v31 = vsel %vm703_vm2, %v8393_v21, %v8394_v20  ;;  %v4616_v32 = vsel %vm703_vm2, %v8378_v26, %v8379_v18 }
 0x606   : > { %v8429_v44 = vunpack.i.h.bf16 %v8427_v41  ;;  %v8428_v45 = vunpack.i.l.bf16 %v8427_v41  ;;  %v8432_v47 = vpop.permute.xlu1 %8431  ;;  %v7627_v48 = vpack.c.bf16 %v4404_v33, %v4403_v42  ;;  %v6215_v42 = vld [vmem:[%s10588_s6 + $0xa8] sm:$0xff] }
 0x607   : > { %v8434_v50 = vunpack.i.h.bf16 %v8432_v47  ;;  %v8433_v51 = vunpack.i.l.bf16 %v8432_v47  ;;  %8716 = vrot.lane.b32.xlu0 %v9694_v6, %s9060_s9  ;;  %v7647_v47 = vpack.c.bf16 %v4616_v32, %v4615_v31 }
 0x608   : > { %8721 = vrot.lane.b32.xlu1 %v9712_v16, %s9060_s9  ;;  %7628 = vmatprep.subr.bf16.mxu0 %v7627_v48  ;;  %v4406_v58 = vsel %vm590_vm1, %v8428_v45, %v8429_v44  ;;  %v6216_v45 = vld [vmem:[%s10588_s6 + $0xb0] sm:$0xff] }
 0x609   : > { %v10019_v59 = vpop.permute.xlu0 %8441  ;;  %7630 = vmatpush3.bf16.msra.mxu0 %v7627_v48  ;;  %v4405_v3 = vsel %vm590_vm1, %v8433_v51, %v8434_v50 }
 0x60a   : > { %v10024_v61 = vpop.permute.xlu1 %8436  ;;  %v7631_v4 = vpack.c.bf16 %v4406_v58, %v4405_v3  ;;  %v8444_v33 = vunpack.i.h.bf16 %v10019_v59  ;;  %v8443_v35 = vunpack.i.l.bf16 %v10019_v59  ;;  %v6217_v58 = vld [vmem:[%s10588_s6 + $0xb8] sm:$0xff]  ;;  %v6218_v3 = vld [vmem:[%s10588_s6 + $0xc0] sm:$0xff] }
 0x60b   : > { %8726 = vrot.lane.b32.xlu0 %v9716_v19, %s9060_s9  ;;  %v8439_v39 = vunpack.i.h.bf16 %v10024_v61  ;;  %v8438_v40 = vunpack.i.l.bf16 %v10024_v61 }
 0x60c   : > { %8731 = vrot.lane.b32.xlu1 %v9732_v28, %s9060_s9  ;;  %7632 = vmatprep.subr.bf16.mxu0 %v7631_v4  ;;  %v4618_v38 = vsel %vm703_vm2, %v8443_v35, %v8444_v33 }
 0x60d   : > { %v10036_v13 = vpop.permute.xlu0 %8451  ;;  %7634 = vmatpush3.bf16.msra.mxu0 %v7631_v4  ;;  %v4617_v56 = vsel %vm703_vm2, %v8438_v40, %v8439_v39 }
 0x60e   : > { %v8447_v15 = vpop.permute.xlu1 %8446  ;;  %7636 = vmatprep.subr.bf16.mxu0 %v7635_v63  ;;  %v8454_v48 = vunpack.i.h.bf16 %v10036_v13  ;;  %v8453_v49 = vunpack.i.l.bf16 %v10036_v13  ;;  %v7651_v62 = vpack.c.bf16 %v4618_v38, %v4617_v56 }
 0x60f   : > { %8736 = vrot.lane.b32.xlu0 %v9730_v27, %s9060_s9  ;;  %v8449_v50 = vunpack.i.h.bf16 %v8447_v15  ;;  %v8448_v51 = vunpack.i.l.bf16 %v8447_v15 }
 0x610   : > { %8741 = vrot.lane.b32.xlu1 %v9746_v36, %s9060_s9  ;;  %7192 = vmatmul.mubr.f32.vlgmr.msra.gmra.mrb[4].mxu0 %v6211_v14  ;;  %v4620_v61 = vsel %vm703_vm2, %v8453_v49, %v8454_v48 }
 0x611   : > { %v10052_v22 = vpop.permute.xlu0 %8461  ;;  %7638 = vmatpush3.bf16.msra.mxu0 %v7635_v63  ;;  %7194 = vmatprep.mubr.f32.mxu0 %v6212_v17  ;;  %v4619_v0 = vsel %vm703_vm2, %v8448_v51, %v8449_v50 }
 0x612   : > { %v8457_v29 = vpop.permute.xlu1 %8456  ;;  %7640 = vmatprep.subr.bf16.mxu0 %v7639_v24  ;;  %v8464_v4 = vunpack.i.h.bf16 %v10052_v22  ;;  %v8463_v63 = vunpack.i.l.bf16 %v10052_v22  ;;  %v7655_v11 = vpack.c.bf16 %v4620_v61, %v4619_v0 }
 0x613   : > { %8746 = vrot.lane.b32.xlu0 %v9748_v37, %s9060_s9  ;;  %v8459_v5 = vunpack.i.h.bf16 %v8457_v29  ;;  %v8458_v7 = vunpack.i.l.bf16 %v8457_v29 }
 0x614   : > { %8751 = vrot.lane.b32.xlu1 %v9792_v1, %s9058_s21  ;;  %7195 = vmatmul.mubr.f32.gmra.mrb[6].mxu0 %v6213_v53  ;;  %v4622_v14 = vsel %vm703_vm2, %v8463_v63, %v8464_v4 }
 0x615   : > { %v10072_v41 = vpop.permute.xlu0 %8466  ;;  %7642 = vmatpush3.bf16.msra.mxu0 %v7639_v24  ;;  %7197 = vmatprep.mubr.f32.mxu0 %v6214_v57  ;;  %v4621_v13 = vsel %vm703_vm2, %v8458_v7, %v8459_v5 }
 0x616   : > { %v10077_v44 = vpop.permute.xlu1 %8471  ;;  %7644 = vmatprep.subr.bf16.mxu0 %v7643_v30  ;;  %v8469_v17 = vunpack.i.h.bf16 %v10072_v41  ;;  %v8468_v24 = vunpack.i.l.bf16 %v10072_v41  ;;  %v7659_v18 = vpack.c.bf16 %v4622_v14, %v4621_v13  ;;  %v6224_v14 = vld [vmem:[%s10588_s6 + $0xf0] sm:$0xff] }
 0x617   : > { %8761 = vrot.lane.b32.xlu0 %v9760_v43, %s9060_s9  ;;  %v8474_v23 = vunpack.i.h.bf16 %v10077_v44  ;;  %v8473_v25 = vunpack.i.l.bf16 %v10077_v44 }
 0x618   : > { %8756 = vrot.lane.b32.xlu1 %v9764_v46, %s9060_s9  ;;  %7198 = vmatmul.mubr.f32.gmra.mrb[8].mxu0 %v6215_v42 }
 0x619   : > { %v8477_v34 = vpop.permute.xlu0 %8476  ;;  %7646 = vmatpush3.bf16.msra.mxu0 %v7643_v30  ;;  %7200 = vmatprep.mubr.f32.mxu0 %v6216_v45 }
 0x61a   : > { %v10093_v59 = vpop.permute.xlu1 %8481  ;;  %7648 = vmatprep.subr.bf16.mxu0 %v7647_v47  ;;  %v8479_v26 = vunpack.i.h.bf16 %v8477_v34  ;;  %v8478_v20 = vunpack.i.l.bf16 %v8477_v34 }
 0x61b   : > { %8771 = vrot.lane.b32.xlu0 %v9776_v52, %s9060_s9  ;;  %v8484_v40 = vunpack.i.h.bf16 %v10093_v59 }
 0x61c   : > { %8766 = vrot.lane.b32.xlu1 %v9780_v54, %s9060_s9  ;;  %7201 = vmatmul.mubr.f32.gmra.mrb[10].mxu0 %v6217_v58  ;;  %v4828_v33 = vsel %vm816_vm3, %v8478_v20, %v8479_v26 }
 0x61d   : > { %v8487_v9 = vpop.permute.xlu0 %8486  ;;  %7650 = vmatpush3.bf16.msra.mxu0 %v7647_v47  ;;  %7235 = vmatprep.mubr.f32.mxu0 %v6218_v3  ;;  %v6219_v47 = vld [vmem:[%s10588_s6 + $0xc8] sm:$0xff]  ;;  %v6221_v3 = vld [vmem:[%s10588_s6 + $0xd8] sm:$0xff] }
 0x61e   : > { %v10106_v10 = vpop.permute.xlu1 %8491  ;;  %7652 = vmatprep.subr.bf16.mxu0 %v7651_v62  ;;  %v8489_v57 = vunpack.i.h.bf16 %v8487_v9  ;;  %v8488_v30 = vunpack.i.l.bf16 %v8487_v9 }
 0x61f   : > { %8781 = vrot.lane.b32.xlu0 %v9784_v60, %s9060_s9  ;;  %v8493_v50 = vunpack.i.l.bf16 %v10106_v10 }
 0x620   : > { %8776 = vrot.lane.b32.xlu1 %v9788_v55, %s9060_s9  ;;  %v4830_v48 = vsel %vm816_vm3, %v8488_v30, %v8489_v57 }
 0x621   : > { %v8497_v12 = vpop.permute.xlu0 %8496  ;;  %7654 = vmatpush3.bf16.msra.mxu0 %v7651_v62 }
 0x622   : > { %v10114_v15 = vpop.permute.xlu1 %8501  ;;  %7656 = vmatprep.subr.bf16.mxu0 %v7655_v11  ;;  %v8499_v42 = vunpack.i.h.bf16 %v8497_v12  ;;  %v8498_v44 = vunpack.i.l.bf16 %v8497_v12 }
 0x623   : > { %8786 = vrot.lane.b32.xlu0 %v9794_v2, %s9060_s9  ;;  %v8503_v62 = vunpack.i.l.bf16 %v10114_v15 }
 0x624   : > { %8791 = vrot.lane.b32.xlu1 %v9698_v8, %s9061_s24  ;;  %v4624_v8 = vsel %vm703_vm2, %v8468_v24, %v8469_v17 }
 0x625   : > { %v8507_v21 = vpop.permute.xlu0 %8506  ;;  %7658 = vmatpush3.bf16.msra.mxu0 %v7655_v11 }
 0x626   : > { %v8512_v22 = vpop.permute.xlu1 %8511  ;;  %7660 = vmatprep.subr.bf16.mxu0 %v7659_v18  ;;  %v8509_v34 = vunpack.i.h.bf16 %v8507_v21  ;;  %v8508_v56 = vunpack.i.l.bf16 %v8507_v21 }
 0x627   : > { %v8514_v53 = vunpack.i.h.bf16 %v8512_v22  ;;  %v8513_v29 = vunpack.i.l.bf16 %v8512_v22  ;;  %8796 = vrot.lane.b32.xlu0 %v9694_v6, %s9061_s24  ;;  %v8483_v6 = vunpack.i.l.bf16 %v10093_v59  ;;  %v4832_v59 = vsel %vm816_vm3, %v8498_v44, %v8499_v42 }
 0x628   : > { %8801 = vrot.lane.b32.xlu1 %v9712_v16, %s9061_s24  ;;  %v4827_v16 = vsel %vm816_vm3, %v8473_v25, %v8474_v23  ;;  %v4834_v63 = vsel %vm816_vm3, %v8508_v56, %v8509_v34  ;;  %v6225_v23 = vld [vmem:[%s10588_s6 + $0xf8] sm:$0xff] }
 0x629   : > { %v10129_v31 = vpop.permute.xlu0 %8521  ;;  %7662 = vmatpush3.bf16.msra.mxu0 %v7659_v18  ;;  %v4623_v32 = vsel %vm703_vm2, %v8513_v29, %v8514_v53  ;;  %v7667_v41 = vpack.c.bf16 %v4828_v33, %v4827_v16  ;;  %v4829_v51 = vsel %vm816_vm3, %v8483_v6, %v8484_v40  ;;  %v6226_v53 = vld [vmem:[%s10588_s6 + $0x100] sm:$0xff] }
 0x62a   : > { %v10133_v35 = vpop.permute.xlu1 %8516  ;;  %v7663_v39 = vpack.c.bf16 %v4624_v8, %v4623_v32  ;;  %v7671_v38 = vpack.c.bf16 %v4830_v48, %v4829_v51  ;;  %v8524_v5 = vunpack.i.h.bf16 %v10129_v31  ;;  %v8523_v7 = vunpack.i.l.bf16 %v10129_v31 }
 0x62b   : > { %8806 = vrot.lane.b32.xlu0 %v9716_v19, %s9061_s24  ;;  %v6220_v19 = vld [vmem:[%s10588_s6 + $0xd0] sm:$0xff]  ;;  %v8519_v9 = vunpack.i.h.bf16 %v10133_v35 }
 0x62c   : > { %8811 = vrot.lane.b32.xlu1 %v9732_v28, %s9061_s24  ;;  %7664 = vmatprep.subr.bf16.mxu0 %v7663_v39  ;;  %v8494_v28 = vunpack.i.h.bf16 %v10106_v10  ;;  %v8518_v10 = vunpack.i.l.bf16 %v10133_v35  ;;  %v4836_v22 = vsel %vm816_vm3, %v8523_v7, %v8524_v5  ;;  %v6227_v5 = vld [vmem:[%s10588_s6 + $0x108] sm:$0xff]  ;;  %v6202_v7 = vld [vmem:[%s10588_s6 + $0x40] sm:$0xff] }
 0x62d   : > { %v10142_v45 = vpop.permute.xlu0 %8531  ;;  %7666 = vmatpush3.bf16.msra.mxu0 %v7663_v39  ;;  %7103 = vmatprep.mubr.f32.mxu1 %v6202_v7 }
 0x62e   : > { %v8527_v49 = vpop.permute.xlu1 %8526  ;;  %7668 = vmatprep.subr.bf16.mxu0 %v7667_v41  ;;  %v4831_v61 = vsel %vm816_vm3, %v8493_v50, %v8494_v28  ;;  %v8534_v17 = vunpack.i.h.bf16 %v10142_v45  ;;  %v8533_v24 = vunpack.i.l.bf16 %v10142_v45  ;;  %v4835_v21 = vsel %vm816_vm3, %v8518_v10, %v8519_v9  ;;  %v6228_v9 = vld [vmem:[%s10588_s6 + $0x110] sm:$0xff] }
 0x62f   : > { %8816 = vrot.lane.b32.xlu0 %v9730_v27, %s9061_s24  ;;  %v8504_v27 = vunpack.i.h.bf16 %v10114_v15  ;;  %v7675_v4 = vpack.c.bf16 %v4832_v59, %v4831_v61  ;;  %v8529_v18 = vunpack.i.h.bf16 %v8527_v49  ;;  %v8528_v26 = vunpack.i.l.bf16 %v8527_v49 }
 0x630   : > { %8821 = vrot.lane.b32.xlu1 %v9746_v36, %s9061_s24  ;;  %7236 = vmatmul.mubr.f32.vlgmr.msra.gmra.mrb[4].mxu0 %v6219_v47  ;;  %v6222_v36 = vld [vmem:[%s10588_s6 + $0xe0] sm:$0xff]  ;;  %v7683_v29 = vpack.c.bf16 %v4836_v22, %v4835_v21  ;;  %v4838_v57 = vsel %vm816_vm3, %v8533_v24, %v8534_v17  ;;  %v6229_v24 = vld [vmem:[%s10588_s6 + $0x118] sm:$0xff] }
 0x631   : > { %v10158_v58 = vpop.permute.xlu0 %8541  ;;  %7670 = vmatpush3.bf16.msra.mxu0 %v7667_v41  ;;  %7238 = vmatprep.mubr.f32.mxu0 %v6220_v19  ;;  %v4833_v13 = vsel %vm816_vm3, %v8503_v62, %v8504_v27  ;;  %v4837_v8 = vsel %vm816_vm3, %v8528_v26, %v8529_v18  ;;  %v6230_v21 = vld [vmem:[%s10588_s6 + $0x120] sm:$0xff] }
 0x632   : > { %v8537_v0 = vpop.permute.xlu1 %8536  ;;  %7672 = vmatprep.subr.bf16.mxu0 %v7671_v38  ;;  %v7679_v15 = vpack.c.bf16 %v4834_v63, %v4833_v13  ;;  %v8544_v30 = vunpack.i.h.bf16 %v10158_v58  ;;  %v8543_v31 = vunpack.i.l.bf16 %v10158_v58 }
 0x633   : > { %8826 = vrot.lane.b32.xlu0 %v9748_v37, %s9061_s24  ;;  %v6223_v37 = vld [vmem:[%s10588_s6 + $0xe8] sm:$0xff]  ;;  %v8539_v32 = vunpack.i.h.bf16 %v8537_v0  ;;  %v8538_v33 = vunpack.i.l.bf16 %v8537_v0 }
 0x634   : > { %8831 = vrot.lane.b32.xlu1 %v9792_v1, %s9060_s9  ;;  %7239 = vmatmul.mubr.f32.gmra.mrb[6].mxu0 %v6221_v3  ;;  %v4840_v6 = vsel %vm816_vm3, %v8543_v31, %v8544_v30  ;;  %s6269_s9 = sshll.u32 %s10604_s28, 6 }
 0x635   : > { %v10179_v11 = vpop.permute.xlu0 %8546  ;;  %7674 = vmatpush3.bf16.msra.mxu0 %v7671_v38  ;;  %7241 = vmatprep.mubr.f32.mxu0 %v6222_v36  ;;  %v4839_v40 = vsel %vm816_vm3, %v8538_v33, %v8539_v32  ;;  %s10569_s10 = scalar_lea.vmem %s10590_s8, %s6269_s9 }
 0x636   : > { %v10184_v12 = vpop.permute.xlu1 %8551  ;;  %7676 = vmatprep.subr.bf16.mxu0 %v7675_v4  ;;  %v8549_v41 = vunpack.i.h.bf16 %v10179_v11  ;;  %v8548_v42 = vunpack.i.l.bf16 %v10179_v11  ;;  %v7691_v44 = vpack.c.bf16 %v4840_v6, %v4839_v40 }
 0x637   : > { %8841 = vrot.lane.b32.xlu0 %v9760_v43, %s9059_s23  ;;  %v8554_v19 = vunpack.i.h.bf16 %v10184_v12  ;;  %v8553_v28 = vunpack.i.l.bf16 %v10184_v12 }
 0x638   : > { %8836 = vrot.lane.b32.xlu1 %v9764_v46, %s9059_s23  ;;  %7242 = vmatmul.mubr.f32.gmra.mrb[8].mxu0 %v6223_v37 }
 0x639   : > { %v8557_v20 = vpop.permute.xlu0 %8556  ;;  %7678 = vmatpush3.bf16.msra.mxu0 %v7675_v4  ;;  %7244 = vmatprep.mubr.f32.mxu0 %v6224_v14  ;;  %v5045_v0 = vsel %vm929_vm4, %v8553_v28, %v8554_v19  ;;  %v5849_v28 = vld [vmem:[#allocation9 + $0x28] sm:$0xff] }
 0x63a   : > { %v10201_v25 = vpop.permute.xlu1 %8561  ;;  %7680 = vmatprep.subr.bf16.mxu0 %v7679_v15  ;;  %v8559_v45 = vunpack.i.h.bf16 %v8557_v20  ;;  %v8558_v47 = vunpack.i.l.bf16 %v8557_v20 }
 0x63b   : > { %8851 = vrot.lane.b32.xlu0 %v9760_v43, %s9061_s24  ;;  %v7687_v43 = vpack.c.bf16 %v4838_v57, %v4837_v8  ;;  %v8564_v27 = vunpack.i.h.bf16 %v10201_v25  ;;  %v8563_v62 = vunpack.i.l.bf16 %v10201_v25  ;;  %v5845_v25 = vld [vmem:[#allocation9 + $0x8] sm:$0xff] }
 0x63c   : > { %8846 = vrot.lane.b32.xlu1 %v9764_v46, %s9061_s24  ;;  %7245 = vmatmul.mubr.f32.gmra.mrb[10].mxu0 %v6225_v23  ;;  %v5046_v58 = vsel %vm929_vm4, %v8558_v47, %v8559_v45  ;;  %v6233_v47 = vld [vmem:[%s10588_s6 + $0x138] sm:$0xff] }
 0x63d   : > { %v8567_v35 = vpop.permute.xlu0 %8566  ;;  %7682 = vmatpush3.bf16.msra.mxu0 %v7679_v15  ;;  %7279 = vmatprep.mubr.f32.mxu0 %v6226_v53  ;;  %v7699_v36 = vpack.c.bf16 %v5046_v58, %v5045_v0  ;;  %v5047_v37 = vsel %vm929_vm4, %v8563_v62, %v8564_v27  ;;  %v5848_v58 = vld [vmem:[#allocation9 + $0x20] sm:$0xff]  ;;  %v5851_v27 = vld [vmem:[#allocation9 + $0x38] sm:$0xff]  ;;  %v5850_v0 = vld [vmem:[#allocation9 + $0x30] sm:$0xff] }
 0x63e   : > { %v10214_v39 = vpop.permute.xlu1 %8571  ;;  %7684 = vmatprep.subr.bf16.mxu0 %v7683_v29  ;;  %v8569_v51 = vunpack.i.h.bf16 %v8567_v35  ;;  %v8568_v34 = vunpack.i.l.bf16 %v8567_v35  ;;  %v6232_v35 = vld [vmem:[%s10588_s6 + $0x130] sm:$0xff] }
 0x63f   : > { %8861 = vrot.lane.b32.xlu0 %v9776_v52, %s9059_s23  ;;  %v8574_v10 = vunpack.i.h.bf16 %v10214_v39  ;;  %v8573_v11 = vunpack.i.l.bf16 %v10214_v39 }
 0x640   : > { %8856 = vrot.lane.b32.xlu1 %v9780_v54, %s9059_s23 }
 0x641   : > { %v10220_v46 = vpop.permute.xlu0 %8576  ;;  %7686 = vmatpush3.bf16.msra.mxu0 %v7683_v29  ;;  %v5049_v22 = vsel %vm929_vm4, %v8573_v11, %v8574_v10 }
 0x642   : > { %v10224_v16 = vpop.permute.xlu1 %8581  ;;  %7688 = vmatprep.subr.bf16.mxu0 %v7687_v43  ;;  %v8579_v61 = vunpack.i.h.bf16 %v10220_v46  ;;  %v8578_v4 = vunpack.i.l.bf16 %v10220_v46 }
 0x643   : > { %8871 = vrot.lane.b32.xlu0 %v9776_v52, %s9061_s24  ;;  %v8584_v18 = vunpack.i.h.bf16 %v10224_v16  ;;  %v8583_v26 = vunpack.i.l.bf16 %v10224_v16  ;;  %v5847_v16 = vld [vmem:[#allocation9 + $0x18] sm:$0xff] }
 0x644   : > { %8866 = vrot.lane.b32.xlu1 %v9780_v54, %s9061_s24  ;;  %v4842_v54 = vsel %vm816_vm3, %v8548_v42, %v8549_v41  ;;  %v5050_v17 = vsel %vm929_vm4, %v8578_v4, %v8579_v61  ;;  %v5846_v42 = vld [vmem:[#allocation9 + $0x10] sm:$0xff] }
 0x645   : > { %v10232_v48 = vpop.permute.xlu0 %8586  ;;  %7690 = vmatpush3.bf16.msra.mxu0 %v7687_v43  ;;  %v7707_v23 = vpack.c.bf16 %v5050_v17, %v5049_v22  ;;  %v5051_v33 = vsel %vm929_vm4, %v8583_v26, %v8584_v18 }
 0x646   : > { %v8592_v49 = vpop.permute.xlu1 %8591  ;;  %7692 = vmatprep.subr.bf16.mxu0 %v7691_v44  ;;  %v8589_v12 = vunpack.i.h.bf16 %v10232_v48  ;;  %v8588_v13 = vunpack.i.l.bf16 %v10232_v48 }
 0x647   : > { %v8594_v52 = vunpack.i.h.bf16 %v8592_v49  ;;  %v8593_v50 = vunpack.i.l.bf16 %v8592_v49  ;;  %8881 = vrot.lane.b32.xlu0 %v9784_v60, %s9059_s23  ;;  %v6234_v49 = vld [vmem:[%s10588_s6 + $0x140] sm:$0xff] }
 0x648   : > { %8876 = vrot.lane.b32.xlu1 %v9788_v55, %s9059_s23  ;;  %v5052_v53 = vsel %vm929_vm4, %v8588_v13, %v8589_v12 }
 0x649   : > { %v10241_v56 = vpop.permute.xlu0 %8601  ;;  %7694 = vmatpush3.bf16.msra.mxu0 %v7691_v44  ;;  %v4841_v38 = vsel %vm816_vm3, %v8593_v50, %v8594_v52  ;;  %v7711_v39 = vpack.c.bf16 %v5052_v53, %v5051_v33 }
 0x64a   : > { %v10245_v59 = vpop.permute.xlu1 %8596  ;;  %v7695_v3 = vpack.c.bf16 %v4842_v54, %v4841_v38  ;;  %v8604_v29 = vunpack.i.h.bf16 %v10241_v56  ;;  %v8603_v8 = vunpack.i.l.bf16 %v10241_v56 }
 0x64b   : > { %8891 = vrot.lane.b32.xlu0 %v9784_v60, %s9061_s24  ;;  %v5048_v60 = vsel %vm929_vm4, %v8568_v34, %v8569_v51  ;;  %v8599_v57 = vunpack.i.h.bf16 %v10245_v59  ;;  %v8598_v30 = vunpack.i.l.bf16 %v10245_v59 }
 0x64c   : > { %8886 = vrot.lane.b32.xlu1 %v9788_v55, %s9061_s24  ;;  %7696 = vmatprep.subr.bf16.mxu0 %v7695_v3  ;;  %v7703_v14 = vpack.c.bf16 %v5048_v60, %v5047_v37  ;;  %v5054_v45 = vsel %vm929_vm4, %v8603_v8, %v8604_v29 }
 0x64d   : > { %v10256_v63 = vpop.permute.xlu0 %8611  ;;  %7698 = vmatpush3.bf16.msra.mxu0 %v7695_v3  ;;  %v5053_v44 = vsel %vm929_vm4, %v8598_v30, %v8599_v57  ;;  %v6235_v30 = vld [vmem:[%s10588_s6 + $0x148] sm:$0xff] }
 0x64e   : > { %v10265_v55 = vpop.permute.xlu1 %8606  ;;  %7700 = vmatprep.subr.bf16.mxu0 %v7699_v36  ;;  %v8614_v43 = vunpack.i.h.bf16 %v10256_v63  ;;  %v8613_v46 = vunpack.i.l.bf16 %v10256_v63  ;;  %v7715_v19 = vpack.c.bf16 %v5054_v45, %v5053_v44  ;;  %v6238_v45 = vld [vmem:[%s10588_s6 + $0x160] sm:$0xff] }
 0x64f   : > { %8896 = vrot.lane.b32.xlu0 %v9794_v2, %s9059_s23  ;;  %v8609_v40 = vunpack.i.h.bf16 %v10265_v55  ;;  %v8608_v6 = vunpack.i.l.bf16 %v10265_v55 }
 0x650   : > { %8901 = vrot.lane.b32.xlu1 %v9792_v1, %s9059_s23  ;;  %7280 = vmatmul.mubr.f32.vlgmr.msra.gmra.mrb[4].mxu0 %v6227_v5  ;;  %v5056_v50 = vsel %vm929_vm4, %v8613_v46, %v8614_v43 }
 0x651   : > { %v10279_v15 = vpop.permute.xlu0 %8621  ;;  %7702 = vmatpush3.bf16.msra.mxu0 %v7699_v36  ;;  %7282 = vmatprep.mubr.f32.mxu0 %v6228_v9  ;;  %v5055_v52 = vsel %vm929_vm4, %v8608_v6, %v8609_v40 }
 0x652   : > { %v10287_v20 = vpop.permute.xlu1 %8616  ;;  %7704 = vmatprep.subr.bf16.mxu0 %v7703_v14  ;;  %v8624_v54 = vunpack.i.h.bf16 %v10279_v15  ;;  %v8623_v51 = vunpack.i.l.bf16 %v10279_v15  ;;  %v7719_v3 = vpack.c.bf16 %v5056_v50, %v5055_v52 }
 0x653   : > { %8911 = vrot.lane.b32.xlu0 %v9794_v2, %s9061_s24  ;;  %v5844_v2 = vld [vmem:[#allocation9] sm:$0xff]  ;;  %v8619_v34 = vunpack.i.h.bf16 %v10287_v20  ;;  %v8618_v56 = vunpack.i.l.bf16 %v10287_v20 }
 0x654   : > { %8906 = vrot.lane.b32.xlu1 %v9792_v1, %s9061_s24  ;;  %7283 = vmatmul.mubr.f32.gmra.mrb[6].mxu0 %v6229_v24  ;;  %v6231_v1 = vld [vmem:[%s10588_s6 + $0x128] sm:$0xff]  ;;  %v5058_v61 = vsel %vm929_vm4, %v8623_v51, %v8624_v54 }
 0x655   : > { %v10302_v31 = vpop.permute.xlu0 %8626  ;;  %7706 = vmatpush3.bf16.msra.mxu0 %v7703_v14  ;;  %7285 = vmatprep.mubr.f32.mxu0 %v6230_v21  ;;  %v5057_v36 = vsel %vm929_vm4, %v8618_v56, %v8619_v34  ;;  %v6239_v51 = vld [vmem:[%s10588_s6 + $0x168] sm:$0xff] }
 0x656   : > { %v10307_v32 = vpop.permute.xlu1 %8631  ;;  %7708 = vmatprep.subr.bf16.mxu0 %v7707_v23  ;;  %v8629_v63 = vunpack.i.h.bf16 %v10302_v31  ;;  %v8628_v5 = vunpack.i.l.bf16 %v10302_v31  ;;  %v7723_v60 = vpack.c.bf16 %v5058_v61, %v5057_v36 }
 0x657   : > { %5859 = vperm.xlu0 %8113, %v5845_v25   ;;  %v8634_v11 = vunpack.i.h.bf16 %v10307_v32  ;;  %v8633_v37 = vunpack.i.l.bf16 %v10307_v32 }
 0x658   : > { %5854 = vperm.xlu1 %8114, %v5844_v2   ;;  %7286 = vmatmul.mubr.f32.gmra.mrb[8].mxu0 %v6231_v1  ;;  %v5060_v14 = vsel %vm929_vm4, %v8628_v5, %v8629_v63  ;;  %v6236_v1 = vld [vmem:[%s10588_s6 + $0x150] sm:$0xff]  ;;  %v6242_v5 = vld [vmem:[%s10588_s6 + $0x180] sm:$0xff] }
 0x659   : > { %v8637_v41 = vpop.permute.xlu0 %8636  ;;  %7710 = vmatpush3.bf16.msra.mxu0 %v7707_v23  ;;  %7288 = vmatprep.mubr.f32.mxu0 %v6232_v35  ;;  %v5263_v25 = vsel %vm1042_vm6, %v8633_v37, %v8634_v11 }
 0x65a   : > { %v10322_v48 = vpop.permute.xlu1 %8641  ;;  %7712 = vmatprep.subr.bf16.mxu0 %v7711_v39  ;;  %v8639_v7 = vunpack.i.h.bf16 %v8637_v41  ;;  %v8638_v55 = vunpack.i.l.bf16 %v8637_v41 }
 0x65b   : > { %5869 = vperm.xlu0 %8113, %v5847_v16   ;;  %v8644_v22 = vunpack.i.h.bf16 %v10322_v48  ;;  %v8643_v23 = vunpack.i.l.bf16 %v10322_v48  ;;  %v6237_v16 = vld [vmem:[%s10588_s6 + $0x158] sm:$0xff] }
 0x65c   : > { %5864 = vperm.xlu1 %8114, %v5846_v42   ;;  %7289 = vmatmul.mubr.f32.gmra.mrb[10].mxu0 %v6233_v47  ;;  %v5264_v26 = vsel %vm1042_vm6, %v8638_v55, %v8639_v7 }
 0x65d   : > { %v8647_v38 = vpop.permute.xlu0 %8646  ;;  %7714 = vmatpush3.bf16.msra.mxu0 %v7711_v39  ;;  %7323 = vmatprep.mubr.f32.mxu0 %v6234_v49  ;;  %v7731_v53 = vpack.c.bf16 %v5264_v26, %v5263_v25  ;;  %v5265_v35 = vsel %vm1042_vm6, %v8643_v23, %v8644_v22 }
 0x65e   : > { %v10333_v59 = vpop.permute.xlu1 %8651  ;;  %7716 = vmatprep.subr.bf16.mxu0 %v7715_v19  ;;  %v8649_v15 = vunpack.i.h.bf16 %v8647_v38  ;;  %v8648_v17 = vunpack.i.l.bf16 %v8647_v38  ;;  %v6240_v38 = vld [vmem:[%s10588_s6 + $0x170] sm:$0xff] }
 0x65f   : > { %5879 = vperm.xlu0 %8113, %v5849_v28   ;;  %v8654_v32 = vunpack.i.h.bf16 %v10333_v59  ;;  %v8653_v33 = vunpack.i.l.bf16 %v10333_v59 }
 0x660   : > { %5874 = vperm.xlu1 %8114, %v5848_v58   ;;  %v5266_v31 = vsel %vm1042_vm6, %v8648_v17, %v8649_v15 }
 0x661   : > { %v8657_v62 = vpop.permute.xlu0 %8656  ;;  %7718 = vmatpush3.bf16.msra.mxu0 %v7715_v19  ;;  %v7735_v46 = vpack.c.bf16 %v5266_v31, %v5265_v35  ;;  %v5267_v47 = vsel %vm1042_vm6, %v8653_v33, %v8654_v32 }
 0x662   : > { %v10337_v4 = vpop.permute.xlu1 %8661  ;;  %7720 = vmatprep.subr.bf16.mxu0 %v7719_v3  ;;  %v8659_v29 = vunpack.i.h.bf16 %v8657_v62  ;;  %v8658_v8 = vunpack.i.l.bf16 %v8657_v62 }
 0x663   : > { %5889 = vperm.xlu0 %8113, %v5851_v27   ;;  %v8664_v41 = vunpack.i.h.bf16 %v10337_v4  ;;  %v8663_v42 = vunpack.i.l.bf16 %v10337_v4  ;;  %v6241_v4 = vld [vmem:[%s10588_s6 + $0x178] sm:$0xff] }
 0x664   : > { %5884 = vperm.xlu1 %8114, %v5850_v0   ;;  %v5268_v6 = vsel %vm1042_vm6, %v8658_v8, %v8659_v29 }
 0x665   : > { %v8667_v9 = vpop.permute.xlu0 %8666  ;;  %7722 = vmatpush3.bf16.msra.mxu0 %v7719_v3  ;;  %v7739_v48 = vpack.c.bf16 %v5268_v6, %v5267_v47  ;;  %v5269_v56 = vsel %vm1042_vm6, %v8663_v42, %v8664_v41 }
 0x666   : > { %v8672_v10 = vpop.permute.xlu1 %8671  ;;  %7724 = vmatprep.subr.bf16.mxu0 %v7723_v60  ;;  %v8669_v39 = vunpack.i.h.bf16 %v8667_v9  ;;  %v8668_v43 = vunpack.i.l.bf16 %v8667_v9 }
 0x667   : > { %v8674_v12 = vunpack.i.h.bf16 %v8672_v10  ;;  %v8673_v13 = vunpack.i.l.bf16 %v8672_v10 }
 0x668   : > { %v5270_v49 = vsel %vm1042_vm6, %v8668_v43, %v8669_v39 }
 0x669   : > { %v10344_v24 = vpop.permute.xlu0 %8681  ;;  %7726 = vmatpush3.bf16.msra.mxu0 %v7723_v60  ;;  %v5059_v18 = vsel %vm929_vm4, %v8673_v13, %v8674_v12  ;;  %v7743_v58 = vpack.c.bf16 %v5270_v49, %v5269_v56  ;;  %v6244_v49 = vld [vmem:[%s10588_s6 + $0x190] sm:$0xff] }
 0x66a   : > { %v8677_v20 = vpop.permute.xlu1 %8676  ;;  %v7727_v21 = vpack.c.bf16 %v5060_v14, %v5059_v18  ;;  %v8684_v19 = vunpack.i.h.bf16 %v10344_v24  ;;  %v8683_v28 = vunpack.i.l.bf16 %v10344_v24 }
 0x66b   : > { %v8679_v52 = vunpack.i.h.bf16 %v8677_v20  ;;  %v8678_v50 = vunpack.i.l.bf16 %v8677_v20 }
 0x66c   : > { %7728 = vmatprep.subr.bf16.mxu0 %v7727_v21  ;;  %v5272_v61 = vsel %vm1042_vm6, %v8683_v28, %v8684_v19 }
 0x66d   : > { %v8692_v57 = vpop.permute.xlu0 %8691  ;;  %7730 = vmatpush3.bf16.msra.mxu0 %v7727_v21  ;;  %v5271_v36 = vsel %vm1042_vm6, %v8678_v50, %v8679_v52 }
 0x66e   : > { %v8687_v2 = vpop.permute.xlu1 %8686  ;;  %7732 = vmatprep.subr.bf16.mxu0 %v7731_v53  ;;  %v8694_v59 = vunpack.i.h.bf16 %v8692_v57  ;;  %v8693_v3 = vunpack.i.l.bf16 %v8692_v57  ;;  %v7747_v60 = vpack.c.bf16 %v5272_v61, %v5271_v36 }
 0x66f   : > { %v8689_v27 = vunpack.i.h.bf16 %v8687_v2  ;;  %v8688_v62 = vunpack.i.l.bf16 %v8687_v2 }
 0x670   : > { %7324 = vmatmul.mubr.f32.vlgmr.msra.gmra.mrb[4].mxu0 %v6235_v30  ;;  %v5274_v55 = vsel %vm1042_vm6, %v8693_v3, %v8694_v59 }
 0x671   : > { %v8702_v40 = vpop.permute.xlu0 %8701  ;;  %7734 = vmatpush3.bf16.msra.mxu0 %v7731_v53  ;;  %7326 = vmatprep.mubr.f32.mxu0 %v6236_v1  ;;  %v5273_v7 = vsel %vm1042_vm6, %v8688_v62, %v8689_v27  ;;  %v6246_v27 = vld [vmem:[%s10588_s6 + $0x1a0] sm:$0xff] }
 0x672   : > { %v8697_v44 = vpop.permute.xlu1 %8696  ;;  %7736 = vmatprep.subr.bf16.mxu0 %v7735_v46  ;;  %v8704_v9 = vunpack.i.h.bf16 %v8702_v40  ;;  %v8703_v10 = vunpack.i.l.bf16 %v8702_v40  ;;  %v7751_v14 = vpack.c.bf16 %v5274_v55, %v5273_v7  ;;  %v6247_v7 = vld [vmem:[%s10588_s6 + $0x1a8] sm:$0xff] }
 0x673   : > { %v8699_v11 = vunpack.i.h.bf16 %v8697_v44  ;;  %v8698_v37 = vunpack.i.l.bf16 %v8697_v44 }
 0x674   : > { %7327 = vmatmul.mubr.f32.gmra.mrb[6].mxu0 %v6237_v16  ;;  %v5276_v24 = vsel %vm1042_vm6, %v8703_v10, %v8704_v9  ;;  %v6248_v10 = vld [vmem:[%s10588_s6 + $0x1b0] sm:$0xff] }
 0x675   : > { %v8707_v54 = vpop.permute.xlu0 %8706  ;;  %7738 = vmatpush3.bf16.msra.mxu0 %v7735_v46  ;;  %7329 = vmatprep.mubr.f32.mxu0 %v6238_v45  ;;  %v5275_v17 = vsel %vm1042_vm6, %v8698_v37, %v8699_v11  ;;  %v6243_v45 = vld [vmem:[%s10588_s6 + $0x188] sm:$0xff] }
 0x676   : > { %v10377_v34 = vpop.permute.xlu1 %8711  ;;  %7740 = vmatprep.subr.bf16.mxu0 %v7739_v48  ;;  %v8709_v26 = vunpack.i.h.bf16 %v8707_v54  ;;  %v8708_v20 = vunpack.i.l.bf16 %v8707_v54  ;;  %v7755_v21 = vpack.c.bf16 %v5276_v24, %v5275_v17 }
 0x677   : > { %v8714_v29 = vunpack.i.h.bf16 %v10377_v34  ;;  %v8713_v8 = vunpack.i.l.bf16 %v10377_v34 }
 0x678   : > { %7330 = vmatmul.mubr.f32.gmra.mrb[8].mxu0 %v6239_v51  ;;  %v5278_v31 = vsel %vm1042_vm6, %v8708_v20, %v8709_v26  ;;  %v6250_v20 = vld [vmem:[%s10588_s6 + $0x1c0] sm:$0xff] }
 0x679   : > { %v8717_v0 = vpop.permute.xlu0 %8716  ;;  %7742 = vmatpush3.bf16.msra.mxu0 %v7739_v48  ;;  %7332 = vmatprep.mubr.f32.mxu0 %v6240_v38  ;;  %v5481_v6 = vsel %vm1155_vm7, %v8713_v8, %v8714_v29  ;;  %v6245_v38 = vld [vmem:[%s10588_s6 + $0x198] sm:$0xff] }
 0x67a   : > { %v10388_v63 = vpop.permute.xlu1 %8721  ;;  %7744 = vmatprep.subr.bf16.mxu0 %v7743_v58  ;;  %v8719_v22 = vunpack.i.h.bf16 %v8717_v0  ;;  %v8718_v23 = vunpack.i.l.bf16 %v8717_v0 }
 0x67b   : > { %v8724_v46 = vunpack.i.h.bf16 %v10388_v63  ;;  %v8723_v40 = vunpack.i.l.bf16 %v10388_v63 }
 0x67c   : > { %7333 = vmatmul.mubr.f32.gmra.mrb[10].mxu0 %v6241_v4  ;;  %v5482_v35 = vsel %vm1155_vm7, %v8718_v23, %v8719_v22 }
 0x67d   : > { %v8727_v12 = vpop.permute.xlu0 %8726  ;;  %7746 = vmatpush3.bf16.msra.mxu0 %v7743_v58  ;;  %7367 = vmatprep.mubr.f32.mxu0 %v6242_v5  ;;  %v7763_v16 = vpack.c.bf16 %v5482_v35, %v5481_v6  ;;  %v5483_v52 = vsel %vm1155_vm7, %v8723_v40, %v8724_v46 }
 0x67e   : > { %v10395_v13 = vpop.permute.xlu1 %8731  ;;  %7748 = vmatprep.subr.bf16.mxu0 %v7747_v60  ;;  %v8729_v2 = vunpack.i.h.bf16 %v8727_v12  ;;  %v8728_v1 = vunpack.i.l.bf16 %v8727_v12 }
 0x67f   : > { %v8734_v19 = vunpack.i.h.bf16 %v10395_v13  ;;  %v8733_v28 = vunpack.i.l.bf16 %v10395_v13 }
 0x680   : > { %v5484_v47 = vsel %vm1155_vm7, %v8728_v1, %v8729_v2 }
 0x681   : > { %v8737_v15 = vpop.permute.xlu0 %8736  ;;  %7750 = vmatpush3.bf16.msra.mxu0 %v7747_v60  ;;  %v7767_v51 = vpack.c.bf16 %v5484_v47, %v5483_v52  ;;  %v5485_v62 = vsel %vm1155_vm7, %v8733_v28, %v8734_v19 }
 0x682   : > { %v10399_v18 = vpop.permute.xlu1 %8741  ;;  %7752 = vmatprep.subr.bf16.mxu0 %v7751_v14  ;;  %v8739_v41 = vunpack.i.h.bf16 %v8737_v15  ;;  %v8738_v42 = vunpack.i.l.bf16 %v8737_v15 }
 0x683   : > { %v8744_v58 = vunpack.i.h.bf16 %v10399_v18  ;;  %v8743_v59 = vunpack.i.l.bf16 %v10399_v18  ;;  %v6249_v18 = vld [vmem:[%s10588_s6 + $0x1b8] sm:$0xff] }
 0x684   : > { %v5486_v56 = vsel %vm1155_vm7, %v8738_v42, %v8739_v41 }
 0x685   : > { %v8747_v25 = vpop.permute.xlu0 %8746  ;;  %7754 = vmatpush3.bf16.msra.mxu0 %v7751_v14  ;;  %v7771_v0 = vpack.c.bf16 %v5486_v56, %v5485_v62  ;;  %v5487_v9 = vsel %vm1155_vm7, %v8743_v59, %v8744_v58 }
 0x686   : > { %v8752_v53 = vpop.permute.xlu1 %8751  ;;  %7756 = vmatprep.subr.bf16.mxu0 %v7755_v21  ;;  %v8749_v50 = vunpack.i.h.bf16 %v8747_v25  ;;  %v8748_v54 = vunpack.i.l.bf16 %v8747_v25 }
 0x687   : > { %v8754_v57 = vunpack.i.h.bf16 %v8752_v53  ;;  %v8753_v30 = vunpack.i.l.bf16 %v8752_v53 }
 0x688   : > { %v5488_v36 = vsel %vm1155_vm7, %v8748_v54, %v8749_v50 }
 0x689   : > { %v10404_v32 = vpop.permute.xlu0 %8761  ;;  %7758 = vmatpush3.bf16.msra.mxu0 %v7755_v21  ;;  %v5277_v33 = vsel %vm1042_vm6, %v8753_v30, %v8754_v57  ;;  %v7775_v11 = vpack.c.bf16 %v5488_v36, %v5487_v9 }
 0x68a   : > { %v8757_v39 = vpop.permute.xlu1 %8756  ;;  %v7759_v43 = vpack.c.bf16 %v5278_v31, %v5277_v33  ;;  %v8764_v61 = vunpack.i.h.bf16 %v10404_v32  ;;  %v8763_v4 = vunpack.i.l.bf16 %v10404_v32 }
 0x68b   : > { %v8759_v63 = vunpack.i.h.bf16 %v8757_v39  ;;  %v8758_v5 = vunpack.i.l.bf16 %v8757_v39 }
 0x68c   : > { %7760 = vmatprep.subr.bf16.mxu0 %v7759_v43  ;;  %v5490_v24 = vsel %vm1155_vm7, %v8763_v4, %v8764_v61 }
 0x68d   : > { %v8772_v44 = vpop.permute.xlu0 %8771  ;;  %7762 = vmatpush3.bf16.msra.mxu0 %v7759_v43  ;;  %v5489_v17 = vsel %vm1155_vm7, %v8758_v5, %v8759_v63 }
 0x68e   : > { %v8767_v48 = vpop.permute.xlu1 %8766  ;;  %7764 = vmatprep.subr.bf16.mxu0 %v7763_v16  ;;  %v8774_v37 = vunpack.i.h.bf16 %v8772_v44  ;;  %v8773_v12 = vunpack.i.l.bf16 %v8772_v44  ;;  %v7779_v21 = vpack.c.bf16 %v5490_v24, %v5489_v17  ;;  %v6253_v24 = vld [vmem:[%s10588_s6 + $0x1d8] sm:$0xff] }
 0x68f   : > { %v8769_v13 = vunpack.i.h.bf16 %v8767_v48  ;;  %v8768_v14 = vunpack.i.l.bf16 %v8767_v48 }
 0x690   : > { %7368 = vmatmul.mubr.f32.vlgmr.msra.gmra.mrb[4].mxu0 %v6243_v45  ;;  %v5492_v23 = vsel %vm1155_vm7, %v8773_v12, %v8774_v37 }
 0x691   : > { %v8782_v34 = vpop.permute.xlu0 %8781  ;;  %7766 = vmatpush3.bf16.msra.mxu0 %v7763_v16  ;;  %7370 = vmatprep.mubr.f32.mxu0 %v6244_v49  ;;  %v5491_v22 = vsel %vm1155_vm7, %v8768_v14, %v8769_v13 }
 0x692   : > { %v8777_v3 = vpop.permute.xlu1 %8776  ;;  %7768 = vmatprep.subr.bf16.mxu0 %v7767_v51  ;;  %v8784_v25 = vunpack.i.h.bf16 %v8782_v34  ;;  %v8783_v53 = vunpack.i.l.bf16 %v8782_v34  ;;  %v7783_v31 = vpack.c.bf16 %v5492_v23, %v5491_v22  ;;  %v6254_v23 = vld [vmem:[%s10588_s6 + $0x1e0] sm:$0xff] }
 0x693   : > { %v8779_v29 = vunpack.i.h.bf16 %v8777_v3  ;;  %v8778_v8 = vunpack.i.l.bf16 %v8777_v3 }
 0x694   : > { %7371 = vmatmul.mubr.f32.gmra.mrb[6].mxu0 %v6245_v38  ;;  %v5494_v32 = vsel %vm1155_vm7, %v8783_v53, %v8784_v25 }
 0x695   : > { %v8787_v60 = vpop.permute.xlu0 %8786  ;;  %7770 = vmatpush3.bf16.msra.mxu0 %v7767_v51  ;;  %7373 = vmatprep.mubr.f32.mxu0 %v6246_v27  ;;  %v5493_v1 = vsel %vm1155_vm7, %v8778_v8, %v8779_v29 }
 0x696   : > { %v10437_v55 = vpop.permute.xlu1 %8791  ;;  %7772 = vmatprep.subr.bf16.mxu0 %v7771_v0  ;;  %v8789_v35 = vunpack.i.h.bf16 %v8787_v60  ;;  %v8788_v39 = vunpack.i.l.bf16 %v8787_v60  ;;  %v7787_v43 = vpack.c.bf16 %v5494_v32, %v5493_v1  ;;  %v6251_v60 = vld [vmem:[%s10588_s6 + $0x1c8] sm:$0xff] }
 0x697   : > { %v8794_v16 = vunpack.i.h.bf16 %v10437_v55  ;;  %v8793_v41 = vunpack.i.l.bf16 %v10437_v55 }
 0x698   : > { %7374 = vmatmul.mubr.f32.gmra.mrb[8].mxu0 %v6247_v7  ;;  %v5496_v47 = vsel %vm1155_vm7, %v8788_v39, %v8789_v35  ;;  %v6255_v35 = vld [vmem:[%s10588_s6 + $0x1e8] sm:$0xff] }
 0x699   : > { %v8797_v15 = vpop.permute.xlu0 %8796  ;;  %7774 = vmatpush3.bf16.msra.mxu0 %v7771_v0  ;;  %7376 = vmatprep.mubr.f32.mxu0 %v6248_v10  ;;  %v5699_v56 = vsel %vm1268_vm8, %v8793_v41, %v8794_v16 }
 0x69a   : > { %v10448_v26 = vpop.permute.xlu1 %8801  ;;  %7776 = vmatprep.subr.bf16.mxu0 %v7775_v11  ;;  %v8799_v46 = vunpack.i.h.bf16 %v8797_v15  ;;  %v8798_v40 = vunpack.i.l.bf16 %v8797_v15 }
 0x69b   : > { %v8804_v38 = vunpack.i.h.bf16 %v10448_v26  ;;  %v8803_v58 = vunpack.i.l.bf16 %v10448_v26 }
 0x69c   : > { %7377 = vmatmul.mubr.f32.gmra.mrb[10].mxu0 %v6249_v18  ;;  %v5700_v52 = vsel %vm1268_vm8, %v8798_v40, %v8799_v46  ;;  %v6256_v40 = vld [vmem:[%s10588_s6 + $0x1f0] sm:$0xff] }
 0x69d   : > { %v8807_v57 = vpop.permute.xlu0 %8806  ;;  %7778 = vmatpush3.bf16.msra.mxu0 %v7775_v11  ;;  %7411 = vmatprep.mubr.f32.mxu0 %v6250_v20  ;;  %v7795_v0 = vpack.c.bf16 %v5700_v52, %v5699_v56  ;;  %v5701_v10 = vsel %vm1268_vm8, %v8803_v58, %v8804_v38  ;;  %v6252_v11 = vld [vmem:[%s10588_s6 + $0x1d0] sm:$0xff] }
 0x69e   : > { %v10455_v30 = vpop.permute.xlu1 %8811  ;;  %7780 = vmatprep.subr.bf16.mxu0 %v7779_v21  ;;  %v8809_v48 = vunpack.i.h.bf16 %v8807_v57  ;;  %v8808_v49 = vunpack.i.l.bf16 %v8807_v57 }
 0x69f   : > { %v8814_v61 = vunpack.i.h.bf16 %v10455_v30  ;;  %v8813_v4 = vunpack.i.l.bf16 %v10455_v30 }
 0x6a0   : > { %v5702_v7 = vsel %vm1268_vm8, %v8808_v49, %v8809_v48  ;;  %v6257_v49 = vld [vmem:[%s10588_s6 + $0x1f8] sm:$0xff] }
 0x6a1   : > { %v8817_v2 = vpop.permute.xlu0 %8816  ;;  %7782 = vmatpush3.bf16.msra.mxu0 %v7779_v21  ;;  %v7799_v37 = vpack.c.bf16 %v5702_v7, %v5701_v10  ;;  %v5703_v17 = vsel %vm1268_vm8, %v8813_v4, %v8814_v61 }
 0x6a2   : > { %v10459_v33 = vpop.permute.xlu1 %8821  ;;  %7784 = vmatprep.subr.bf16.mxu0 %v7783_v31  ;;  %v8819_v27 = vunpack.i.h.bf16 %v8817_v2  ;;  %v8818_v62 = vunpack.i.l.bf16 %v8817_v2 }
 0x6a3   : > { %v8824_v18 = vunpack.i.h.bf16 %v10459_v33  ;;  %v8823_v26 = vunpack.i.l.bf16 %v10459_v33 }
 0x6a4   : > { %v5704_v12 = vsel %vm1268_vm8, %v8818_v62, %v8819_v27 }
 0x6a5   : > { %v10461_v6 = vpop.permute.xlu0 %8826  ;;  %7786 = vmatpush3.bf16.msra.mxu0 %v7783_v31  ;;  %v7803_v8 = vpack.c.bf16 %v5704_v12, %v5703_v17  ;;  %v5705_v46 = vsel %vm1268_vm8, %v8823_v26, %v8824_v18 }
 0x6a6   : > { %v8832_v42 = vpop.permute.xlu1 %8831  ;;  %7788 = vmatprep.subr.bf16.mxu0 %v7787_v43  ;;  %v8829_v13 = vunpack.i.h.bf16 %v10461_v6  ;;  %v8828_v14 = vunpack.i.l.bf16 %v10461_v6 }
 0x6a7   : > { %v8834_v44 = vunpack.i.h.bf16 %v8832_v42  ;;  %v8833_v45 = vunpack.i.l.bf16 %v8832_v42 }
 0x6a8   : > { %v5706_v33 = vsel %vm1268_vm8, %v8828_v14, %v8829_v13 }
 0x6a9   : > { %v8842_v19 = vpop.permute.xlu0 %8841  ;;  %7790 = vmatpush3.bf16.msra.mxu0 %v7787_v43  ;;  %v5495_v28 = vsel %vm1155_vm7, %v8833_v45, %v8834_v44  ;;  %v7807_v6 = vpack.c.bf16 %v5706_v33, %v5705_v46  ;;  %v6208_v33 = vld [vmem:[%s10588_s6 + $0x70] sm:$0xff]  ;;  %v6265_v46 = vld [vmem:[%s10588_s6 + $0x238] sm:$0xff] }
 0x6aa   : > { %v8844_v50 = vunpack.i.h.bf16 %v8842_v19  ;;  %v8843_v54 = vunpack.i.l.bf16 %v8842_v19  ;;  %v8837_v51 = vpop.permute.xlu1 %8836  ;;  %v7791_v34 = vpack.c.bf16 %v5496_v47, %v5495_v28 }
 0x6ab   : > { %v8839_v59 = vunpack.i.h.bf16 %v8837_v51  ;;  %v8838_v3 = vunpack.i.l.bf16 %v8837_v51 }
 0x6ac   : > { %7792 = vmatprep.subr.bf16.mxu0 %v7791_v34  ;;  %v4085_v36 = vsel %vm383_vm5, %v8843_v54, %v8844_v50  ;;  %v6258_v50 = vld [vmem:[%s10588_s6 + $0x200] sm:$0xff] }
 0x6ad   : > { %v8852_v63 = vpop.permute.xlu0 %8851  ;;  %7794 = vmatpush3.bf16.msra.mxu0 %v7791_v34  ;;  %v4084_v5 = vsel %vm383_vm5, %v8838_v3, %v8839_v59 }
 0x6ae   : > { %v8847_v55 = vpop.permute.xlu1 %8846  ;;  %7796 = vmatprep.subr.bf16.mxu0 %v7795_v0  ;;  %v7555_v9 = vpack.c.bf16 %v4085_v36, %v4084_v5  ;;  %v8854_v25 = vunpack.i.h.bf16 %v8852_v63  ;;  %v8853_v57 = vunpack.i.l.bf16 %v8852_v63 }
 0x6af   : > { %v8849_v30 = vunpack.i.h.bf16 %v8847_v55  ;;  %v8848_v31 = vunpack.i.l.bf16 %v8847_v55 }
 0x6b0   : > { %7556 = vmatprep.subr.bf16.mxu1 %v7555_v9  ;;  %7412 = vmatmul.mubr.f32.vlgmr.msra.gmra.mrb[4].mxu0 %v6251_v60  ;;  %v5708_v41 = vsel %vm1268_vm8, %v8853_v57, %v8854_v25  ;;  %v6203_v25 = vld [vmem:[%s10588_s6 + $0x48] sm:$0xff]  ;;  %v6205_v57 = vld [vmem:[%s10588_s6 + $0x58] sm:$0xff] }
 0x6b1   : > { %v8862_v15 = vpop.permute.xlu0 %8861  ;;  %7558 = vmatpush3.bf16.msra.mxu1 %v7555_v9  ;;  %7798 = vmatpush3.bf16.msra.mxu0 %v7795_v0  ;;  %v5707_v16 = vsel %vm1268_vm8, %v8848_v31, %v8849_v30  ;;  %v6260_v30 = vld [vmem:[%s10588_s6 + $0x210] sm:$0xff]  ;;  %v6206_v31 = vld [vmem:[%s10588_s6 + $0x60] sm:$0xff] }
 0x6b2   : > { %v8864_v20 = vunpack.i.h.bf16 %v8862_v15  ;;  %v8863_v21 = vunpack.i.l.bf16 %v8862_v15  ;;  %v8857_v22 = vpop.permute.xlu1 %8856  ;;  %7800 = vmatprep.subr.bf16.mxu0 %v7799_v37  ;;  %7414 = vmatprep.mubr.f32.mxu0 %v6252_v11  ;;  %v7811_v34 = vpack.c.bf16 %v5708_v41, %v5707_v16 }
 0x6b3   : > { %v8859_v53 = vunpack.i.h.bf16 %v8857_v22  ;;  %v8858_v29 = vunpack.i.l.bf16 %v8857_v22 }
 0x6b4   : > { %v4087_v2 = vsel %vm383_vm5, %v8863_v21, %v8864_v20  ;;  %7415 = vmatmul.mubr.f32.gmra.mrb[6].mxu0 %v6253_v24 }
 0x6b5   : > { %v8872_v1 = vpop.permute.xlu0 %8871  ;;  %7802 = vmatpush3.bf16.msra.mxu0 %v7799_v37  ;;  %v4086_v32 = vsel %vm383_vm5, %v8858_v29, %v8859_v53  ;;  %7417 = vmatprep.mubr.f32.mxu0 %v6254_v23  ;;  %v6204_v29 = vld [vmem:[%s10588_s6 + $0x50] sm:$0xff] }
 0x6b6   : > { %v8867_v39 = vpop.permute.xlu1 %8866  ;;  %7804 = vmatprep.subr.bf16.mxu0 %v7803_v8  ;;  %v7559_v43 = vpack.c.bf16 %v4087_v2, %v4086_v32  ;;  %v8874_v42 = vunpack.i.h.bf16 %v8872_v1  ;;  %v8873_v44 = vunpack.i.l.bf16 %v8872_v1  ;;  %v6261_v2 = vld [vmem:[%s10588_s6 + $0x218] sm:$0xff]  ;;  %v6207_v1 = vld [vmem:[%s10588_s6 + $0x68] sm:$0xff]  ;;  %v6262_v32 = vld [vmem:[%s10588_s6 + $0x220] sm:$0xff] }
 0x6b7   : > { %v8869_v45 = vunpack.i.h.bf16 %v8867_v39  ;;  %v8868_v47 = vunpack.i.l.bf16 %v8867_v39  ;;  %v6209_v39 = vld [vmem:[%s10588_s6 + $0x78] sm:$0xff] }
 0x6b8   : > { %7560 = vmatprep.subr.bf16.mxu1 %v7559_v43  ;;  %7418 = vmatmul.mubr.f32.gmra.mrb[8].mxu0 %v6255_v35  ;;  %v5710_v3 = vsel %vm1268_vm8, %v8873_v44, %v8874_v42  ;;  %v6263_v35 = vld [vmem:[%s10588_s6 + $0x228] sm:$0xff] }
 0x6b9   : > { %v8882_v48 = vpop.permute.xlu0 %8881  ;;  %7562 = vmatpush3.bf16.msra.mxu1 %v7559_v43  ;;  %7806 = vmatpush3.bf16.msra.mxu0 %v7803_v8  ;;  %v5709_v59 = vsel %vm1268_vm8, %v8868_v47, %v8869_v45  ;;  %v6259_v8 = vld [vmem:[%s10588_s6 + $0x208] sm:$0xff]  ;;  %v6264_v43 = vld [vmem:[%s10588_s6 + $0x230] sm:$0xff] }
 0x6ba   : > { %v8884_v19 = vunpack.i.h.bf16 %v8882_v48  ;;  %v8883_v28 = vunpack.i.l.bf16 %v8882_v48  ;;  %v8877_v52 = vpop.permute.xlu1 %8876  ;;  %7808 = vmatprep.subr.bf16.mxu0 %v7807_v6  ;;  %7420 = vmatprep.mubr.f32.mxu0 %v6256_v40  ;;  %v7815_v63 = vpack.c.bf16 %v5710_v3, %v5709_v59 }
 0x6bb   : > { %v8879_v54 = vunpack.i.h.bf16 %v8877_v52  ;;  %v8878_v51 = vunpack.i.l.bf16 %v8877_v52 }
 0x6bc   : > { %v4089_v56 = vsel %vm383_vm5, %v8883_v28, %v8884_v19  ;;  %7421 = vmatmul.mubr.f32.gmra.mrb[10].mxu0 %v6257_v49 }
 0x6bd   : > { %v8892_v38 = vpop.permute.xlu0 %8891  ;;  %7810 = vmatpush3.bf16.msra.mxu0 %v7807_v6  ;;  %v4088_v58 = vsel %vm383_vm5, %v8878_v51, %v8879_v54  ;;  %7455 = vmatprep.mubr.f32.mxu0 %v6258_v50 }
 0x6be   : > { %v8894_v27 = vunpack.i.h.bf16 %v8892_v38  ;;  %v8893_v62 = vunpack.i.l.bf16 %v8892_v38  ;;  %v8887_v0 = vpop.permute.xlu1 %8886  ;;  %7812 = vmatprep.subr.bf16.mxu0 %v7811_v34  ;;  %v7563_v36 = vpack.c.bf16 %v4089_v56, %v4088_v58 }
 0x6bf   : > { %v8889_v61 = vunpack.i.h.bf16 %v8887_v0  ;;  %v8888_v4 = vunpack.i.l.bf16 %v8887_v0 }
 0x6c0   : > { %7564 = vmatprep.subr.bf16.mxu1 %v7563_v36  ;;  %v5712_v7 = vsel %vm1268_vm8, %v8893_v62, %v8894_v27 }
 0x6c1   : > { %v8897_v5 = vpop.permute.xlu0 %8896  ;;  %7566 = vmatpush3.bf16.msra.mxu1 %v7563_v36  ;;  %7814 = vmatpush3.bf16.msra.mxu0 %v7811_v34  ;;  %v5711_v60 = vsel %vm1268_vm8, %v8888_v4, %v8889_v61 }
 0x6c2   : > { %v8899_v55 = vunpack.i.h.bf16 %v8897_v5  ;;  %v8898_v9 = vunpack.i.l.bf16 %v8897_v5  ;;  %v8902_v10 = vpop.permute.xlu1 %8901  ;;  %7816 = vmatprep.subr.bf16.mxu0 %v7815_v63  ;;  %v7819_v12 = vpack.c.bf16 %v5712_v7, %v5711_v60 }
 0x6c3   : > { %v8904_v11 = vunpack.i.h.bf16 %v8902_v10  ;;  %v8903_v37 = vunpack.i.l.bf16 %v8902_v10 }
 0x6c4   : > { %v4091_v13 = vsel %vm383_vm5, %v8898_v9, %v8899_v55 }
 0x6c5   : > { %v8912_v14 = vpop.permute.xlu0 %8911  ;;  %7818 = vmatpush3.bf16.msra.mxu0 %v7815_v63  ;;  %v4090_v15 = vsel %vm383_vm5, %v8903_v37, %v8904_v11 }
 0x6c6   : > { %v8914_v17 = vunpack.i.h.bf16 %v8912_v14  ;;  %v8913_v24 = vunpack.i.l.bf16 %v8912_v14  ;;  %v8907_v18 = vpop.permute.xlu1 %8906  ;;  %7820 = vmatprep.subr.bf16.mxu0 %v7819_v12  ;;  %v7567_v26 = vpack.c.bf16 %v4091_v13, %v4090_v15 }
 0x6c7   : > { %v8909_v20 = vunpack.i.h.bf16 %v8907_v18  ;;  %v8908_v21 = vunpack.i.l.bf16 %v8907_v18 }
 0x6c8   : > { %7568 = vmatprep.subr.bf16.mxu1 %v7567_v26  ;;  %v5714_v22 = vsel %vm1268_vm8, %v8913_v24, %v8914_v17 }
 0x6c9   : > { %7570 = vmatpush3.bf16.msra.mxu1 %v7567_v26  ;;  %7822 = vmatpush3.bf16.msra.mxu0 %v7819_v12  ;;  %v5713_v23 = vsel %vm1268_vm8, %v8908_v21, %v8909_v20 }
 0x6ca   : > { %v7823_v53 = vpack.c.bf16 %v5714_v22, %v5713_v23 }
 0x6cc   : > { %7824 = vmatprep.subr.bf16.mxu0 %v7823_v53  ;;  %7104 = vmatmul.mubr.f32.vlgmr.msra.gmra.mrb[20].mxu1 %v6203_v25 }
 0x6cd   : > { %7826 = vmatpush3.bf16.msra.mxu0 %v7823_v53  ;;  %7106 = vmatprep.mubr.f32.mxu1 %v6204_v29 }
 0x6d0   : > { %7456 = vmatmul.mubr.f32.vlgmr.msra.gmra.mrb[4].mxu0 %v6259_v8  ;;  %7107 = vmatmul.mubr.f32.gmra.mrb[22].mxu1 %v6205_v57 }
 0x6d1   : > { %7458 = vmatprep.mubr.f32.mxu0 %v6260_v30  ;;  %7109 = vmatprep.mubr.f32.mxu1 %v6206_v31 }
 0x6d4   : > { %7459 = vmatmul.mubr.f32.gmra.mrb[6].mxu0 %v6261_v2  ;;  %7110 = vmatmul.mubr.f32.gmra.mrb[24].mxu1 %v6207_v1 }
 0x6d5   : > { %7461 = vmatprep.mubr.f32.mxu0 %v6262_v32  ;;  %7112 = vmatprep.mubr.f32.mxu1 %v6208_v33 }
 0x6d6   : > { %v5860_v40 = vpop.permute.xlu0 %5859 }
 0x6d7   : > { %v5855_v6 = vpop.permute.xlu1 %5854 }
 0x6d8   : > { %7462 = vmatmul.mubr.f32.gmra.mrb[8].mxu0 %v6263_v35  ;;  %7113 = vmatmul.mubr.f32.gmra.mrb[26].mxu1 %v6209_v39 }
 0x6d9   : > { %7464 = vmatprep.mubr.f32.mxu0 %v6264_v43 }
 0x6da   : > { %v5870_v42 = vpop.permute.xlu0 %5869 }
 0x6db   : > { %v5865_v44 = vpop.permute.xlu1 %5864 }
 0x6dc   : > { %7465 = vmatmul.mubr.f32.gmra.mrb[10].mxu0 %v6265_v46 }
 0x6de   : > { %v5880_v59 = vpop.permute.xlu0 %5879 }
 0x6df   : > { %v5875_v3 = vpop.permute.xlu1 %5874 }
 0x6e2   : > { %v5890_v11 = vpop.permute.xlu0 %5889 }
 0x6e3   : > { %v5885_v12 = vpop.permute.xlu1 %5884 }
 0x79f   : > { %v7105_v16 = vpop.f32.mrb[20].mxu1 }
 0x7a0   : > { %v4174_v41 = vpop.f32.mrb[21].mxu1 }
 0x7a3   : > { %v7457_v45 = vpop.f32.mrb[4].mxu0  ;;  %v7108_v47 = vpop.f32.mrb[22].mxu1 }
 0x7a4   : > { %v7831_v48 = vadd.f32 %v7457_v45, %v7105_v16  ;;  %v5797_v49 = vpop.f32.mrb[5].mxu0  ;;  %v4184_v19 = vpop.f32.mrb[23].mxu1 }
 0x7a5   : > { %v7832_v28 = vadd.f32 %v5797_v49, %v4174_v41 }
 0x7a6   : > { %v5893_v52 = vadd.f32 %v7831_v48, %v5860_v40 }
 0x7a7   : > { %v5892_v50 = vadd.f32 %v7832_v28, %v5855_v6  ;;  %v7460_v54 = vpop.f32.mrb[6].mxu0  ;;  %v7111_v51 = vpop.f32.mrb[24].mxu1 }
 0x7a8   : > { %5901 = vst [vmem:[%s10569_s10 + $0x8] sm:$0xff] %v5893_v52  ;;  %v7833_v34 = vadd.f32 %v7460_v54, %v7108_v47  ;;  %v5807_v56 = vpop.f32.mrb[7].mxu0  ;;  %v4194_v38 = vpop.f32.mrb[25].mxu1 }
 0x7a9   : > { %5900 = vst [vmem:[%s10569_s10] sm:$0xff] %v5892_v50  ;;  %v7834_v58 = vadd.f32 %v5807_v56, %v4184_v19 }
 0x7aa   : > { %v5895_v27 = vadd.f32 %v7833_v34, %v5870_v42 }
 0x7ab   : > { %v5894_v62 = vadd.f32 %v7834_v58, %v5865_v44  ;;  %v7463_v0 = vpop.f32.mrb[8].mxu0  ;;  %v7114_v36 = vpop.f32.mrb[26].mxu1 }
 0x7ac   : > { %5903 = vst [vmem:[%s10569_s10 + $0x18] sm:$0xff] %v5895_v27  ;;  %v7835_v61 = vadd.f32 %v7463_v0, %v7111_v51  ;;  %v5817_v4 = vpop.f32.mrb[9].mxu0  ;;  %v4204_v63 = vpop.f32.mrb[27].mxu1 }
 0x7ad   : > { %5902 = vst [vmem:[%s10569_s10 + $0x10] sm:$0xff] %v5894_v62  ;;  %v7836_v5 = vadd.f32 %v5817_v4, %v4194_v38 }
 0x7ae   : > { %v5897_v60 = vadd.f32 %v7835_v61, %v5880_v59 }
 0x7af   : > { %v5896_v7 = vadd.f32 %v7836_v5, %v5875_v3  ;;  %v7466_v55 = vpop.f32.mrb[10].mxu0 }
 0x7b0   : > { %5905 = vst [vmem:[%s10569_s10 + $0x28] sm:$0xff] %v5897_v60  ;;  %v7837_v9 = vadd.f32 %v7466_v55, %v7114_v36  ;;  %v5827_v10 = vpop.f32.mrb[11].mxu0 }
 0x7b1   : > { %5904 = vst [vmem:[%s10569_s10 + $0x20] sm:$0xff] %v5896_v7  ;;  %v7838_v37 = vadd.f32 %v5827_v10, %v4204_v63 }
 0x7b2   : > { %v5899_v13 = vadd.f32 %v7837_v9, %v5890_v11 }
 0x7b3   : > { %v5898_v14 = vadd.f32 %v7838_v37, %v5885_v12 }
 0x7b4   : > { %5907 = vst [vmem:[%s10569_s10 + $0x38] sm:$0xff] %v5899_v13 }
 0x7b5   : > { %5906 = vst [vmem:[%s10569_s10 + $0x30] sm:$0xff] %v5898_v14 }
 0x7b6 PF: > { %s21_s27 = sadd.s32 1, %s9046_s27  }
 0x7b7   : > { %p18_p6 = scmp.ge.s32.totalorder %s21_s27, 4  }
 0x7b9   :  { %20 = sbr.rel (!%p18_p6) target bundleno = 3 (0x3), region = 123 }
 0x7c0   :  { %5929 = vsyncpa [#allocation5], 1 }
 0x7c1   :  { %5931 = vsyncpa [#allocation5 + $0x1], 1 }
 0x7c2   :  { %5932 = vsyncpa [#allocation7], 1 }
 0x7c3   :  { %5933 = vsyncpa [#allocation10], 1 }

</bundles_post_ra>
